<compile_context>
chip_gen: v6e
topology: v6e:2x2x1
jax: 0.10.0
libtpu: 0.0.40
codegen_flags: <defaults>
</compile_context>

<pallas_src>
import functools

import numpy as np
import jax
import jax.numpy as jnp
from jax.experimental import pallas as pl
from jax.experimental.pallas import tpu as pltpu

NEG_SLOPE_MLP = 0.01   # F.leaky_relu default slope (MLPPredictor)
NEG_SLOPE_GAT = 0.2    # DGL GATConv attention leaky_relu slope
LANE = 128
MASK_NEG = -1e30       # finite "masked" score (see load-bearing select below)


def _round_up(x, m):
    return (x + m - 1) // m * m


def _leaky_relu(x, slope):
    return jnp.where(x >= 0, x, slope * x)


def _vmem_limit_bytes():
    # Generation-aware: ~3/4 of physical VMEM (v5e/v6e: 128 MiB -> ~96 MiB, v7x: 64 -> 48).
    try:
        cap = int(pltpu.get_tpu_info().vmem_capacity_bytes)
    except Exception:
        cap = 64 * 1024 * 1024
    return max(32 * 1024 * 1024, min((cap * 3) // 4, 100 * 1024 * 1024))


def _compiler_params(dim_sem):
    return pltpu.CompilerParams(
        dimension_semantics=dim_sem,
        vmem_limit_bytes=_vmem_limit_bytes(),
    )


def _pad2(a, rows, cols, dtype=jnp.float32):
    out = jnp.zeros((rows, cols), dtype)
    return out.at[: a.shape[0], : a.shape[1]].set(a.astype(dtype))


# ----------------------------------------------------------------------------
# Host-side (static graph) preprocessing: int8 adjacency + block-sparse schedule
# ----------------------------------------------------------------------------
def build_graph_blocks(src, dst, n, tile):
    """Dense int8 adjacency (with self-loops) + compacted nonzero-block schedule."""
    src = np.asarray(src, np.int64)
    dst = np.asarray(dst, np.int64)
    npad = _round_up(max(int(n), 1), tile)
    adj = np.zeros((npad, npad), np.int8)
    adj[dst, src] = 1
    d = np.arange(n)
    adj[d, d] = 1                                     # dgl.add_self_loop
    nb = npad // tile
    blkmask = adj.reshape(nb, tile, nb, tile).any(axis=(1, 3))   # (dst_blk, src_blk)
    cnt = blkmask.sum(axis=1).astype(np.int32)
    kmax = max(int(cnt.max()), 1)
    blk = np.zeros((nb, kmax), np.int32)
    for i in range(nb):
        nz = np.flatnonzero(blkmask[i]).astype(np.int32)
        if nz.size:
            blk[i, :nz.size] = nz
            blk[i, nz.size:] = nz[-1]   # repeat last valid index -> pipeline re-uses resident tile
    return jnp.asarray(adj), jnp.asarray(blk.reshape(-1)), jnp.asarray(cnt)


def pick_node_tile(n):
    npad128 = _round_up(max(n, 1), 128)
    if npad128 >= 1024:
        return 512            # still >= 2 dst tiles -> both v7x TCs busy
    if npad128 >= 512:
        return 256
    return 128


def pick_edge_tile(e):
    epad128 = _round_up(max(e, 1), 128)
    if epad128 >= 1024:
        return 512
    if epad128 >= 512:
        return 256
    return 128


# ----------------------------------------------------------------------------
# Kernel 1: GAT linear projection + fused attention terms (row-tiled, parallel)
# ----------------------------------------------------------------------------
def gat_project_kernel(x_ref, w_ref, al_ref, ar_ref, z_ref, el_ref, er_ref):
    z = jnp.dot(x_ref[...], w_ref[...], preferred_element_type=jnp.float32)   # (T, F) f32
    # attention terms on VPU/XLU; el stored lane-major so the aggregation never transposes it
    el_ref[...] = jnp.sum(z * al_ref[...], axis=1, keepdims=True).T           # (1, T) src term
    er_ref[...] = jnp.sum(z * ar_ref[...], axis=1, keepdims=True)             # (T, 1) dst term
    z_ref[...] = z.astype(jnp.bfloat16)


def gat_project(x, w, al, ar, tile_n):
    npad, fin = x.shape
    fout = w.shape[1]
    return pl.pallas_call(
        gat_project_kernel,
        out_shape=(
            jax.ShapeDtypeStruct((npad, fout), jnp.bfloat16),
            jax.ShapeDtypeStruct((1, npad), jnp.float32),
            jax.ShapeDtypeStruct((npad, 1), jnp.float32),
        ),
        grid=(npad // tile_n,),
        in_specs=[
            pl.BlockSpec((tile_n, fin), lambda i: (i, 0)),
            pl.BlockSpec((fin, fout), lambda i: (0, 0)),
            pl.BlockSpec((1, fout), lambda i: (0, 0)),
            pl.BlockSpec((1, fout), lambda i: (0, 0)),
        ],
        out_specs=(
            pl.BlockSpec((tile_n, fout), lambda i: (i, 0)),
            pl.BlockSpec((1, tile_n), lambda i: (0, i)),
            pl.BlockSpec((tile_n, 1), lambda i: (i, 0)),
        ),
        compiler_params=_compiler_params(("parallel",)),
    )(x, w, al, ar)


# ----------------------------------------------------------------------------
# Flash-style masked-softmax update shared by both aggregation kernels
# ----------------------------------------------------------------------------
def _flash_update(er, el, z, adj, m_sc, l_sc, acc_sc):
    mask = adj != 0                                        # integer-domain mask, no f32 cast
    s = er + el                                            # (TD,1)+(1,TS) -> (TD,TS)
    s = jnp.where(s >= 0, s, NEG_SLOPE_GAT * s)            # leaky_relu
    s = jnp.where(mask, s, MASK_NEG)
    m_prev = m_sc[...]
    m_new = jnp.maximum(m_prev, jnp.max(s, axis=1, keepdims=True))
    # Load-bearing select: a fully-masked row has m_new == -1e30 and exp(s-m_new) == 1
    # on the masked lanes without it.
    p = jnp.where(mask, jnp.exp(s - m_new), jnp.float32(0.0))
    corr = jnp.exp(m_prev - m_new)
    l_sc[...] = corr * l_sc[...] + jnp.sum(p, axis=1, keepdims=True)
    acc_sc[...] = corr * acc_sc[...] + jnp.dot(
        p.astype(jnp.bfloat16), z, preferred_element_type=jnp.float32)
    m_sc[...] = m_new


def _normalized(acc_sc, l_sc):
    # guard fully-masked (padded) rows against 0/0
    inv = pl.reciprocal(jnp.maximum(l_sc[...], jnp.float32(1e-20)), approx=True)
    return acc_sc[...] * inv


# ----------------------------------------------------------------------------
# Kernel 2: layer-1 aggregation (block-sparse, ELU fused) + fused layer-2 projection
# ----------------------------------------------------------------------------
def gat_attn_fused_kernel(blk_ref, cnt_ref,
                          er_ref, el_ref, z_ref, adj_ref,
                          w2_ref, al2_ref, ar2_ref,
                          z2_ref, el2_ref, er2_ref,
                          m_sc, l_sc, acc_sc):
    i = pl.program_id(0)
    k = pl.program_id(1)

    @pl.when(k == 0)
    def _():
        m_sc[...] = jnp.full_like(m_sc, -jnp.inf)
        l_sc[...] = jnp.zeros_like(l_sc)
        acc_sc[...] = jnp.zeros_like(acc_sc)

    @pl.when(k < cnt_ref[i])                     # skip empty (dst, src) blocks
    def _():
        _flash_update(er_ref[...], el_ref[...], z_ref[...], adj_ref[...],
                      m_sc, l_sc, acc_sc)

    @pl.when(k == pl.num_programs(1) - 1)
    def _():
        h = _normalized(acc_sc, l_sc)
        h = jnp.where(h > 0, h, jnp.exp(jnp.minimum(h, 0.0)) - 1.0)   # ELU
        hb = h.astype(jnp.bfloat16)
        # fused layer-2 projection: h1 never leaves VMEM
        z2 = jnp.dot(hb, w2_ref[...], preferred_element_type=jnp.float32)
        el2_ref[...] = jnp.sum(z2 * al2_ref[...], axis=1, keepdims=True).T   # lane-major (1, T)
        er2_ref[...] = jnp.sum(z2 * ar2_ref[...], axis=1, keepdims=True)
        z2_ref[...] = z2.astype(jnp.bfloat16)


def gat_attention_fused(blk, cnt, er, el, z, adj, w2, al2, ar2, tile_n, kmax):
    npad, hidp = z.shape
    foutp = w2.shape[1]
    nd = npad // tile_n

    grid_spec = pltpu.PrefetchScalarGridSpec(
        num_scalar_prefetch=2,
        grid=(nd, kmax),
        in_specs=[
            pl.BlockSpec((tile_n, 1), lambda i, k, b, c: (i, 0)),                    # er (dst)
            pl.BlockSpec((1, tile_n), lambda i, k, b, c: (0, b[i * kmax + k])),      # el (src, lane-major)
            pl.BlockSpec((tile_n, hidp), lambda i, k, b, c: (b[i * kmax + k], 0)),   # z1 (src values)
            pl.BlockSpec((tile_n, tile_n), lambda i, k, b, c: (i, b[i * kmax + k])), # int8 adj tile
            pl.BlockSpec((hidp, foutp), lambda i, k, b, c: (0, 0)),                  # W2 (resident)
            pl.BlockSpec((1, foutp), lambda i, k, b, c: (0, 0)),                     # a_l (layer 2)
            pl.BlockSpec((1, foutp), lambda i, k, b, c: (0, 0)),                     # a_r (layer 2)
        ],
        out_specs=(
            pl.BlockSpec((tile_n, foutp), lambda i, k, b, c: (i, 0)),                # z2 (bf16)
            pl.BlockSpec((1, tile_n), lambda i, k, b, c: (0, i)),                    # el2
            pl.BlockSpec((tile_n, 1), lambda i, k, b, c: (i, 0)),                    # er2
        ),
        scratch_shapes=[
            pltpu.VMEM((tile_n, 1), jnp.float32),      # running max
            pltpu.VMEM((tile_n, 1), jnp.float32),      # running denom
            pltpu.VMEM((tile_n, hidp), jnp.float32),   # f32 accumulator
        ],
    )
    return pl.pallas_call(
        gat_attn_fused_kernel,
        out_shape=(
            jax.ShapeDtypeStruct((npad, foutp), jnp.bfloat16),
            jax.ShapeDtypeStruct((1, npad), jnp.float32),
            jax.ShapeDtypeStruct((npad, 1), jnp.float32),
        ),
        grid_spec=grid_spec,
        compiler_params=_compiler_params(("parallel", "arbitrary")),
    )(blk, cnt, er, el, z, adj, w2, al2, ar2)


# ----------------------------------------------------------------------------
# Kernel 3: layer-2 aggregation (block-sparse), bf16 output
# ----------------------------------------------------------------------------
def gat_attn_final_kernel(blk_ref, cnt_ref,
                          er_ref, el_ref, z_ref, adj_ref,
                          out_ref, m_sc, l_sc, acc_sc):
    i = pl.program_id(0)
    k = pl.program_id(1)

    @pl.when(k == 0)
    def _():
        m_sc[...] = jnp.full_like(m_sc, -jnp.inf)
        l_sc[...] = jnp.zeros_like(l_sc)
        acc_sc[...] = jnp.zeros_like(acc_sc)

    @pl.when(k < cnt_ref[i])
    def _():
        _flash_update(er_ref[...], el_ref[...], z_ref[...], adj_ref[...],
                      m_sc, l_sc, acc_sc)

    @pl.when(k == pl.num_programs(1) - 1)
    def _():
        out_ref[...] = _normalized(acc_sc, l_sc).astype(out_ref.dtype)


def gat_attention_final(blk, cnt, er, el, z, adj, tile_n, kmax):
    npad, foutp = z.shape
    nd = npad // tile_n

    grid_spec = pltpu.PrefetchScalarGridSpec(
        num_scalar_prefetch=2,
        grid=(nd, kmax),
        in_specs=[
            pl.BlockSpec((tile_n, 1), lambda i, k, b, c: (i, 0)),
            pl.BlockSpec((1, tile_n), lambda i, k, b, c: (0, b[i * kmax + k])),
            pl.BlockSpec((tile_n, foutp), lambda i, k, b, c: (b[i * kmax + k], 0)),
            pl.BlockSpec((tile_n, tile_n), lambda i, k, b, c: (i, b[i * kmax + k])),
        ],
        out_specs=pl.BlockSpec((tile_n, foutp), lambda i, k, b, c: (i, 0)),
        scratch_shapes=[
            pltpu.VMEM((tile_n, 1), jnp.float32),
            pltpu.VMEM((tile_n, 1), jnp.float32),
            pltpu.VMEM((tile_n, foutp), jnp.float32),
        ],
    )
    return pl.pallas_call(
        gat_attn_final_kernel,
        out_shape=jax.ShapeDtypeStruct((npad, foutp), jnp.bfloat16),
        grid_spec=grid_spec,
        compiler_params=_compiler_params(("parallel", "arbitrary")),
    )(blk, cnt, er, el, z, adj)


# ----------------------------------------------------------------------------
# Kernel 4: MLPPredictor edge scoring (edge-tiled, split-W1, weights resident)
# ----------------------------------------------------------------------------
def mlp_edge_kernel(hs_ref, hd_ref, w1s_ref, w1d_ref, b1_ref,
                    w2_ref, b2_ref, w3_ref, b3_ref, out_ref):
    s = (jnp.dot(hs_ref[...], w1s_ref[...], preferred_element_type=jnp.float32)
         + jnp.dot(hd_ref[...], w1d_ref[...], preferred_element_type=jnp.float32)
         + b1_ref[...])
    s = _leaky_relu(s, NEG_SLOPE_MLP)
    s = jnp.dot(s.astype(jnp.bfloat16), w2_ref[...],
                preferred_element_type=jnp.float32) + b2_ref[...]
    s = _leaky_relu(s, NEG_SLOPE_MLP)
    out_ref[...] = jnp.dot(s.astype(jnp.bfloat16), w3_ref[...],
                           preferred_element_type=jnp.float32) + b3_ref[...]


def mlp_edge_scores(hs, hd, w1s, w1d, b1, w2, b2, w3, b3, tile_e):
    epad, foutp = hs.shape
    h1 = w1s.shape[1]
    h2d = w2.shape[1]
    cp = w3.shape[1]
    return pl.pallas_call(
        mlp_edge_kernel,
        out_shape=jax.ShapeDtypeStruct((epad, cp), jnp.float32),
        grid=(epad // tile_e,),
        in_specs=[
            pl.BlockSpec((tile_e, foutp), lambda i: (i, 0)),
            pl.BlockSpec((tile_e, foutp), lambda i: (i, 0)),
            pl.BlockSpec((foutp, h1), lambda i: (0, 0)),
            pl.BlockSpec((foutp, h1), lambda i: (0, 0)),
            pl.BlockSpec((1, h1), lambda i: (0, 0)),
            pl.BlockSpec((h1, h2d), lambda i: (0, 0)),
            pl.BlockSpec((1, h2d), lambda i: (0, 0)),
            pl.BlockSpec((h2d, cp), lambda i: (0, 0)),
            pl.BlockSpec((1, cp), lambda i: (0, 0)),
        ],
        out_specs=pl.BlockSpec((tile_e, cp), lambda i: (i, 0)),
        compiler_params=_compiler_params(("parallel",)),
    )(hs, hd, w1s, w1d, b1, w2, b2, w3, b3)


# ----------------------------------------------------------------------------
# Full model forward
# ----------------------------------------------------------------------------
@functools.partial(jax.jit, static_argnames=("tile_n", "tile_e"))
def gat_model_forward(x, src, dst, adj, blk, cnt, params, *, tile_n, tile_e):
    n, fin = x.shape
    hid = params["gat1_w"].shape[1]
    fout = params["gat2_w"].shape[1]
    ncls = params["w3"].shape[1]
    h1w = params["w1"].shape[1]
    e = src.shape[0]

    npad = adj.shape[0]
    nd = npad // tile_n
    kmax = blk.shape[0] // nd
    epad = _round_up(e, tile_e)
    finp = _round_up(fin, LANE)
    hidp = _round_up(hid, LANE)
    foutp = _round_up(fout, LANE)
    cpad = _round_up(ncls, LANE)

    # --- padded / bf16 parameters (cheap one-time glue, fused under jit) ---
    g1w = _pad2(params["gat1_w"], finp, hidp, jnp.bfloat16)
    g1al = _pad2(params["gat1_al"].T, 1, hidp)
    g1ar = _pad2(params["gat1_ar"].T, 1, hidp)
    g2w = _pad2(params["gat2_w"], hidp, foutp, jnp.bfloat16)
    g2al = _pad2(params["gat2_al"].T, 1, foutp)
    g2ar = _pad2(params["gat2_ar"].T, 1, foutp)

    # W1 split into src/dst halves (no concat, no doubled-width padded array)
    w1 = params["w1"]
    w1s = _pad2(w1[:fout], foutp, h1w, jnp.bfloat16)
    w1d = _pad2(w1[fout:], foutp, h1w, jnp.bfloat16)
    b1 = params["b1"].astype(jnp.float32)
    w2 = params["w2"].astype(jnp.bfloat16)
    b2 = params["b2"].astype(jnp.float32)
    w3 = _pad2(params["w3"], params["w3"].shape[0], cpad, jnp.bfloat16)
    b3 = _pad2(params["b3"], 1, cpad)

    xp = _pad2(x, npad, finp, jnp.bfloat16)

    # --- GAT layer 1: projection, then block-sparse aggregation with
    #     ELU + layer-2 projection fused into the epilogue (h1 never hits HBM) ---
    z1, el1, er1 = gat_project(xp, g1w, g1al, g1ar, tile_n)
    z2, el2, er2 = gat_attention_fused(blk, cnt, er1, el1, z1, adj,
                                       g2w, g2al, g2ar, tile_n, kmax)

    # --- GAT layer 2 aggregation (bf16 output) ---
    h2 = gat_attention_final(blk, cnt, er2, el2, z2, adj, tile_n, kmax)

    # --- edge MLP predictor on the original (self-loop-free) edges ---
    # TODO(synk): fuse the h2[src]/h2[dst] gather into the MLP kernel via per-edge DMA
    #             gather once graph sizes make the XLA gather a measurable cost.
    hs = jnp.pad(h2[src], ((0, epad - e), (0, 0)))
    hd = jnp.pad(h2[dst], ((0, epad - e), (0, 0)))
    scores = mlp_edge_scores(hs, hd, w1s, w1d, b1, w2, b2, w3, b3, tile_e)
    return scores[:e, :ncls]


def make_params(key, in_features, hidden_features, out_features, out_classes):
    ks = jax.random.split(key, 12)

    def init(k, shape, scale=0.1):
        return (scale * jax.random.normal(k, shape)).astype(jnp.float32)

    return {
        "gat1_w":  init(ks[0], (in_features, hidden_features)),
        "gat1_al": init(ks[1], (hidden_features, 1)),
        "gat1_ar": init(ks[2], (hidden_features, 1)),
        "gat2_w":  init(ks[3], (hidden_features, out_features)),
        "gat2_al": init(ks[4], (out_features, 1)),
        "gat2_ar": init(ks[5], (out_features, 1)),
        # nn.Linear stored as (in, out); biases as (1, out) for clean broadcasting
        "w1": init(ks[6], (out_features * 2, 256)),
        "b1": init(ks[7], (1, 256)),
        "w2": init(ks[8], (256, 128)),
        "b2": init(ks[9], (1, 128)),
        "w3": init(ks[10], (128, out_classes)),
        "b3": init(ks[11], (1, out_classes)),
    }


# ----------------------------------------------------------------------------
# Pure-JAX f32 reference (same math) for a correctness check
# ----------------------------------------------------------------------------
def _ref_gat_layer(x, w, al, ar, adj):
    z = x @ w
    el = z @ al
    er = z @ ar
    e = _leaky_relu(er + el.T, NEG_SLOPE_GAT)
    e = jnp.where(adj > 0, e, -1e30)
    p = jnp.where(adj > 0, jnp.exp(e - jnp.max(e, axis=1, keepdims=True)), 0.0)
    alpha = p / jnp.sum(p, axis=1, keepdims=True)
    return alpha @ z


def _ref_forward(x, src, dst, params):
    n = x.shape[0]
    adj = jnp.zeros((n, n), jnp.float32).at[dst, src].set(1.0)
    adj_sl = jnp.maximum(adj, jnp.eye(n, dtype=jnp.float32))
    h = _ref_gat_layer(x, params["gat1_w"], params["gat1_al"], params["gat1_ar"], adj_sl)
    h = jax.nn.elu(h)
    h = _ref_gat_layer(h, params["gat2_w"], params["gat2_al"], params["gat2_ar"], adj_sl)
    hcat = jnp.concatenate([h[src], h[dst]], axis=1)
    s = _leaky_relu(hcat @ params["w1"] + params["b1"], NEG_SLOPE_MLP)
    s = _leaky_relu(s @ params["w2"] + params["b2"], NEG_SLOPE_MLP)
    return s @ params["w3"] + params["b3"]


if __name__ == "__main__":
    key = jax.random.PRNGKey(0)

    # small synthetic graph: 16 nodes, 32 directed edges (no self-loops)
    N, E = 16, 32
    in_features, hidden_features, out_features, out_classes = 8, 16, 32, 4

    src_np = np.arange(E, dtype=np.int32) % N
    dst_np = (src_np + 1 + (np.arange(E, dtype=np.int32) // N)) % N   # offsets 1, 2 -> no self loops
    src = jnp.asarray(src_np)
    dst = jnp.asarray(dst_np)

    kx, kp = jax.random.split(key)
    x = jax.random.normal(kx, (N, in_features), dtype=jnp.float32)
    params = make_params(kp, in_features, hidden_features, out_features, out_classes)

    tile_n = pick_node_tile(N)
    tile_e = pick_edge_tile(E)
    # static graph: adjacency + block-sparse schedule built once on host (numpy, int8)
    adj, blk, cnt = build_graph_blocks(src_np, dst_np, N, tile_n)

    scores = jax.block_until_ready(
        gat_model_forward(x, src, dst, adj, blk, cnt, params,
                          tile_n=tile_n, tile_e=tile_e))
    assert scores.shape == (E, out_classes)

    ref = _ref_forward(x, src, dst, params)
    max_err = float(jnp.max(jnp.abs(scores - ref)))
    assert jnp.allclose(scores, ref, atol=2e-2, rtol=2e-2), f"mismatch vs ref (max err {max_err})"

    print("KERNEL_OK")
</pallas_src>

<mosaic_0001>
module attributes {stable_mosaic.version = 11 : i64} {
  func.func @gat_project_kernel(%arg0: i32, %arg1: memref<128x128xbf16, #tpu.memory_space<vmem>>, %arg2: memref<128x128xbf16, #tpu.memory_space<vmem>>, %arg3: memref<1x128xf32, #tpu.memory_space<vmem>>, %arg4: memref<1x128xf32, #tpu.memory_space<vmem>>, %arg5: memref<128x128xbf16, #tpu.memory_space<vmem>>, %arg6: memref<1x128xf32, #tpu.memory_space<vmem>>, %arg7: memref<128x1xf32, #tpu.memory_space<vmem>>) attributes {dimension_semantics = [#tpu.dimension_semantics<parallel>], iteration_bounds = array<i64: 1>, scalar_prefetch = 0 : i64, scratch_operands = 0 : i64, tpu.core_type = #tpu.core_type<tc>, window_params = [{transform_indices = @transform_0, window_bounds = array<i64: 128, 128>}, {pipeline_mode = #tpu.pipeline_mode<synchronous>, transform_indices = @transform_1, window_bounds = array<i64: 128, 128>}, {pipeline_mode = #tpu.pipeline_mode<synchronous>, transform_indices = @transform_2, window_bounds = array<i64: 1, 128>}, {pipeline_mode = #tpu.pipeline_mode<synchronous>, transform_indices = @transform_3, window_bounds = array<i64: 1, 128>}, {transform_indices = @transform_4, window_bounds = array<i64: 128, 128>}, {transform_indices = @transform_5, window_bounds = array<i64: 1, 128>}, {transform_indices = @transform_6, window_bounds = array<i64: 128, 1>}]} {
    %c0 = arith.constant 0 : index
    %c0_0 = arith.constant 0 : index
    %0 = vector.load %arg1[%c0, %c0_0] : memref<128x128xbf16, #tpu.memory_space<vmem>>, vector<128x128xbf16>
    %c0_1 = arith.constant 0 : index
    %c0_2 = arith.constant 0 : index
    %1 = vector.load %arg2[%c0_1, %c0_2] : memref<128x128xbf16, #tpu.memory_space<vmem>>, vector<128x128xbf16>
    %cst = arith.constant dense<0.000000e+00> : vector<128x128xf32>
    %2 = tpu.matmul %0, %1, %cst {dimension_numbers = #tpu.dot_dimension_numbers<[1], [0], [0], [1], [0, 0, 1, 1], [], []>} : vector<128x128xbf16>, vector<128x128xbf16>, vector<128x128xf32> -> vector<128x128xf32>
    %c0_3 = arith.constant 0 : index
    %c0_4 = arith.constant 0 : index
    %3 = vector.load %arg3[%c0_3, %c0_4] : memref<1x128xf32, #tpu.memory_space<vmem>>, vector<1x128xf32>
    %4 = vector.broadcast %3 : vector<1x128xf32> to vector<128x128xf32>
    %5 = arith.mulf %2, %4 : vector<128x128xf32>
    %cst_5 = arith.constant dense<0.000000e+00> : vector<128xf32>
    %6 = vector.multi_reduction <add>, %5, %cst_5 [1] : vector<128x128xf32> to vector<128xf32>
    %7 = vector.shape_cast %6 : vector<128xf32> to vector<128x1xf32>
    %8 = tpu.transpose %7, [1, 0] : vector<128x1xf32> -> vector<1x128xf32>
    %c0_6 = arith.constant 0 : index
    %c0_7 = arith.constant 0 : index
    %9 = vector.load %arg6[%c0_6, %c0_7] : memref<1x128xf32, #tpu.memory_space<vmem>>, vector<1x128xf32>
    tpu.vector_store %arg6[%c0_6, %c0_7], %8 {strides = array<i32>} : memref<1x128xf32, #tpu.memory_space<vmem>>, vector<1x128xf32>,
    %c0_8 = arith.constant 0 : index
    %c0_9 = arith.constant 0 : index
    %10 = vector.load %arg4[%c0_8, %c0_9] : memref<1x128xf32, #tpu.memory_space<vmem>>, vector<1x128xf32>
    %11 = vector.broadcast %10 : vector<1x128xf32> to vector<128x128xf32>
    %12 = arith.mulf %2, %11 : vector<128x128xf32>
    %cst_10 = arith.constant dense<0.000000e+00> : vector<128xf32>
    %13 = vector.multi_reduction <add>, %12, %cst_10 [1] : vector<128x128xf32> to vector<128xf32>
    %14 = vector.shape_cast %13 : vector<128xf32> to vector<128x1xf32>
    %c0_11 = arith.constant 0 : index
    %c0_12 = arith.constant 0 : index
    %15 = vector.load %arg7[%c0_11, %c0_12] : memref<128x1xf32, #tpu.memory_space<vmem>>, vector<128x1xf32>
    tpu.vector_store %arg7[%c0_11, %c0_12], %14 {strides = array<i32>} : memref<128x1xf32, #tpu.memory_space<vmem>>, vector<128x1xf32>,
    %16 = arith.truncf %2 : vector<128x128xf32> to vector<128x128xbf16>
    %c0_13 = arith.constant 0 : index
    %c0_14 = arith.constant 0 : index
    %17 = vector.load %arg5[%c0_13, %c0_14] : memref<128x128xbf16, #tpu.memory_space<vmem>>, vector<128x128xbf16>
    tpu.vector_store %arg5[%c0_13, %c0_14], %16 {strides = array<i32>} : memref<128x128xbf16, #tpu.memory_space<vmem>>, vector<128x128xbf16>,
    return
  }
  func.func @transform_0(%arg0: i32) -> (i32, i32) {
    %c0_i32 = arith.constant 0 : i32
    %c0_i32_0 = arith.constant 0 : i32
    return %arg0, %c0_i32 : i32, i32
  }
  func.func @transform_1(%arg0: i32) -> (i32, i32) {
    %c0_i32 = arith.constant 0 : i32
    %c0_i32_0 = arith.constant 0 : i32
    %c0_i32_1 = arith.constant 0 : i32
    return %c0_i32, %c0_i32_0 : i32, i32
  }
  func.func @transform_2(%arg0: i32) -> (i32, i32) {
    %c0_i32 = arith.constant 0 : i32
    %c0_i32_0 = arith.constant 0 : i32
    %c0_i32_1 = arith.constant 0 : i32
    return %c0_i32, %c0_i32_0 : i32, i32
  }
  func.func @transform_3(%arg0: i32) -> (i32, i32) {
    %c0_i32 = arith.constant 0 : i32
    %c0_i32_0 = arith.constant 0 : i32
    %c0_i32_1 = arith.constant 0 : i32
    return %c0_i32, %c0_i32_0 : i32, i32
  }
  func.func @transform_4(%arg0: i32) -> (i32, i32) {
    %c0_i32 = arith.constant 0 : i32
    %c0_i32_0 = arith.constant 0 : i32
    return %arg0, %c0_i32 : i32, i32
  }
  func.func @transform_5(%arg0: i32) -> (i32, i32) {
    %c0_i32 = arith.constant 0 : i32
    %c0_i32_0 = arith.constant 0 : i32
    return %c0_i32, %arg0 : i32, i32
  }
  func.func @transform_6(%arg0: i32) -> (i32, i32) {
    %c0_i32 = arith.constant 0 : i32
    %c0_i32_0 = arith.constant 0 : i32
    return %arg0, %c0_i32 : i32, i32
  }
}

module attributes {stable_mosaic.version = 11 : i64} {
  func.func @gat_attn_fused_kernel(%arg0: i32, %arg1: i32, %arg2: memref<1xi32, #tpu.memory_space<smem>>, %arg3: memref<1xi32, #tpu.memory_space<smem>>, %arg4: memref<128x1xf32, #tpu.memory_space<vmem>>, %arg5: memref<1x128xf32, #tpu.memory_space<vmem>>, %arg6: memref<128x128xbf16, #tpu.memory_space<vmem>>, %arg7: memref<128x128xi8, #tpu.memory_space<vmem>>, %arg8: memref<128x128xbf16, #tpu.memory_space<vmem>>, %arg9: memref<1x128xf32, #tpu.memory_space<vmem>>, %arg10: memref<1x128xf32, #tpu.memory_space<vmem>>, %arg11: memref<128x128xbf16, #tpu.memory_space<vmem>>, %arg12: memref<1x128xf32, #tpu.memory_space<vmem>>, %arg13: memref<128x1xf32, #tpu.memory_space<vmem>>, %arg14: memref<128x1xf32, #tpu.memory_space<vmem>>, %arg15: memref<128x1xf32, #tpu.memory_space<vmem>>, %arg16: memref<128x128xf32, #tpu.memory_space<vmem>>) attributes {dimension_semantics = [#tpu.dimension_semantics<parallel>, #tpu.dimension_semantics<arbitrary>], iteration_bounds = array<i64: 1, 1>, scalar_prefetch = 2 : i64, scratch_operands = 3 : i64, tpu.core_type = #tpu.core_type<tc>, window_params = [{transform_indices = @transform_0, window_bounds = array<i64: 128, 1>}, {transform_indices = @transform_1, window_bounds = array<i64: 1, 128>}, {transform_indices = @transform_2, window_bounds = array<i64: 128, 128>}, {transform_indices = @transform_3, window_bounds = array<i64: 128, 128>}, {pipeline_mode = #tpu.pipeline_mode<synchronous>, transform_indices = @transform_4, window_bounds = array<i64: 128, 128>}, {pipeline_mode = #tpu.pipeline_mode<synchronous>, transform_indices = @transform_5, window_bounds = array<i64: 1, 128>}, {pipeline_mode = #tpu.pipeline_mode<synchronous>, transform_indices = @transform_6, window_bounds = array<i64: 1, 128>}, {transform_indices = @transform_7, window_bounds = array<i64: 128, 128>}, {transform_indices = @transform_8, window_bounds = array<i64: 1, 128>}, {transform_indices = @transform_9, window_bounds = array<i64: 128, 1>}]} {
    %c0_i32 = arith.constant 0 : i32
    %0 = arith.cmpi eq, %arg1, %c0_i32 : i32
    %1 = arith.extui %0 : i1 to i32
    %c0_i32_0 = arith.constant 0 : i32
    %2 = arith.cmpi ne, %1, %c0_i32_0 : i32
    scf.if %2 {
      %cst = arith.constant 0xFF800000 : f32
      %11 = vector.broadcast %cst : f32 to vector<128x1xf32>
      %c0 = arith.constant 0 : index
      %c0_4 = arith.constant 0 : index
      %12 = vector.load %arg14[%c0, %c0_4] : memref<128x1xf32, #tpu.memory_space<vmem>>, vector<128x1xf32>
      tpu.vector_store %arg14[%c0, %c0_4], %11 {strides = array<i32>} : memref<128x1xf32, #tpu.memory_space<vmem>>, vector<128x1xf32>,
      %cst_5 = arith.constant 0.000000e+00 : f32
      %13 = vector.broadcast %cst_5 : f32 to vector<128x1xf32>
      %c0_6 = arith.constant 0 : index
      %c0_7 = arith.constant 0 : index
      %14 = vector.load %arg15[%c0_6, %c0_7] : memref<128x1xf32, #tpu.memory_space<vmem>>, vector<128x1xf32>
      tpu.vector_store %arg15[%c0_6, %c0_7], %13 {strides = array<i32>} : memref<128x1xf32, #tpu.memory_space<vmem>>, vector<128x1xf32>,
      %cst_8 = arith.constant 0.000000e+00 : f32
      %15 = vector.broadcast %cst_8 : f32 to vector<128x128xf32>
      %c0_9 = arith.constant 0 : index
      %c0_10 = arith.constant 0 : index
      %16 = vector.load %arg16[%c0_9, %c0_10] : memref<128x128xf32, #tpu.memory_space<vmem>>, vector<128x128xf32>
      tpu.vector_store %arg16[%c0_9, %c0_10], %15 {strides = array<i32>} : memref<128x128xf32, #tpu.memory_space<vmem>>, vector<128x128xf32>,
    } else {
    }
    %3 = arith.index_cast %arg0 : i32 to index
    %4 = memref.load %arg3[%3] : memref<1xi32, #tpu.memory_space<smem>>
    %5 = arith.cmpi slt, %arg1, %4 : i32
    %6 = arith.extui %5 : i1 to i32
    %c0_i32_1 = arith.constant 0 : i32
    %7 = arith.cmpi ne, %6, %c0_i32_1 : i32
    scf.if %7 {
      %c0 = arith.constant 0 : index
      %c0_4 = arith.constant 0 : index
      %11 = vector.load %arg4[%c0, %c0_4] : memref<128x1xf32, #tpu.memory_space<vmem>>, vector<128x1xf32>
      %c0_5 = arith.constant 0 : index
      %c0_6 = arith.constant 0 : index
      %12 = vector.load %arg5[%c0_5, %c0_6] : memref<1x128xf32, #tpu.memory_space<vmem>>, vector<1x128xf32>
      %c0_7 = arith.constant 0 : index
      %c0_8 = arith.constant 0 : index
      %13 = vector.load %arg6[%c0_7, %c0_8] : memref<128x128xbf16, #tpu.memory_space<vmem>>, vector<128x128xbf16>
      %c0_9 = arith.constant 0 : index
      %c0_10 = arith.constant 0 : index
      %14 = vector.load %arg7[%c0_9, %c0_10] : memref<128x128xi8, #tpu.memory_space<vmem>>, vector<128x128xi8>
      %c0_i8 = arith.constant 0 : i8
      %15 = vector.broadcast %c0_i8 : i8 to vector<128x128xi8>
      %16 = arith.cmpi ne, %14, %15 : vector<128x128xi8>
      %17 = vector.broadcast %11 : vector<128x1xf32> to vector<128x128xf32>
      %18 = vector.broadcast %12 : vector<1x128xf32> to vector<128x128xf32>
      %19 = arith.addf %17, %18 : vector<128x128xf32>
      %cst = arith.constant 0.000000e+00 : f32
      %20 = vector.broadcast %cst : f32 to vector<128x128xf32>
      %21 = arith.cmpf oge, %19, %20 : vector<128x128xf32>
      %cst_11 = arith.constant 2.000000e-01 : f32
      %22 = vector.broadcast %cst_11 : f32 to vector<128x128xf32>
      %23 = arith.mulf %22, %19 : vector<128x128xf32>
      %24 = arith.select %21, %19, %23 : vector<128x128xi1>, vector<128x128xf32>
      %cst_12 = arith.constant -1.000000e+30 : f32
      %25 = vector.broadcast %cst_12 : f32 to vector<128x128xf32>
      %26 = arith.select %16, %24, %25 : vector<128x128xi1>, vector<128x128xf32>
      %c0_13 = arith.constant 0 : index
      %c0_14 = arith.constant 0 : index
      %27 = vector.load %arg14[%c0_13, %c0_14] : memref<128x1xf32, #tpu.memory_space<vmem>>, vector<128x1xf32>
      %cst_15 = arith.constant dense<0xFF800000> : vector<128xf32>
      %28 = vector.multi_reduction <maximumf>, %26, %cst_15 [1] : vector<128x128xf32> to vector<128xf32>
      %29 = vector.shape_cast %28 : vector<128xf32> to vector<128x1xf32>
      %30 = arith.maximumf %27, %29 : vector<128x1xf32>
      %31 = vector.broadcast %30 : vector<128x1xf32> to vector<128x128xf32>
      %32 = arith.subf %26, %31 : vector<128x128xf32>
      %33 = math.exp %32 : vector<128x128xf32>
      %cst_16 = arith.constant 0.000000e+00 : f32
      %34 = vector.broadcast %cst_16 : f32 to vector<128x128xf32>
      %35 = arith.select %16, %33, %34 : vector<128x128xi1>, vector<128x128xf32>
      %36 = arith.subf %27, %30 : vector<128x1xf32>
      %37 = math.exp %36 : vector<128x1xf32>
      %c0_17 = arith.constant 0 : index
      %c0_18 = arith.constant 0 : index
      %38 = vector.load %arg15[%c0_17, %c0_18] : memref<128x1xf32, #tpu.memory_space<vmem>>, vector<128x1xf32>
      %39 = arith.mulf %37, %38 : vector<128x1xf32>
      %cst_19 = arith.constant dense<0.000000e+00> : vector<128xf32>
      %40 = vector.multi_reduction <add>, %35, %cst_19 [1] : vector<128x128xf32> to vector<128xf32>
      %41 = vector.shape_cast %40 : vector<128xf32> to vector<128x1xf32>
      %42 = arith.addf %39, %41 : vector<128x1xf32>
      %c0_20 = arith.constant 0 : index
      %c0_21 = arith.constant 0 : index
      %43 = vector.load %arg15[%c0_20, %c0_21] : memref<128x1xf32, #tpu.memory_space<vmem>>, vector<128x1xf32>
      tpu.vector_store %arg15[%c0_20, %c0_21], %42 {strides = array<i32>} : memref<128x1xf32, #tpu.memory_space<vmem>>, vector<128x1xf32>,
      %c0_22 = arith.constant 0 : index
      %c0_23 = arith.constant 0 : index
      %44 = vector.load %arg16[%c0_22, %c0_23] : memref<128x128xf32, #tpu.memory_space<vmem>>, vector<128x128xf32>
      %45 = vector.broadcast %37 : vector<128x1xf32> to vector<128x128xf32>
      %46 = arith.mulf %45, %44 : vector<128x128xf32>
      %47 = arith.truncf %35 : vector<128x128xf32> to vector<128x128xbf16>
      %cst_24 = arith.constant dense<0.000000e+00> : vector<128x128xf32>
      %48 = tpu.matmul %47, %13, %cst_24 {dimension_numbers = #tpu.dot_dimension_numbers<[1], [0], [0], [1], [0, 0, 1, 1], [], []>} : vector<128x128xbf16>, vector<128x128xbf16>, vector<128x128xf32> -> vector<128x128xf32>
      %49 = arith.addf %46, %48 : vector<128x128xf32>
      %c0_25 = arith.constant 0 : index
      %c0_26 = arith.constant 0 : index
      %50 = vector.load %arg16[%c0_25, %c0_26] : memref<128x128xf32, #tpu.memory_space<vmem>>, vector<128x128xf32>
      tpu.vector_store %arg16[%c0_25, %c0_26], %49 {strides = array<i32>} : memref<128x128xf32, #tpu.memory_space<vmem>>, vector<128x128xf32>,
      %c0_27 = arith.constant 0 : index
      %c0_28 = arith.constant 0 : index
      %51 = vector.load %arg14[%c0_27, %c0_28] : memref<128x1xf32, #tpu.memory_space<vmem>>, vector<128x1xf32>
      tpu.vector_store %arg14[%c0_27, %c0_28], %30 {strides = array<i32>} : memref<128x1xf32, #tpu.memory_space<vmem>>, vector<128x1xf32>,
    } else {
    }
    %c0_i32_2 = arith.constant 0 : i32
    %8 = arith.cmpi eq, %arg1, %c0_i32_2 : i32
    %9 = arith.extui %8 : i1 to i32
    %c0_i32_3 = arith.constant 0 : i32
    %10 = arith.cmpi ne, %9, %c0_i32_3 : i32
    scf.if %10 {
      %c0 = arith.constant 0 : index
      %c0_4 = arith.constant 0 : index
      %11 = vector.load %arg15[%c0, %c0_4] : memref<128x1xf32, #tpu.memory_space<vmem>>, vector<128x1xf32>
      %cst = arith.constant 9.99999968E-21 : f32
      %12 = vector.broadcast %cst : f32 to vector<128x1xf32>
      %13 = arith.maximumf %11, %12 : vector<128x1xf32>
      %14 = tpu.reciprocal %13 {approx = true} : vector<128x1xf32> -> vector<128x1xf32>
      %c0_5 = arith.constant 0 : index
      %c0_6 = arith.constant 0 : index
      %15 = vector.load %arg16[%c0_5, %c0_6] : memref<128x128xf32, #tpu.memory_space<vmem>>, vector<128x128xf32>
      %16 = vector.broadcast %14 : vector<128x1xf32> to vector<128x128xf32>
      %17 = arith.mulf %15, %16 : vector<128x128xf32>
      %cst_7 = arith.constant 0.000000e+00 : f32
      %18 = vector.broadcast %cst_7 : f32 to vector<128x128xf32>
      %19 = arith.cmpf ogt, %17, %18 : vector<128x128xf32>
      %cst_8 = arith.constant 0.000000e+00 : f32
      %20 = vector.broadcast %cst_8 : f32 to vector<128x128xf32>
      %21 = arith.minimumf %17, %20 : vector<128x128xf32>
      %22 = math.exp %21 : vector<128x128xf32>
      %cst_9 = arith.constant 1.000000e+00 : f32
      %23 = vector.broadcast %cst_9 : f32 to vector<128x128xf32>
      %24 = arith.subf %22, %23 : vector<128x128xf32>
      %25 = arith.select %19, %17, %24 : vector<128x128xi1>, vector<128x128xf32>
      %26 = arith.truncf %25 : vector<128x128xf32> to vector<128x128xbf16>
      %c0_10 = arith.constant 0 : index
      %c0_11 = arith.constant 0 : index
      %27 = vector.load %arg8[%c0_10, %c0_11] : memref<128x128xbf16, #tpu.memory_space<vmem>>, vector<128x128xbf16>
      %cst_12 = arith.constant dense<0.000000e+00> : vector<128x128xf32>
      %28 = tpu.matmul %26, %27, %cst_12 {dimension_numbers = #tpu.dot_dimension_numbers<[1], [0], [0], [1], [0, 0, 1, 1], [], []>} : vector<128x128xbf16>, vector<128x128xbf16>, vector<128x128xf32> -> vector<128x128xf32>
      %c0_13 = arith.constant 0 : index
      %c0_14 = arith.constant 0 : index
      %29 = vector.load %arg9[%c0_13, %c0_14] : memref<1x128xf32, #tpu.memory_space<vmem>>, vector<1x128xf32>
      %30 = vector.broadcast %29 : vector<1x128xf32> to vector<128x128xf32>
      %31 = arith.mulf %28, %30 : vector<128x128xf32>
      %cst_15 = arith.constant dense<0.000000e+00> : vector<128xf32>
      %32 = vector.multi_reduction <add>, %31, %cst_15 [1] : vector<128x128xf32> to vector<128xf32>
      %33 = vector.shape_cast %32 : vector<128xf32> to vector<128x1xf32>
      %34 = tpu.transpose %33, [1, 0] : vector<128x1xf32> -> vector<1x128xf32>
      %c0_16 = arith.constant 0 : index
      %c0_17 = arith.constant 0 : index
      %35 = vector.load %arg12[%c0_16, %c0_17] : memref<1x128xf32, #tpu.memory_space<vmem>>, vector<1x128xf32>
      tpu.vector_store %arg12[%c0_16, %c0_17], %34 {strides = array<i32>} : memref<1x128xf32, #tpu.memory_space<vmem>>, vector<1x128xf32>,
      %c0_18 = arith.constant 0 : index
      %c0_19 = arith.constant 0 : index
      %36 = vector.load %arg10[%c0_18, %c0_19] : memref<1x128xf32, #tpu.memory_space<vmem>>, vector<1x128xf32>
      %37 = vector.broadcast %36 : vector<1x128xf32> to vector<128x128xf32>
      %38 = arith.mulf %28, %37 : vector<128x128xf32>
      %cst_20 = arith.constant dense<0.000000e+00> : vector<128xf32>
      %39 = vector.multi_reduction <add>, %38, %cst_20 [1] : vector<128x128xf32> to vector<128xf32>
      %40 = vector.shape_cast %39 : vector<128xf32> to vector<128x1xf32>
      %c0_21 = arith.constant 0 : index
      %c0_22 = arith.constant 0 : index
      %41 = vector.load %arg13[%c0_21, %c0_22] : memref<128x1xf32, #tpu.memory_space<vmem>>, vector<128x1xf32>
      tpu.vector_store %arg13[%c0_21, %c0_22], %40 {strides = array<i32>} : memref<128x1xf32, #tpu.memory_space<vmem>>, vector<128x1xf32>,
      %42 = arith.truncf %28 : vector<128x128xf32> to vector<128x128xbf16>
      %c0_23 = arith.constant 0 : index
      %c0_24 = arith.constant 0 : index
      %43 = vector.load %arg11[%c0_23, %c0_24] : memref<128x128xbf16, #tpu.memory_space<vmem>>, vector<128x128xbf16>
      tpu.vector_store %arg11[%c0_23, %c0_24], %42 {strides = array<i32>} : memref<128x128xbf16, #tpu.memory_space<vmem>>, vector<128x128xbf16>,
    } else {
    }
    return
  }
  func.func @transform_0(%arg0: i32, %arg1: i32, %arg2: memref<1xi32, #tpu.memory_space<smem>>, %arg3: memref<1xi32, #tpu.memory_space<smem>>) -> (i32, i32) {
    %c0_i32 = arith.constant 0 : i32
    %c0_i32_0 = arith.constant 0 : i32
    return %arg0, %c0_i32 : i32, i32
  }
  func.func @transform_1(%arg0: i32, %arg1: i32, %arg2: memref<1xi32, #tpu.memory_space<smem>>, %arg3: memref<1xi32, #tpu.memory_space<smem>>) -> (i32, i32) {
    %c1_i32 = arith.constant 1 : i32
    %0 = arith.muli %arg0, %c1_i32 : i32
    %1 = arith.addi %0, %arg1 : i32
    %2 = arith.index_cast %1 : i32 to index
    %3 = memref.load %arg2[%2] : memref<1xi32, #tpu.memory_space<smem>>
    %c0_i32 = arith.constant 0 : i32
    %c0_i32_0 = arith.constant 0 : i32
    return %c0_i32, %3 : i32, i32
  }
  func.func @transform_2(%arg0: i32, %arg1: i32, %arg2: memref<1xi32, #tpu.memory_space<smem>>, %arg3: memref<1xi32, #tpu.memory_space<smem>>) -> (i32, i32) {
    %c1_i32 = arith.constant 1 : i32
    %0 = arith.muli %arg0, %c1_i32 : i32
    %1 = arith.addi %0, %arg1 : i32
    %2 = arith.index_cast %1 : i32 to index
    %3 = memref.load %arg2[%2] : memref<1xi32, #tpu.memory_space<smem>>
    %c0_i32 = arith.constant 0 : i32
    %c0_i32_0 = arith.constant 0 : i32
    return %3, %c0_i32 : i32, i32
  }
  func.func @transform_3(%arg0: i32, %arg1: i32, %arg2: memref<1xi32, #tpu.memory_space<smem>>, %arg3: memref<1xi32, #tpu.memory_space<smem>>) -> (i32, i32) {
    %c1_i32 = arith.constant 1 : i32
    %0 = arith.muli %arg0, %c1_i32 : i32
    %1 = arith.addi %0, %arg1 : i32
    %2 = arith.index_cast %1 : i32 to index
    %3 = memref.load %arg2[%2] : memref<1xi32, #tpu.memory_space<smem>>
    %c0_i32 = arith.constant 0 : i32
    return %arg0, %3 : i32, i32
  }
  func.func @transform_4(%arg0: i32, %arg1: i32, %arg2: memref<1xi32, #tpu.memory_space<smem>>, %arg3: memref<1xi32, #tpu.memory_space<smem>>) -> (i32, i32) {
    %c0_i32 = arith.constant 0 : i32
    %c0_i32_0 = arith.constant 0 : i32
    %c0_i32_1 = arith.constant 0 : i32
    return %c0_i32, %c0_i32_0 : i32, i32
  }
  func.func @transform_5(%arg0: i32, %arg1: i32, %arg2: memref<1xi32, #tpu.memory_space<smem>>, %arg3: memref<1xi32, #tpu.memory_space<smem>>) -> (i32, i32) {
    %c0_i32 = arith.constant 0 : i32
    %c0_i32_0 = arith.constant 0 : i32
    %c0_i32_1 = arith.constant 0 : i32
    return %c0_i32, %c0_i32_0 : i32, i32
  }
  func.func @transform_6(%arg0: i32, %arg1: i32, %arg2: memref<1xi32, #tpu.memory_space<smem>>, %arg3: memref<1xi32, #tpu.memory_space<smem>>) -> (i32, i32) {
    %c0_i32 = arith.constant 0 : i32
    %c0_i32_0 = arith.constant 0 : i32
    %c0_i32_1 = arith.constant 0 : i32
    return %c0_i32, %c0_i32_0 : i32, i32
  }
  func.func @transform_7(%arg0: i32, %arg1: i32, %arg2: memref<1xi32, #tpu.memory_space<smem>>, %arg3: memref<1xi32, #tpu.memory_space<smem>>) -> (i32, i32) {
    %c0_i32 = arith.constant 0 : i32
    %c0_i32_0 = arith.constant 0 : i32
    return %arg0, %c0_i32 : i32, i32
  }
  func.func @transform_8(%arg0: i32, %arg1: i32, %arg2: memref<1xi32, #tpu.memory_space<smem>>, %arg3: memref<1xi32, #tpu.memory_space<smem>>) -> (i32, i32) {
    %c0_i32 = arith.constant 0 : i32
    %c0_i32_0 = arith.constant 0 : i32
    return %c0_i32, %arg0 : i32, i32
  }
  func.func @transform_9(%arg0: i32, %arg1: i32, %arg2: memref<1xi32, #tpu.memory_space<smem>>, %arg3: memref<1xi32, #tpu.memory_space<smem>>) -> (i32, i32) {
    %c0_i32 = arith.constant 0 : i32
    %c0_i32_0 = arith.constant 0 : i32
    return %arg0, %c0_i32 : i32, i32
  }
}

module attributes {stable_mosaic.version = 11 : i64} {
  func.func @gat_attn_final_kernel(%arg0: i32, %arg1: i32, %arg2: memref<1xi32, #tpu.memory_space<smem>>, %arg3: memref<1xi32, #tpu.memory_space<smem>>, %arg4: memref<128x1xf32, #tpu.memory_space<vmem>>, %arg5: memref<1x128xf32, #tpu.memory_space<vmem>>, %arg6: memref<128x128xbf16, #tpu.memory_space<vmem>>, %arg7: memref<128x128xi8, #tpu.memory_space<vmem>>, %arg8: memref<128x128xbf16, #tpu.memory_space<vmem>>, %arg9: memref<128x1xf32, #tpu.memory_space<vmem>>, %arg10: memref<128x1xf32, #tpu.memory_space<vmem>>, %arg11: memref<128x128xf32, #tpu.memory_space<vmem>>) attributes {dimension_semantics = [#tpu.dimension_semantics<parallel>, #tpu.dimension_semantics<arbitrary>], iteration_bounds = array<i64: 1, 1>, scalar_prefetch = 2 : i64, scratch_operands = 3 : i64, tpu.core_type = #tpu.core_type<tc>, window_params = [{transform_indices = @transform_0, window_bounds = array<i64: 128, 1>}, {transform_indices = @transform_1, window_bounds = array<i64: 1, 128>}, {transform_indices = @transform_2, window_bounds = array<i64: 128, 128>}, {transform_indices = @transform_3, window_bounds = array<i64: 128, 128>}, {transform_indices = @transform_4, window_bounds = array<i64: 128, 128>}]} {
    %c0_i32 = arith.constant 0 : i32
    %0 = arith.cmpi eq, %arg1, %c0_i32 : i32
    %1 = arith.extui %0 : i1 to i32
    %c0_i32_0 = arith.constant 0 : i32
    %2 = arith.cmpi ne, %1, %c0_i32_0 : i32
    scf.if %2 {
      %cst = arith.constant 0xFF800000 : f32
      %11 = vector.broadcast %cst : f32 to vector<128x1xf32>
      %c0 = arith.constant 0 : index
      %c0_4 = arith.constant 0 : index
      %12 = vector.load %arg9[%c0, %c0_4] : memref<128x1xf32, #tpu.memory_space<vmem>>, vector<128x1xf32>
      tpu.vector_store %arg9[%c0, %c0_4], %11 {strides = array<i32>} : memref<128x1xf32, #tpu.memory_space<vmem>>, vector<128x1xf32>,
      %cst_5 = arith.constant 0.000000e+00 : f32
      %13 = vector.broadcast %cst_5 : f32 to vector<128x1xf32>
      %c0_6 = arith.constant 0 : index
      %c0_7 = arith.constant 0 : index
      %14 = vector.load %arg10[%c0_6, %c0_7] : memref<128x1xf32, #tpu.memory_space<vmem>>, vector<128x1xf32>
      tpu.vector_store %arg10[%c0_6, %c0_7], %13 {strides = array<i32>} : memref<128x1xf32, #tpu.memory_space<vmem>>, vector<128x1xf32>,
      %cst_8 = arith.constant 0.000000e+00 : f32
      %15 = vector.broadcast %cst_8 : f32 to vector<128x128xf32>
      %c0_9 = arith.constant 0 : index
      %c0_10 = arith.constant 0 : index
      %16 = vector.load %arg11[%c0_9, %c0_10] : memref<128x128xf32, #tpu.memory_space<vmem>>, vector<128x128xf32>
      tpu.vector_store %arg11[%c0_9, %c0_10], %15 {strides = array<i32>} : memref<128x128xf32, #tpu.memory_space<vmem>>, vector<128x128xf32>,
    } else {
    }
    %3 = arith.index_cast %arg0 : i32 to index
    %4 = memref.load %arg3[%3] : memref<1xi32, #tpu.memory_space<smem>>
    %5 = arith.cmpi slt, %arg1, %4 : i32
    %6 = arith.extui %5 : i1 to i32
    %c0_i32_1 = arith.constant 0 : i32
    %7 = arith.cmpi ne, %6, %c0_i32_1 : i32
    scf.if %7 {
      %c0 = arith.constant 0 : index
      %c0_4 = arith.constant 0 : index
      %11 = vector.load %arg4[%c0, %c0_4] : memref<128x1xf32, #tpu.memory_space<vmem>>, vector<128x1xf32>
      %c0_5 = arith.constant 0 : index
      %c0_6 = arith.constant 0 : index
      %12 = vector.load %arg5[%c0_5, %c0_6] : memref<1x128xf32, #tpu.memory_space<vmem>>, vector<1x128xf32>
      %c0_7 = arith.constant 0 : index
      %c0_8 = arith.constant 0 : index
      %13 = vector.load %arg6[%c0_7, %c0_8] : memref<128x128xbf16, #tpu.memory_space<vmem>>, vector<128x128xbf16>
      %c0_9 = arith.constant 0 : index
      %c0_10 = arith.constant 0 : index
      %14 = vector.load %arg7[%c0_9, %c0_10] : memref<128x128xi8, #tpu.memory_space<vmem>>, vector<128x128xi8>
      %c0_i8 = arith.constant 0 : i8
      %15 = vector.broadcast %c0_i8 : i8 to vector<128x128xi8>
      %16 = arith.cmpi ne, %14, %15 : vector<128x128xi8>
      %17 = vector.broadcast %11 : vector<128x1xf32> to vector<128x128xf32>
      %18 = vector.broadcast %12 : vector<1x128xf32> to vector<128x128xf32>
      %19 = arith.addf %17, %18 : vector<128x128xf32>
      %cst = arith.constant 0.000000e+00 : f32
      %20 = vector.broadcast %cst : f32 to vector<128x128xf32>
      %21 = arith.cmpf oge, %19, %20 : vector<128x128xf32>
      %cst_11 = arith.constant 2.000000e-01 : f32
      %22 = vector.broadcast %cst_11 : f32 to vector<128x128xf32>
      %23 = arith.mulf %22, %19 : vector<128x128xf32>
      %24 = arith.select %21, %19, %23 : vector<128x128xi1>, vector<128x128xf32>
      %cst_12 = arith.constant -1.000000e+30 : f32
      %25 = vector.broadcast %cst_12 : f32 to vector<128x128xf32>
      %26 = arith.select %16, %24, %25 : vector<128x128xi1>, vector<128x128xf32>
      %c0_13 = arith.constant 0 : index
      %c0_14 = arith.constant 0 : index
      %27 = vector.load %arg9[%c0_13, %c0_14] : memref<128x1xf32, #tpu.memory_space<vmem>>, vector<128x1xf32>
      %cst_15 = arith.constant dense<0xFF800000> : vector<128xf32>
      %28 = vector.multi_reduction <maximumf>, %26, %cst_15 [1] : vector<128x128xf32> to vector<128xf32>
      %29 = vector.shape_cast %28 : vector<128xf32> to vector<128x1xf32>
      %30 = arith.maximumf %27, %29 : vector<128x1xf32>
      %31 = vector.broadcast %30 : vector<128x1xf32> to vector<128x128xf32>
      %32 = arith.subf %26, %31 : vector<128x128xf32>
      %33 = math.exp %32 : vector<128x128xf32>
      %cst_16 = arith.constant 0.000000e+00 : f32
      %34 = vector.broadcast %cst_16 : f32 to vector<128x128xf32>
      %35 = arith.select %16, %33, %34 : vector<128x128xi1>, vector<128x128xf32>
      %36 = arith.subf %27, %30 : vector<128x1xf32>
      %37 = math.exp %36 : vector<128x1xf32>
      %c0_17 = arith.constant 0 : index
      %c0_18 = arith.constant 0 : index
      %38 = vector.load %arg10[%c0_17, %c0_18] : memref<128x1xf32, #tpu.memory_space<vmem>>, vector<128x1xf32>
      %39 = arith.mulf %37, %38 : vector<128x1xf32>
      %cst_19 = arith.constant dense<0.000000e+00> : vector<128xf32>
      %40 = vector.multi_reduction <add>, %35, %cst_19 [1] : vector<128x128xf32> to vector<128xf32>
      %41 = vector.shape_cast %40 : vector<128xf32> to vector<128x1xf32>
      %42 = arith.addf %39, %41 : vector<128x1xf32>
      %c0_20 = arith.constant 0 : index
      %c0_21 = arith.constant 0 : index
      %43 = vector.load %arg10[%c0_20, %c0_21] : memref<128x1xf32, #tpu.memory_space<vmem>>, vector<128x1xf32>
      tpu.vector_store %arg10[%c0_20, %c0_21], %42 {strides = array<i32>} : memref<128x1xf32, #tpu.memory_space<vmem>>, vector<128x1xf32>,
      %c0_22 = arith.constant 0 : index
      %c0_23 = arith.constant 0 : index
      %44 = vector.load %arg11[%c0_22, %c0_23] : memref<128x128xf32, #tpu.memory_space<vmem>>, vector<128x128xf32>
      %45 = vector.broadcast %37 : vector<128x1xf32> to vector<128x128xf32>
      %46 = arith.mulf %45, %44 : vector<128x128xf32>
      %47 = arith.truncf %35 : vector<128x128xf32> to vector<128x128xbf16>
      %cst_24 = arith.constant dense<0.000000e+00> : vector<128x128xf32>
      %48 = tpu.matmul %47, %13, %cst_24 {dimension_numbers = #tpu.dot_dimension_numbers<[1], [0], [0], [1], [0, 0, 1, 1], [], []>} : vector<128x128xbf16>, vector<128x128xbf16>, vector<128x128xf32> -> vector<128x128xf32>
      %49 = arith.addf %46, %48 : vector<128x128xf32>
      %c0_25 = arith.constant 0 : index
      %c0_26 = arith.constant 0 : index
      %50 = vector.load %arg11[%c0_25, %c0_26] : memref<128x128xf32, #tpu.memory_space<vmem>>, vector<128x128xf32>
      tpu.vector_store %arg11[%c0_25, %c0_26], %49 {strides = array<i32>} : memref<128x128xf32, #tpu.memory_space<vmem>>, vector<128x128xf32>,
      %c0_27 = arith.constant 0 : index
      %c0_28 = arith.constant 0 : index
      %51 = vector.load %arg9[%c0_27, %c0_28] : memref<128x1xf32, #tpu.memory_space<vmem>>, vector<128x1xf32>
      tpu.vector_store %arg9[%c0_27, %c0_28], %30 {strides = array<i32>} : memref<128x1xf32, #tpu.memory_space<vmem>>, vector<128x1xf32>,
    } else {
    }
    %c0_i32_2 = arith.constant 0 : i32
    %8 = arith.cmpi eq, %arg1, %c0_i32_2 : i32
    %9 = arith.extui %8 : i1 to i32
    %c0_i32_3 = arith.constant 0 : i32
    %10 = arith.cmpi ne, %9, %c0_i32_3 : i32
    scf.if %10 {
      %c0 = arith.constant 0 : index
      %c0_4 = arith.constant 0 : index
      %11 = vector.load %arg10[%c0, %c0_4] : memref<128x1xf32, #tpu.memory_space<vmem>>, vector<128x1xf32>
      %cst = arith.constant 9.99999968E-21 : f32
      %12 = vector.broadcast %cst : f32 to vector<128x1xf32>
      %13 = arith.maximumf %11, %12 : vector<128x1xf32>
      %14 = tpu.reciprocal %13 {approx = true} : vector<128x1xf32> -> vector<128x1xf32>
      %c0_5 = arith.constant 0 : index
      %c0_6 = arith.constant 0 : index
      %15 = vector.load %arg11[%c0_5, %c0_6] : memref<128x128xf32, #tpu.memory_space<vmem>>, vector<128x128xf32>
      %16 = vector.broadcast %14 : vector<128x1xf32> to vector<128x128xf32>
      %17 = arith.mulf %15, %16 : vector<128x128xf32>
      %18 = arith.truncf %17 : vector<128x128xf32> to vector<128x128xbf16>
      %c0_7 = arith.constant 0 : index
      %c0_8 = arith.constant 0 : index
      %19 = vector.load %arg8[%c0_7, %c0_8] : memref<128x128xbf16, #tpu.memory_space<vmem>>, vector<128x128xbf16>
      tpu.vector_store %arg8[%c0_7, %c0_8], %18 {strides = array<i32>} : memref<128x128xbf16, #tpu.memory_space<vmem>>, vector<128x128xbf16>,
    } else {
    }
    return
  }
  func.func @transform_0(%arg0: i32, %arg1: i32, %arg2: memref<1xi32, #tpu.memory_space<smem>>, %arg3: memref<1xi32, #tpu.memory_space<smem>>) -> (i32, i32) {
    %c0_i32 = arith.constant 0 : i32
    %c0_i32_0 = arith.constant 0 : i32
    return %arg0, %c0_i32 : i32, i32
  }
  func.func @transform_1(%arg0: i32, %arg1: i32, %arg2: memref<1xi32, #tpu.memory_space<smem>>, %arg3: memref<1xi32, #tpu.memory_space<smem>>) -> (i32, i32) {
    %c1_i32 = arith.constant 1 : i32
    %0 = arith.muli %arg0, %c1_i32 : i32
    %1 = arith.addi %0, %arg1 : i32
    %2 = arith.index_cast %1 : i32 to index
    %3 = memref.load %arg2[%2] : memref<1xi32, #tpu.memory_space<smem>>
    %c0_i32 = arith.constant 0 : i32
    %c0_i32_0 = arith.constant 0 : i32
    return %c0_i32, %3 : i32, i32
  }
  func.func @transform_2(%arg0: i32, %arg1: i32, %arg2: memref<1xi32, #tpu.memory_space<smem>>, %arg3: memref<1xi32, #tpu.memory_space<smem>>) -> (i32, i32) {
    %c1_i32 = arith.constant 1 : i32
    %0 = arith.muli %arg0, %c1_i32 : i32
    %1 = arith.addi %0, %arg1 : i32
    %2 = arith.index_cast %1 : i32 to index
    %3 = memref.load %arg2[%2] : memref<1xi32, #tpu.memory_space<smem>>
    %c0_i32 = arith.constant 0 : i32
    %c0_i32_0 = arith.constant 0 : i32
    return %3, %c0_i32 : i32, i32
  }
  func.func @transform_3(%arg0: i32, %arg1: i32, %arg2: memref<1xi32, #tpu.memory_space<smem>>, %arg3: memref<1xi32, #tpu.memory_space<smem>>) -> (i32, i32) {
    %c1_i32 = arith.constant 1 : i32
    %0 = arith.muli %arg0, %c1_i32 : i32
    %1 = arith.addi %0, %arg1 : i32
    %2 = arith.index_cast %1 : i32 to index
    %3 = memref.load %arg2[%2] : memref<1xi32, #tpu.memory_space<smem>>
    %c0_i32 = arith.constant 0 : i32
    return %arg0, %3 : i32, i32
  }
  func.func @transform_4(%arg0: i32, %arg1: i32, %arg2: memref<1xi32, #tpu.memory_space<smem>>, %arg3: memref<1xi32, #tpu.memory_space<smem>>) -> (i32, i32) {
    %c0_i32 = arith.constant 0 : i32
    %c0_i32_0 = arith.constant 0 : i32
    return %arg0, %c0_i32 : i32, i32
  }
}

module attributes {stable_mosaic.version = 11 : i64} {
  func.func @mlp_edge_kernel(%arg0: i32, %arg1: memref<128x128xbf16, #tpu.memory_space<vmem>>, %arg2: memref<128x128xbf16, #tpu.memory_space<vmem>>, %arg3: memref<128x256xbf16, #tpu.memory_space<vmem>>, %arg4: memref<128x256xbf16, #tpu.memory_space<vmem>>, %arg5: memref<1x256xf32, #tpu.memory_space<vmem>>, %arg6: memref<256x128xbf16, #tpu.memory_space<vmem>>, %arg7: memref<1x128xf32, #tpu.memory_space<vmem>>, %arg8: memref<128x128xbf16, #tpu.memory_space<vmem>>, %arg9: memref<1x128xf32, #tpu.memory_space<vmem>>, %arg10: memref<128x128xf32, #tpu.memory_space<vmem>>) attributes {dimension_semantics = [#tpu.dimension_semantics<parallel>], iteration_bounds = array<i64: 1>, scalar_prefetch = 0 : i64, scratch_operands = 0 : i64, tpu.core_type = #tpu.core_type<tc>, window_params = [{transform_indices = @transform_0, window_bounds = array<i64: 128, 128>}, {transform_indices = @transform_1, window_bounds = array<i64: 128, 128>}, {pipeline_mode = #tpu.pipeline_mode<synchronous>, transform_indices = @transform_2, window_bounds = array<i64: 128, 256>}, {pipeline_mode = #tpu.pipeline_mode<synchronous>, transform_indices = @transform_3, window_bounds = array<i64: 128, 256>}, {pipeline_mode = #tpu.pipeline_mode<synchronous>, transform_indices = @transform_4, window_bounds = array<i64: 1, 256>}, {pipeline_mode = #tpu.pipeline_mode<synchronous>, transform_indices = @transform_5, window_bounds = array<i64: 256, 128>}, {pipeline_mode = #tpu.pipeline_mode<synchronous>, transform_indices = @transform_6, window_bounds = array<i64: 1, 128>}, {pipeline_mode = #tpu.pipeline_mode<synchronous>, transform_indices = @transform_7, window_bounds = array<i64: 128, 128>}, {pipeline_mode = #tpu.pipeline_mode<synchronous>, transform_indices = @transform_8, window_bounds = array<i64: 1, 128>}, {transform_indices = @transform_9, window_bounds = array<i64: 128, 128>}]} {
    %c0 = arith.constant 0 : index
    %c0_0 = arith.constant 0 : index
    %0 = vector.load %arg1[%c0, %c0_0] : memref<128x128xbf16, #tpu.memory_space<vmem>>, vector<128x128xbf16>
    %c0_1 = arith.constant 0 : index
    %c0_2 = arith.constant 0 : index
    %1 = vector.load %arg3[%c0_1, %c0_2] : memref<128x256xbf16, #tpu.memory_space<vmem>>, vector<128x256xbf16>
    %cst = arith.constant dense<0.000000e+00> : vector<128x256xf32>
    %2 = tpu.matmul %0, %1, %cst {dimension_numbers = #tpu.dot_dimension_numbers<[1], [0], [0], [1], [0, 0, 1, 1], [], []>} : vector<128x128xbf16>, vector<128x256xbf16>, vector<128x256xf32> -> vector<128x256xf32>
    %c0_3 = arith.constant 0 : index
    %c0_4 = arith.constant 0 : index
    %3 = vector.load %arg2[%c0_3, %c0_4] : memref<128x128xbf16, #tpu.memory_space<vmem>>, vector<128x128xbf16>
    %c0_5 = arith.constant 0 : index
    %c0_6 = arith.constant 0 : index
    %4 = vector.load %arg4[%c0_5, %c0_6] : memref<128x256xbf16, #tpu.memory_space<vmem>>, vector<128x256xbf16>
    %cst_7 = arith.constant dense<0.000000e+00> : vector<128x256xf32>
    %5 = tpu.matmul %3, %4, %cst_7 {dimension_numbers = #tpu.dot_dimension_numbers<[1], [0], [0], [1], [0, 0, 1, 1], [], []>} : vector<128x128xbf16>, vector<128x256xbf16>, vector<128x256xf32> -> vector<128x256xf32>
    %6 = arith.addf %2, %5 : vector<128x256xf32>
    %c0_8 = arith.constant 0 : index
    %c0_9 = arith.constant 0 : index
    %7 = vector.load %arg5[%c0_8, %c0_9] : memref<1x256xf32, #tpu.memory_space<vmem>>, vector<1x256xf32>
    %8 = vector.broadcast %7 : vector<1x256xf32> to vector<128x256xf32>
    %9 = arith.addf %6, %8 : vector<128x256xf32>
    %cst_10 = arith.constant 0.000000e+00 : f32
    %10 = vector.broadcast %cst_10 : f32 to vector<128x256xf32>
    %11 = arith.cmpf oge, %9, %10 : vector<128x256xf32>
    %cst_11 = arith.constant 0.00999999977 : f32
    %12 = vector.broadcast %cst_11 : f32 to vector<128x256xf32>
    %13 = arith.mulf %12, %9 : vector<128x256xf32>
    %14 = arith.select %11, %9, %13 : vector<128x256xi1>, vector<128x256xf32>
    %15 = arith.truncf %14 : vector<128x256xf32> to vector<128x256xbf16>
    %c0_12 = arith.constant 0 : index
    %c0_13 = arith.constant 0 : index
    %16 = vector.load %arg6[%c0_12, %c0_13] : memref<256x128xbf16, #tpu.memory_space<vmem>>, vector<256x128xbf16>
    %cst_14 = arith.constant dense<0.000000e+00> : vector<128x128xf32>
    %17 = tpu.matmul %15, %16, %cst_14 {dimension_numbers = #tpu.dot_dimension_numbers<[1], [0], [0], [1], [0, 0, 1, 1], [], []>} : vector<128x256xbf16>, vector<256x128xbf16>, vector<128x128xf32> -> vector<128x128xf32>
    %c0_15 = arith.constant 0 : index
    %c0_16 = arith.constant 0 : index
    %18 = vector.load %arg7[%c0_15, %c0_16] : memref<1x128xf32, #tpu.memory_space<vmem>>, vector<1x128xf32>
    %19 = vector.broadcast %18 : vector<1x128xf32> to vector<128x128xf32>
    %20 = arith.addf %17, %19 : vector<128x128xf32>
    %cst_17 = arith.constant 0.000000e+00 : f32
    %21 = vector.broadcast %cst_17 : f32 to vector<128x128xf32>
    %22 = arith.cmpf oge, %20, %21 : vector<128x128xf32>
    %cst_18 = arith.constant 0.00999999977 : f32
    %23 = vector.broadcast %cst_18 : f32 to vector<128x128xf32>
    %24 = arith.mulf %23, %20 : vector<128x128xf32>
    %25 = arith.select %22, %20, %24 : vector<128x128xi1>, vector<128x128xf32>
    %26 = arith.truncf %25 : vector<128x128xf32> to vector<128x128xbf16>
    %c0_19 = arith.constant 0 : index
    %c0_20 = arith.constant 0 : index
    %27 = vector.load %arg8[%c0_19, %c0_20] : memref<128x128xbf16, #tpu.memory_space<vmem>>, vector<128x128xbf16>
    %cst_21 = arith.constant dense<0.000000e+00> : vector<128x128xf32>
    %28 = tpu.matmul %26, %27, %cst_21 {dimension_numbers = #tpu.dot_dimension_numbers<[1], [0], [0], [1], [0, 0, 1, 1], [], []>} : vector<128x128xbf16>, vector<128x128xbf16>, vector<128x128xf32> -> vector<128x128xf32>
    %c0_22 = arith.constant 0 : index
    %c0_23 = arith.constant 0 : index
    %29 = vector.load %arg9[%c0_22, %c0_23] : memref<1x128xf32, #tpu.memory_space<vmem>>, vector<1x128xf32>
    %30 = vector.broadcast %29 : vector<1x128xf32> to vector<128x128xf32>
    %31 = arith.addf %28, %30 : vector<128x128xf32>
    %c0_24 = arith.constant 0 : index
    %c0_25 = arith.constant 0 : index
    %32 = vector.load %arg10[%c0_24, %c0_25] : memref<128x128xf32, #tpu.memory_space<vmem>>, vector<128x128xf32>
    tpu.vector_store %arg10[%c0_24, %c0_25], %31 {strides = array<i32>} : memref<128x128xf32, #tpu.memory_space<vmem>>, vector<128x128xf32>,
    return
  }
  func.func @transform_0(%arg0: i32) -> (i32, i32) {
    %c0_i32 = arith.constant 0 : i32
    %c0_i32_0 = arith.constant 0 : i32
    return %arg0, %c0_i32 : i32, i32
  }
  func.func @transform_1(%arg0: i32) -> (i32, i32) {
    %c0_i32 = arith.constant 0 : i32
    %c0_i32_0 = arith.constant 0 : i32
    return %arg0, %c0_i32 : i32, i32
  }
  func.func @transform_2(%arg0: i32) -> (i32, i32) {
    %c0_i32 = arith.constant 0 : i32
    %c0_i32_0 = arith.constant 0 : i32
    %c0_i32_1 = arith.constant 0 : i32
    return %c0_i32, %c0_i32_0 : i32, i32
  }
  func.func @transform_3(%arg0: i32) -> (i32, i32) {
    %c0_i32 = arith.constant 0 : i32
    %c0_i32_0 = arith.constant 0 : i32
    %c0_i32_1 = arith.constant 0 : i32
    return %c0_i32, %c0_i32_0 : i32, i32
  }
  func.func @transform_4(%arg0: i32) -> (i32, i32) {
    %c0_i32 = arith.constant 0 : i32
    %c0_i32_0 = arith.constant 0 : i32
    %c0_i32_1 = arith.constant 0 : i32
    return %c0_i32, %c0_i32_0 : i32, i32
  }
  func.func @transform_5(%arg0: i32) -> (i32, i32) {
    %c0_i32 = arith.constant 0 : i32
    %c0_i32_0 = arith.constant 0 : i32
    %c0_i32_1 = arith.constant 0 : i32
    return %c0_i32, %c0_i32_0 : i32, i32
  }
  func.func @transform_6(%arg0: i32) -> (i32, i32) {
    %c0_i32 = arith.constant 0 : i32
    %c0_i32_0 = arith.constant 0 : i32
    %c0_i32_1 = arith.constant 0 : i32
    return %c0_i32, %c0_i32_0 : i32, i32
  }
  func.func @transform_7(%arg0: i32) -> (i32, i32) {
    %c0_i32 = arith.constant 0 : i32
    %c0_i32_0 = arith.constant 0 : i32
    %c0_i32_1 = arith.constant 0 : i32
    return %c0_i32, %c0_i32_0 : i32, i32
  }
  func.func @transform_8(%arg0: i32) -> (i32, i32) {
    %c0_i32 = arith.constant 0 : i32
    %c0_i32_0 = arith.constant 0 : i32
    %c0_i32_1 = arith.constant 0 : i32
    return %c0_i32, %c0_i32_0 : i32, i32
  }
  func.func @transform_9(%arg0: i32) -> (i32, i32) {
    %c0_i32 = arith.constant 0 : i32
    %c0_i32_0 = arith.constant 0 : i32
    return %arg0, %c0_i32 : i32, i32
  }
}

</mosaic_0001>

<bundles_post_ra>
// kernel: gat_model_forward.4
= control target key start
LH: loop header
LB: loop body
LE: loop exit
PB: predicated region body
PF: predicated region fallthrough
CT: control target
= control target key end

     0   :  { %vm389_vm0 = vcmask 7168   ;;  %s912_s1 = inlined_call_operand.vmem [shape: bf16[128,128], index: 1, kind: input, shape index: {}]   ;;  %s913_s0 = inlined_call_operand.vmem [shape: bf16[128,128], index: 0, kind: input, shape index: {}]   ;;  %s914_s2 = inlined_call_operand.vmem [shape: f32[1,128], index: 2, kind: input, shape index: {}]   ;;  %s915_s3 = inlined_call_operand.vmem [shape: f32[1,128], index: 3, kind: input, shape index: {}]   ;;  %s916_s4 = inlined_call_operand.vmem [shape: bf16[128,128], index: 4, kind: output, shape index: {0}]   ;;  %s917_s6 = inlined_call_operand.vmem [shape: f32[128,1], index: 6, kind: output, shape index: {2}]   ;;  %s918_s5 = inlined_call_operand.vmem [shape: f32[1,128], index: 5, kind: output, shape index: {1}]  }
   0x1   :  { %v659_v0 = vld [vmem:[%s912_s1 + $0x38] sm:$0xff]   ;;  %v660_v1 = vld [vmem:[%s912_s1 + $0x30] sm:$0xff]   ;;  %v661_v2 = vld [vmem:[%s912_s1 + $0x28] sm:$0xff]  }
   0x2   :  { %611 = vmatprep.subr.bf16.mxu0 %v659_v0  ;;  %643 = vmatprep.subr.bf16.mxu1 %v659_v0  ;;  %v662_v3 = vld [vmem:[%s912_s1 + $0x20] sm:$0xff]   ;;  %v663_v6 = vld [vmem:[%s912_s1 + $0x18] sm:$0xff]   ;;  %v664_v7 = vld [vmem:[%s912_s1 + $0x10] sm:$0xff]  }
   0x3   :  { %612 = vmatpush3.bf16.msra.mxu0 %v659_v0  ;;  %651 = vmatpush3.bf16.msra.mxu1 %v659_v0  ;;  %v667_v4 = vld [vmem:[%s913_s0] sm:$0xff]   ;;  %v665_v8 = vld [vmem:[%s912_s1 + $0x8] sm:$0xff]   ;;  %v671_v12 = vld [vmem:[%s913_s0 + $0x10] sm:$0xff]  }
   0x4   :  { %613 = vmatprep.subr.bf16.mxu0 %v660_v1  ;;  %644 = vmatprep.subr.bf16.mxu1 %v660_v1  ;;  %v668_v5 = vld [vmem:[%s913_s0 + $0x20] sm:$0xff]   ;;  %v669_v10 = vld [vmem:[%s913_s0 + $0x8] sm:$0xff]   ;;  %v673_v13 = vld [vmem:[%s913_s0 + $0x30] sm:$0xff]  }
   0x5   :  { %627 = vmatprep.mubr.bf16.mxu0 %v667_v4  ;;  %635 = vmatprep.mubr.bf16.mxu1 %v668_v5  ;;  %v666_v9 = vld [vmem:[%s912_s1] sm:$0xff]   ;;  %v670_v11 = vld [vmem:[%s913_s0 + $0x28] sm:$0xff]   ;;  %v672_v14 = vld [vmem:[%s913_s0 + $0x18] sm:$0xff]  }
   0x6   :  { %v674_v15 = vld [vmem:[%s913_s0 + $0x38] sm:$0xff]   ;;  %v761_v16 = vld [vmem:[%s914_s2] ss:$0 sm:$0xff] }
   0x7   :  { %614 = vmatpush3.bf16.msra.mxu0 %v660_v1  ;;  %652 = vmatpush3.bf16.msra.mxu1 %v660_v1  ;;  %v766_v19 = vld [vmem:[%s915_s3] ss:$0 sm:$0xff] }
   0x8   :  { %615 = vmatprep.subr.bf16.mxu0 %v661_v2  ;;  %645 = vmatprep.subr.bf16.mxu1 %v661_v2 }
   0xb   :  { %616 = vmatpush3.bf16.msra.mxu0 %v661_v2  ;;  %653 = vmatpush3.bf16.msra.mxu1 %v661_v2 }
   0xc   :  { %617 = vmatprep.subr.bf16.mxu0 %v662_v3  ;;  %646 = vmatprep.subr.bf16.mxu1 %v662_v3 }
   0xf   :  { %618 = vmatpush3.bf16.msra.mxu0 %v662_v3  ;;  %654 = vmatpush3.bf16.msra.mxu1 %v662_v3 }
  0x10   :  { %619 = vmatprep.subr.bf16.mxu0 %v663_v6  ;;  %647 = vmatprep.subr.bf16.mxu1 %v663_v6 }
  0x13   :  { %620 = vmatpush3.bf16.msra.mxu0 %v663_v6  ;;  %655 = vmatpush3.bf16.msra.mxu1 %v663_v6 }
  0x14   :  { %621 = vmatprep.subr.bf16.mxu0 %v664_v7  ;;  %648 = vmatprep.subr.bf16.mxu1 %v664_v7 }
  0x17   :  { %622 = vmatpush3.bf16.msra.mxu0 %v664_v7  ;;  %656 = vmatpush3.bf16.msra.mxu1 %v664_v7 }
  0x18   :  { %623 = vmatprep.subr.bf16.mxu0 %v665_v8  ;;  %649 = vmatprep.subr.bf16.mxu1 %v665_v8 }
  0x1b   :  { %624 = vmatpush3.bf16.msra.mxu0 %v665_v8  ;;  %657 = vmatpush3.bf16.msra.mxu1 %v665_v8 }
  0x1c   :  { %625 = vmatprep.subr.bf16.mxu0 %v666_v9  ;;  %650 = vmatprep.subr.bf16.mxu1 %v666_v9 }
  0x1f   :  { %626 = vmatpush3.bf16.msra.mxu0 %v666_v9  ;;  %658 = vmatpush3.bf16.msra.mxu1 %v666_v9 }
  0x22   :  { %628 = vmatmul.mubr.bf16.vlgmr.msra.gmra.mxu0 %v669_v10  ;;  %636 = vmatmul.mubr.bf16.vlgmr.msra.gmra.mxu1 %v670_v11 }
  0x23   :  { %631 = vmatprep.mubr.bf16.mxu0 %v671_v12  ;;  %639 = vmatprep.mubr.bf16.mxu1 %v673_v13 }
  0x2a   :  { %632 = vmatmul.mubr.bf16.gmra.mxu0 %v672_v14  ;;  %640 = vmatmul.mubr.bf16.gmra.mxu1 %v674_v15 }
  0xe2   :  { %v629_v17 = vpop.f32.mrf.mxu0  ;;  %v637_v18 = vpop.f32.mrf.mxu1 }
  0xe3   :  { %v263_v20 = vmul.f32 %v637_v18, %v761_v16  ;;  %v255_v21 = vmul.f32 %v629_v17, %v761_v16  ;;  %v771_v22 = vmul.f32 %v637_v18, %v766_v19  ;;  %v343_v29 = vmul.f32 %v629_v17, %v766_v19 }
  0xe4   :  { %v183_v23 = vpop.f32.mrf.mxu0  ;;  %v773_v24 = vpop.f32.mrf.mxu1 }
  0xe5   :  { %289 = vadd.xlane.f32.xlu0 %v263_v20  ;;  %273 = vadd.xlane.f32.xlu1 %v255_v21  ;;  %v253_v30 = vmul.f32 %v761_v16, %v183_v23  ;;  %v261_v36 = vmul.f32 %v761_v16, %v773_v24  ;;  %v341_v39 = vmul.f32 %v766_v19, %v183_v23 }
  0xe6   :  { %v775_v25 = vpop.f32.mrf.mxu0  ;;  %v638_v26 = vpop.f32.mrf.mxu1  ;;  %v349_v8 = vmul.f32 %v766_v19, %v773_v24 }
  0xe7   :  { %v556_v27 = vpack.c.bf16 %v775_v25, %v629_v17  ;;  %v576_v28 = vpack.c.bf16 %v638_v26, %v637_v18  ;;  %v783_v33 = vmul.f32 %v638_v26, %v766_v19  ;;  %v256_v46 = vmul.f32 %v775_v25, %v761_v16 }
  0xe8   :  { %v186_v31 = vpop.f32.mrf.mxu0  ;;  %v780_v32 = vpop.f32.mrf.mxu1  ;;  %v264_v58 = vmul.f32 %v638_v26, %v761_v16  ;;  %v344_v3 = vmul.f32 %v775_v25, %v766_v19 }
  0xe9   :  { %588 = vst [vmem:[%s916_s4 + $0x8] sm:$0xff] %v556_v27   ;;  %v551_v34 = vpack.c.bf16 %v186_v31, %v183_v23  ;;  %592 = vst [vmem:[%s916_s4 + $0x28] sm:$0xff] %v576_v28   ;;  %361 = vadd.xlane.f32.xlu1 %v343_v29  ;;  %269 = vadd.xlane.f32.xlu0 %v253_v30  ;;  %v571_v35 = vpack.c.bf16 %v780_v32, %v773_v24 }
  0xea   :  { %v633_v37 = vpop.f32.mrf.mxu0  ;;  %v641_v38 = vpop.f32.mrf.mxu1  ;;  %v254_v47 = vmul.f32 %v761_v16, %v186_v31  ;;  %v262_v60 = vmul.f32 %v761_v16, %v780_v32  ;;  %v342_v62 = vmul.f32 %v766_v19, %v186_v31  ;;  %v350_v9 = vmul.f32 %v766_v19, %v780_v32 }
  0xeb   :  { %552 = vst [vmem:[%s916_s4] sm:$0xff] %v551_v34   ;;  %591 = vst [vmem:[%s916_s4 + $0x20] sm:$0xff] %v571_v35   ;;  %v355_v40 = vmul.f32 %v641_v38, %v766_v19  ;;  %v259_v53 = vmul.f32 %v633_v37, %v761_v16  ;;  %v267_v59 = vmul.f32 %v641_v38, %v761_v16 }
  0xec   :  { %v199_v41 = vpop.f32.mrf.mxu0  ;;  %v231_v42 = vpop.f32.mrf.mxu1  ;;  %v347_v5 = vmul.f32 %v633_v37, %v766_v19 }
  0xed   :  { %357 = vadd.xlane.f32.xlu1 %v341_v39  ;;  %285 = vadd.xlane.f32.xlu0 %v261_v36  ;;  %v353_v45 = vmul.f32 %v766_v19, %v231_v42  ;;  %v257_v61 = vmul.f32 %v761_v16, %v199_v41  ;;  %v265_v63 = vmul.f32 %v761_v16, %v231_v42 }
  0xee   :  { %v634_v43 = vpop.f32.mrf.mxu0  ;;  %v642_v44 = vpop.f32.mrf.mxu1  ;;  %v345_v4 = vmul.f32 %v766_v19, %v199_v41 }
  0xef   :  { %v566_v48 = vpack.c.bf16 %v634_v43, %v633_v37  ;;  %v586_v49 = vpack.c.bf16 %v642_v44, %v641_v38  ;;  %v356_v52 = vmul.f32 %v642_v44, %v766_v19  ;;  %v260_v0 = vmul.f32 %v634_v43, %v761_v16 }
  0xf0   :  { %v202_v50 = vpop.f32.mrf.mxu0  ;;  %v234_v51 = vpop.f32.mrf.mxu1  ;;  %v268_v1 = vmul.f32 %v642_v44, %v761_v16  ;;  %v348_v7 = vmul.f32 %v634_v43, %v766_v19 }
  0xf1   :  { %275 = vadd.xlane.f32.xlu1 %v256_v46  ;;  %271 = vadd.xlane.f32.xlu0 %v254_v47  ;;  %590 = vst [vmem:[%s916_s4 + $0x18] sm:$0xff] %v566_v48   ;;  %v561_v54 = vpack.c.bf16 %v202_v50, %v199_v41  ;;  %594 = vst [vmem:[%s916_s4 + $0x38] sm:$0xff] %v586_v49   ;;  %v581_v55 = vpack.c.bf16 %v234_v51, %v231_v42 }
  0xf2   :  { %v346_v56 = vmul.f32 %v766_v19, %v202_v50  ;;  %v354_v57 = vmul.f32 %v766_v19, %v234_v51  ;;  %v258_v2 = vmul.f32 %v761_v16, %v202_v50  ;;  %v266_v6 = vmul.f32 %v761_v16, %v234_v51 }
  0xf3   :  { %589 = vst [vmem:[%s916_s4 + $0x10] sm:$0xff] %v561_v54   ;;  %593 = vst [vmem:[%s916_s4 + $0x30] sm:$0xff] %v581_v55  }
  0xf5   :  { %291 = vadd.xlane.f32.xlu1 %v264_v58  ;;  %281 = vadd.xlane.f32.xlu0 %v259_v53 }
  0xf9   :  { %287 = vadd.xlane.f32.xlu1 %v262_v60  ;;  %297 = vadd.xlane.f32.xlu0 %v267_v59 }
  0xfd   :  { %359 = vadd.xlane.f32.xlu1 %v342_v62  ;;  %277 = vadd.xlane.f32.xlu0 %v257_v61 }
 0x101   :  { %293 = vadd.xlane.f32.xlu0 %v265_v63  ;;  %283 = vadd.xlane.f32.xlu1 %v260_v0 }
 0x105   :  { %299 = vadd.xlane.f32.xlu1 %v268_v1 }
 0x109   :  { %279 = vadd.xlane.f32.xlu1 %v258_v2 }
 0x10d   :  { %363 = vadd.xlane.f32.xlu1 %v344_v3 }
 0x111   :  { %365 = vadd.xlane.f32.xlu1 %v345_v4 }
 0x115   :  { %369 = vadd.xlane.f32.xlu1 %v347_v5 }
 0x119   :  { %295 = vadd.xlane.f32.xlu1 %v266_v6 }
 0x11d   :  { %371 = vadd.xlane.f32.xlu1 %v348_v7 }
 0x121   :  { %373 = vadd.xlane.f32.xlu1 %v349_v8 }
 0x125   :  { %375 = vadd.xlane.f32.xlu1 %v350_v9 }
 0x129   :  { %377 = vadd.xlane.f32.xlu1 %v771_v22 }
 0x12d   :  { %379 = vadd.xlane.f32.xlu1 %v783_v33 }
 0x131   :  { %381 = vadd.xlane.f32.xlu1 %v353_v45 }
 0x135   :  { %385 = vadd.xlane.f32.xlu1 %v355_v40 }
 0x139   :  { %367 = vadd.xlane.f32.xlu1 %v346_v56 }
 0x13d   :  { %383 = vadd.xlane.f32.xlu1 %v354_v57 }
 0x141   :  { %387 = vadd.xlane.f32.xlu1 %v356_v52 }
 0x16e   :  { %v290_v10 = vpop.xlane.xlu0 %289  ;;  %v274_v11 = vpop.xlane.xlu1 %273 }
 0x172   :  { %v362_v12 = vpop.xlane.xlu1 %361  ;;  %v270_v13 = vpop.xlane.xlu0 %269 }
 0x173   :  { %392 = vst.msk [vmem:[%s917_s6 + $0x10] sm:$0xff] %vm389_vm0, %v362_v12  ;;  %301 = vxpose.xlu0.b32.start [1/16] (narrow) %v270_v13, 8 }
 0x176   :  { %v358_v14 = vpop.xlane.xlu1 %357  ;;  %v286_v15 = vpop.xlane.xlu0 %285 }
 0x177   :  { %390 = vst.msk [vmem:[%s917_s6] sm:$0xff] %vm389_vm0, %v358_v14 }
 0x17a   :  { %v276_v16 = vpop.xlane.xlu1 %275  ;;  %v272_v17 = vpop.xlane.xlu0 %271 }
 0x17b   :  { %302 = vxpose.xlu0.b32.cont [2/16] (narrow) %v272_v17, 8 }
 0x17e   :  { %v292_v18 = vpop.xlane.xlu1 %291  ;;  %v282_v19 = vpop.xlane.xlu0 %281 }
 0x17f   :  { %303 = vxpose.xlu0.b32.cont [3/16] (narrow) %v274_v11, 8 }
 0x182   :  { %v288_v20 = vpop.xlane.xlu1 %287  ;;  %v298_v21 = vpop.xlane.xlu0 %297 }
 0x183   :  { %304 = vxpose.xlu0.b32.cont [4/16] (narrow) %v276_v16, 8 }
 0x186   :  { %v360_v22 = vpop.xlane.xlu1 %359  ;;  %v278_v23 = vpop.xlane.xlu0 %277 }
 0x187   :  { %391 = vst.msk [vmem:[%s917_s6 + $0x8] sm:$0xff] %vm389_vm0, %v360_v22  ;;  %305 = vxpose.xlu0.b32.cont [5/16] (narrow) %v278_v23, 8 }
 0x18a   :  { %v284_v24 = vpop.xlane.xlu1 %283  ;;  %v294_v33 = vpop.xlane.xlu0 %293 }
 0x18e   :  { %v300_v25 = vpop.xlane.xlu1 %299 }
 0x192   :  { %v280_v26 = vpop.xlane.xlu1 %279 }
 0x193   :  { %306 = vxpose.xlu0.b32.cont [6/16] (narrow) %v280_v26, 8 }
 0x196   :  { %v364_v27 = vpop.xlane.xlu1 %363 }
 0x197   :  { %393 = vst.msk [vmem:[%s917_s6 + $0x18] sm:$0xff] %vm389_vm0, %v364_v27  ;;  %307 = vxpose.xlu0.b32.cont [7/16] (narrow) %v282_v19, 8 }
 0x19a   :  { %v366_v28 = vpop.xlane.xlu1 %365 }
 0x19b   :  { %394 = vst.msk [vmem:[%s917_s6 + $0x20] sm:$0xff] %vm389_vm0, %v366_v28  ;;  %308 = vxpose.xlu0.b32.cont [8/16] (narrow) %v284_v24, 8 }
 0x19e   :  { %v370_v29 = vpop.xlane.xlu1 %369 }
 0x19f   :  { %396 = vst.msk [vmem:[%s917_s6 + $0x30] sm:$0xff] %vm389_vm0, %v370_v29  ;;  %309 = vxpose.xlu0.b32.cont [9/16] (narrow) %v286_v15, 8 }
 0x1a2   :  { %v296_v30 = vpop.xlane.xlu1 %295 }
 0x1a3   :  { %310 = vxpose.xlu0.b32.cont [10/16] (narrow) %v288_v20, 8 }
 0x1a6   :  { %v372_v31 = vpop.xlane.xlu1 %371 }
 0x1a7   :  { %397 = vst.msk [vmem:[%s917_s6 + $0x38] sm:$0xff] %vm389_vm0, %v372_v31  ;;  %311 = vxpose.xlu0.b32.cont [11/16] (narrow) %v290_v10, 8 }
 0x1aa   :  { %v374_v32 = vpop.xlane.xlu1 %373 }
 0x1ab   :  { %398 = vst.msk [vmem:[%s917_s6 + $0x40] sm:$0xff] %vm389_vm0, %v374_v32  ;;  %312 = vxpose.xlu0.b32.cont [12/16] (narrow) %v292_v18, 8 }
 0x1ae   :  { %v376_v34 = vpop.xlane.xlu1 %375 }
 0x1af   :  { %399 = vst.msk [vmem:[%s917_s6 + $0x48] sm:$0xff] %vm389_vm0, %v376_v34  ;;  %313 = vxpose.xlu0.b32.cont [13/16] (narrow) %v294_v33, 8 }
 0x1b2   :  { %v378_v35 = vpop.xlane.xlu1 %377 }
 0x1b3   :  { %400 = vst.msk [vmem:[%s917_s6 + $0x50] sm:$0xff] %vm389_vm0, %v378_v35  ;;  %314 = vxpose.xlu0.b32.cont [14/16] (narrow) %v296_v30, 8 }
 0x1b6   :  { %v380_v36 = vpop.xlane.xlu1 %379 }
 0x1b7   :  { %401 = vst.msk [vmem:[%s917_s6 + $0x58] sm:$0xff] %vm389_vm0, %v380_v36  ;;  %315 = vxpose.xlu0.b32.cont [15/16] (narrow) %v298_v21, 8 }
 0x1ba   :  { %v382_v37 = vpop.xlane.xlu1 %381 }
 0x1bb   :  { %402 = vst.msk [vmem:[%s917_s6 + $0x60] sm:$0xff] %vm389_vm0, %v382_v37  ;;  %316 = vxpose.xlu0.b32.end [16/16] (narrow) %v300_v25, 8 }
 0x1be   :  { %v386_v38 = vpop.xlane.xlu1 %385 }
 0x1bf   :  { %404 = vst.msk [vmem:[%s917_s6 + $0x70] sm:$0xff] %vm389_vm0, %v386_v38 }
 0x1c2   :  { %v368_v39 = vpop.xlane.xlu1 %367 }
 0x1c3   :  { %395 = vst.msk [vmem:[%s917_s6 + $0x28] sm:$0xff] %vm389_vm0, %v368_v39 }
 0x1c6   :  { %v384_v40 = vpop.xlane.xlu1 %383 }
 0x1c7   :  { %403 = vst.msk [vmem:[%s917_s6 + $0x68] sm:$0xff] %vm389_vm0, %v384_v40 }
 0x1ca   :  { %v388_v41 = vpop.xlane.xlu1 %387 }
 0x1cb   :  { %405 = vst.msk [vmem:[%s917_s6 + $0x78] sm:$0xff] %vm389_vm0, %v388_v41 }
 0x1fb   :  { %v317_v42 = vpop.trf.xlu0 }
 0x1fc   :  { %333 = vst [vmem:[%s918_s5] sm:$0x1] %v317_v42 }

// kernel: gat_model_forward.5
= control target key start
LH: loop header
LB: loop body
LE: loop exit
PB: predicated region body
PF: predicated region fallthrough
CT: control target
= control target key end

     0   :  { %vm3311_vm0 = vcmask 7168   ;;  %v2269_v0 = vmov -inf   ;;  %v2270_v1 = vmov 0.0   ;;  %s3299_s0 = inlined_call_operand.<no memory space> [shape: s32[1], index: 0, kind: input, shape index: {}]   ;;  %s3300_s1 = inlined_call_operand.<no memory space> [shape: s32[1], index: 1, kind: input, shape index: {}]   ;;  %s3301_s2 = inlined_call_operand.vmem [shape: f32[128,1], index: 2, kind: input, shape index: {}]   ;;  %s3302_s6 = inlined_call_operand.vmem [shape: bf16[128,128], index: 6, kind: input, shape index: {}]   ;;  %s3303_s7 = inlined_call_operand.vmem [shape: f32[1,128], index: 7, kind: input, shape index: {}]   ;;  %s3304_s8 = inlined_call_operand.vmem [shape: f32[1,128], index: 8, kind: input, shape index: {}]   ;;  %s3305_s9 = inlined_call_operand.vmem [shape: bf16[128,128], index: 9, kind: output, shape index: {0}]   ;;  %s3306_s10 = inlined_call_operand.vmem [shape: f32[1,128], index: 10, kind: output, shape index: {1}]   ;;  %s3307_s11 = inlined_call_operand.vmem [shape: f32[128,1], index: 11, kind: output, shape index: {2}]   ;;  %s3308_s3 = inlined_call_operand.vmem [shape: f32[1,128], index: 3, kind: input, shape index: {}]   ;;  %s3309_s5 = inlined_call_operand.vmem [shape: s8[128,128], index: 5, kind: input, shape index: {}]   ;;  %s3310_s4 = inlined_call_operand.vmem [shape: bf16[128,128], index: 4, kind: input, shape index: {}]  }
   0x1   :  { %p78_p0 = scmp.lt.s32.totalorder %s3299_s0, 0  ;;  %s1846_s21 = sshll.u32 %s3299_s0, 4  ;;  %109 = vst.msk [vmem:[#allocation2] sm:$0xff] %vm3311_vm0, %v2269_v0  ;;  %110 = vst.msk [vmem:[#allocation2 + $0x8] sm:$0xff] %vm3311_vm0, %v2269_v0 }
   0x2   :  { %111 = vst.msk [vmem:[#allocation2 + $0x10] sm:$0xff] %vm3311_vm0, %v2269_v0  ;;  %112 = vst.msk [vmem:[#allocation2 + $0x18] sm:$0xff] %vm3311_vm0, %v2269_v0  ;;  %p86_p1 = scmp.lt.s32.totalorder %s1846_s21, 15  ;;  %p1850_p2 = scmp.le.s32.totalorder %s3300_s1, 0 }
   0x3   :  { %113 = vst.msk [vmem:[#allocation2 + $0x20] sm:$0xff] %vm3311_vm0, %v2269_v0  ;;  %114 = vst.msk [vmem:[#allocation2 + $0x28] sm:$0xff] %vm3311_vm0, %v2269_v0  ;;  %s2382_s28 = scalar_select %p78_p0, %s3299_s0, 0 }
   0x4   :  { %115 = vst.msk [vmem:[#allocation2 + $0x30] sm:$0xff] %vm3311_vm0, %v2269_v0  ;;  %116 = vst.msk [vmem:[#allocation2 + $0x38] sm:$0xff] %vm3311_vm0, %v2269_v0  ;;  %s3417_s21 = smov (!%p86_p1, %s1846_s21), 15 }
   0x5   :  { %117 = vst.msk [vmem:[#allocation2 + $0x40] sm:$0xff] %vm3311_vm0, %v2269_v0  ;;  %118 = vst.msk [vmem:[#allocation2 + $0x48] sm:$0xff] %vm3311_vm0, %v2269_v0  ;;  %s80_s14 = scalar_lea.vmem %s3308_s3, %s2382_s28  ;;  %s1848_s15 = sshll.u32 %s2382_s28, 3 }
   0x6   :  { %119 = vst.msk [vmem:[#allocation2 + $0x50] sm:$0xff] %vm3311_vm0, %v2269_v0  ;;  %120 = vst.msk [vmem:[#allocation2 + $0x58] sm:$0xff] %vm3311_vm0, %v2269_v0  ;;  %s1847_s16 = sshll.u32 %s3417_s21, 2  ;;  %s2396_s19 = scalar_lea.vmem %s3309_s5, %s1848_s15 }
   0x7   :  { %121 = vst.msk [vmem:[#allocation2 + $0x60] sm:$0xff] %vm3311_vm0, %v2269_v0  ;;  %122 = vst.msk [vmem:[#allocation2 + $0x68] sm:$0xff] %vm3311_vm0, %v2269_v0  ;;  %s2401_s23 = scalar_lea.vmem %s3310_s4, %s1847_s16 }
   0x8   :  { %123 = vst.msk [vmem:[#allocation2 + $0x70] sm:$0xff] %vm3311_vm0, %v2269_v0  ;;  %124 = vst.msk [vmem:[#allocation2 + $0x78] sm:$0xff] %vm3311_vm0, %v2269_v0 }
   0x9   :  { %125 = vst.msk [vmem:[#allocation3] sm:$0xff] %vm3311_vm0, %v2270_v1  ;;  %126 = vst.msk [vmem:[#allocation3 + $0x8] sm:$0xff] %vm3311_vm0, %v2270_v1 }
   0xa   :  { %127 = vst.msk [vmem:[#allocation3 + $0x10] sm:$0xff] %vm3311_vm0, %v2270_v1  ;;  %128 = vst.msk [vmem:[#allocation3 + $0x18] sm:$0xff] %vm3311_vm0, %v2270_v1 }
   0xb   :  { %129 = vst.msk [vmem:[#allocation3 + $0x20] sm:$0xff] %vm3311_vm0, %v2270_v1  ;;  %130 = vst.msk [vmem:[#allocation3 + $0x28] sm:$0xff] %vm3311_vm0, %v2270_v1 }
   0xc   :  { %131 = vst.msk [vmem:[#allocation3 + $0x30] sm:$0xff] %vm3311_vm0, %v2270_v1  ;;  %132 = vst.msk [vmem:[#allocation3 + $0x38] sm:$0xff] %vm3311_vm0, %v2270_v1 }
   0xd   :  { %133 = vst.msk [vmem:[#allocation3 + $0x40] sm:$0xff] %vm3311_vm0, %v2270_v1  ;;  %134 = vst.msk [vmem:[#allocation3 + $0x48] sm:$0xff] %vm3311_vm0, %v2270_v1 }
   0xe   :  { %135 = vst.msk [vmem:[#allocation3 + $0x50] sm:$0xff] %vm3311_vm0, %v2270_v1  ;;  %136 = vst.msk [vmem:[#allocation3 + $0x58] sm:$0xff] %vm3311_vm0, %v2270_v1 }
   0xf   :  { %137 = vst.msk [vmem:[#allocation3 + $0x60] sm:$0xff] %vm3311_vm0, %v2270_v1  ;;  %138 = vst.msk [vmem:[#allocation3 + $0x68] sm:$0xff] %vm3311_vm0, %v2270_v1 }
  0x10   :  { %139 = vst.msk [vmem:[#allocation3 + $0x70] sm:$0xff] %vm3311_vm0, %v2270_v1  ;;  %140 = vst.msk [vmem:[#allocation3 + $0x78] sm:$0xff] %vm3311_vm0, %v2270_v1 }
  0x11   :  { %141 = vst [vmem:[#allocation4 + $0x30] sm:$0xff] %v2270_v1  ;;  %142 = vst [vmem:[#allocation4] sm:$0xff] %v2270_v1 }
  0x12   :  { %143 = vst [vmem:[#allocation4 + $0x58] sm:$0xff] %v2270_v1  ;;  %144 = vst [vmem:[#allocation4 + $0x18] sm:$0xff] %v2270_v1 }
  0x13   :  { %145 = vst [vmem:[#allocation4 + $0x50] sm:$0xff] %v2270_v1  ;;  %146 = vst [vmem:[#allocation4 + $0x68] sm:$0xff] %v2270_v1 }
  0x14   :  { %147 = vst [vmem:[#allocation4 + $0x8] sm:$0xff] %v2270_v1  ;;  %148 = vst [vmem:[#allocation4 + $0x48] sm:$0xff] %v2270_v1  ;;  %161 = sbr.rel (%p1850_p2) target bundleno = 675 (0x2a3), region = 37 }
  0x15   :  { %149 = vst [vmem:[#allocation4 + $0x40] sm:$0xff] %v2270_v1  ;;  %150 = vst [vmem:[#allocation4 + $0x20] sm:$0xff] %v2270_v1 }
  0x16   :  { %151 = vst [vmem:[#allocation4 + $0x10] sm:$0xff] %v2270_v1  ;;  %152 = vst [vmem:[#allocation4 + $0x38] sm:$0xff] %v2270_v1 }
  0x17   :  { %153 = vst [vmem:[#allocation4 + $0x60] sm:$0xff] %v2270_v1  ;;  %154 = vst [vmem:[#allocation4 + $0x70] sm:$0xff] %v2270_v1 }
  0x18   :  { %155 = vst [vmem:[#allocation4 + $0x78] sm:$0xff] %v2270_v1  ;;  %156 = vst [vmem:[#allocation4 + $0x28] sm:$0xff] %v2270_v1 }
  0x19   :  { %v170_v2 = vld [vmem:[%s3301_s2 + $0x40] sm:$0xff]  ;;  %v2271_v4 = vmov 0   ;;  %v171_v5 = vld [vmem:[%s3301_s2 + $0x48] sm:$0xff]  ;;  %v165_v7 = vld [vmem:[%s3301_s2 + $0x18] sm:$0xff] }
  0x1a   :  { %v162_v3 = vld [vmem:[%s3301_s2] sm:$0xff]  ;;  %2122 = vset.pattern.permute.xlu1 %v2271_v4  ;;  %2121 = vset.pattern.permute.xlu0 %v2271_v4  ;;  %v163_v6 = vld [vmem:[%s3301_s2 + $0x8] sm:$0xff]  ;;  %v164_v8 = vld [vmem:[%s3301_s2 + $0x10] sm:$0xff] }
  0x1b   :  { %245 = vperm.xlu1 %2122, %v170_v2   ;;  %205 = vperm.xlu0 %2121, %v162_v3   ;;  %v173_v9 = vld [vmem:[%s3301_s2 + $0x58] sm:$0xff]  ;;  %v172_v10 = vld [vmem:[%s3301_s2 + $0x50] sm:$0xff]  ;;  %v167_v11 = vld [vmem:[%s3301_s2 + $0x28] sm:$0xff] }
  0x1c   :  { %v166_v12 = vld [vmem:[%s3301_s2 + $0x20] sm:$0xff]  ;;  %v175_v13 = vld [vmem:[%s3301_s2 + $0x68] sm:$0xff]  ;;  %v169_v15 = vld [vmem:[%s3301_s2 + $0x38] sm:$0xff] }
  0x1d   :  { %v174_v14 = vld [vmem:[%s3301_s2 + $0x60] sm:$0xff]  ;;  %v168_v16 = vld [vmem:[%s3301_s2 + $0x30] sm:$0xff]  ;;  %v177_v17 = vld [vmem:[%s3301_s2 + $0x78] sm:$0xff] }
  0x1e   :  { %v176_v18 = vld [vmem:[%s3301_s2 + $0x70] sm:$0xff]  ;;  %v195_v19 = vld [vmem:[%s2396_s19] sm:$0xff]  ;;  %v196_v28 = vld [vmem:[%s2396_s19 + $0x8] sm:$0xff] }
  0x1f   :  { %250 = vperm.xlu1 %2122, %v171_v5   ;;  %210 = vperm.xlu0 %2121, %v163_v6   ;;  %v197_v20 = vld [vmem:[%s2396_s19 + $0x10] sm:$0xff]  ;;  %vm199_vm1 = vnez %v195_v19  ;;  %vm200_vm3 = vnez %v196_v28  ;;  %v198_v47 = vld [vmem:[%s2396_s19 + $0x18] sm:$0xff]  ;;  %v2478_v3 = vld [vmem:[%s80_s14] ss:$0 sm:$0xff] }
  0x20   :  { %vm201_vm2 = vnez %v197_v20  ;;  %v353_v21 = vsel %vm199_vm1, 16843009, %v2271_v4  ;;  %v354_v42 = vsel %vm200_vm3, 16843009, %v2271_v4  ;;  %vm202_vm8 = vnez %v198_v47 }
  0x21   :  { %v355_v22 = vsel %vm201_vm2, 16843009, %v2271_v4  ;;  %v357_v23 = vunpack.c.0.s8 %v353_v21  ;;  %v358_v24 = vunpack.c.1.s8 %v353_v21  ;;  %v359_v30 = vunpack.c.2.s8 %v353_v21 }
  0x22   :  { %v365_v25 = vunpack.c.0.s8 %v355_v22  ;;  %v366_v27 = vunpack.c.1.s8 %v355_v22  ;;  %v360_v32 = vunpack.c.3.s8 %v353_v21  ;;  %v367_v33 = vunpack.c.2.s8 %v355_v22 }
  0x23   :  { %220 = vperm.xlu1 %2122, %v165_v7   ;;  %215 = vperm.xlu0 %2121, %v164_v8   ;;  %v373_v26 = vpack.c.b16 %v357_v23, %v357_v23  ;;  %v375_v29 = vpack.c.b16 %v358_v24, %v358_v24  ;;  %v368_v36 = vunpack.c.3.s8 %v355_v22  ;;  %v377_v38 = vpack.c.b16 %v359_v30, %v359_v30 }
  0x24   :  { %v389_v31 = vpack.c.b16 %v365_v25, %v365_v25  ;;  %v391_v35 = vpack.c.b16 %v366_v27, %v366_v27  ;;  %v379_v40 = vpack.c.b16 %v360_v32, %v360_v32  ;;  %v393_v41 = vpack.c.b16 %v367_v33, %v367_v33 }
  0x25   :  { %v374_v34 = vpack.c.b8 %v373_v26, %v373_v26  ;;  %v376_v37 = vpack.c.b8 %v375_v29, %v375_v29  ;;  %v395_v44 = vpack.c.b16 %v368_v36, %v368_v36  ;;  %v378_v45 = vpack.c.b8 %v377_v38, %v377_v38 }
  0x26   :  { %v390_v39 = vpack.c.b8 %v389_v31, %v389_v31  ;;  %v392_v43 = vpack.c.b8 %v391_v35, %v391_v35  ;;  %v361_v46 = vunpack.c.0.s8 %v354_v42  ;;  %v380_v48 = vpack.c.b8 %v379_v40, %v379_v40 }
  0x27   :  { %260 = vperm.xlu1 %2122, %v173_v9   ;;  %255 = vperm.xlu0 %2121, %v172_v10   ;;  %vm405_vm4 = vnez %v374_v34  ;;  %vm406_vm5 = vnez %v376_v37  ;;  %v394_v49 = vpack.c.b8 %v393_v41, %v393_v41  ;;  %v396_v52 = vpack.c.b8 %v395_v44, %v395_v44 }
  0x28   :  { %vm413_vm6 = vnez %v390_v39  ;;  %v421_v50 = vsel %vm405_vm4, 16843009, %v2271_v4  ;;  %v422_v51 = vsel %vm406_vm5, 16843009, %v2271_v4  ;;  %vm414_vm7 = vnez %v392_v43 }
  0x29   :  { %v429_v53 = vsel %vm413_vm6, 16843009, %v2271_v4  ;;  %vm407_vm9 = vnez %v378_v45  ;;  %v381_v54 = vpack.c.b16 %v361_v46, %v361_v46  ;;  %v362_v55 = vunpack.c.1.s8 %v354_v42 }
  0x2a   :  { %v437_v56 = vunpack.c.0.s8 %v421_v50  ;;  %vm408_vm10 = vnez %v380_v48  ;;  %vm415_vm11 = vnez %v394_v49  ;;  %v438_v57 = vunpack.c.0.s8 %v422_v51 }
  0x2b   :  { %230 = vperm.xlu1 %2122, %v167_v11   ;;  %225 = vperm.xlu0 %2121, %v166_v12   ;;  %v430_v58 = vsel %vm414_vm7, 16843009, %v2271_v4  ;;  %v2468_v59 = vsel %vm202_vm8, 16843009, %v2271_v4  ;;  %v445_v60 = vunpack.c.0.s8 %v429_v53  ;;  %v423_v61 = vsel %vm407_vm9, 16843009, %v2271_v4 }
  0x2c   :  { %vm416_vm12 = vnez %v396_v52  ;;  %v363_v62 = vunpack.c.2.s8 %v354_v42  ;;  %v424_v63 = vsel %vm408_vm10, 16843009, %v2271_v4  ;;  %v431_v0 = vsel %vm415_vm11, 16843009, %v2271_v4 }
  0x2d   :  { %v382_v1 = vpack.c.b8 %v381_v54, %v381_v54  ;;  %v383_v2 = vpack.c.b16 %v362_v55, %v362_v55  ;;  %vm2480_vm13 = vcmp.ne.s32.totalorder %v437_v56, 0  ;;  %v446_v6 = vunpack.c.0.s8 %v430_v58 }
  0x2e   :  { %v369_v7 = vunpack.c.0.s8 %v2468_v59  ;;  %v364_v8 = vunpack.c.3.s8 %v354_v42  ;;  %vm2485_vm14 = vcmp.ne.s32.totalorder %v438_v57, 0  ;;  %v439_v10 = vunpack.c.0.s8 %v423_v61 }
  0x2f   :  { %270 = vperm.xlu1 %2122, %v175_v13   ;;  %265 = vperm.xlu0 %2121, %v174_v14   ;;  %v2490_v11 = vsel %vm416_vm12, 16843009, %v2271_v4  ;;  %v370_v12 = vunpack.c.1.s8 %v2468_v59  ;;  %vm2493_vm15 = vcmp.ne.s32.totalorder %v445_v60, 0  ;;  %vm409_vm1 = vnez %v382_v1 }
  0x30   :  { %v384_v21 = vpack.c.b8 %v383_v2, %v383_v2  ;;  %v448_v22 = vunpack.c.0.s8 %v2490_v11  ;;  %v397_v23 = vpack.c.b16 %v369_v7, %v369_v7  ;;  %v387_v24 = vpack.c.b16 %v364_v8, %v364_v8 }
  0x31   :  { %v371_v25 = vunpack.c.2.s8 %v2468_v59  ;;  %vm2501_vm3 = vcmp.ne.s32.totalorder %v446_v6, 0  ;;  %vm2505_vm4 = vcmp.ne.s32.totalorder %v439_v10, 0  ;;  %v399_v30 = vpack.c.b16 %v370_v12, %v370_v12 }
  0x32   :  { %v425_v33 = vsel %vm409_vm1, 16843009, %v2271_v4  ;;  %v372_v35 = vunpack.c.3.s8 %v2468_v59  ;;  %vm2513_vm6 = vnez %v384_v21  ;;  %v398_v41 = vpack.c.b8 %v397_v23, %v397_v23 }
  0x33   :  { %240 = vperm.xlu1 %2122, %v169_v15   ;;  %235 = vperm.xlu0 %2121, %v168_v16   ;;  %v440_v16 = vunpack.c.0.s8 %v424_v63  ;;  %v388_v42 = vpack.c.b8 %v387_v24, %v387_v24  ;;  %v401_v43 = vpack.c.b16 %v371_v25, %v371_v25  ;;  %v441_v51 = vunpack.c.0.s8 %v425_v33 }
  0x34   :  { %v426_v52 = vsel %vm2513_vm6, 16843009, %v2271_v4  ;;  %v400_v53 = vpack.c.b8 %v399_v30, %v399_v30  ;;  %vm2547_vm12 = vnez %v398_v41  ;;  %v3345_v25 = vmov 0 }
  0x35   :  { %vm2522_vm8 = vcmp.ne.s32.totalorder %v440_v16, 0  ;;  %vm2551_vm1 = vnez %v388_v42  ;;  %v442_v7 = vunpack.c.0.s8 %v426_v52  ;;  %v3351_v52 = vmov 0 }
  0x37   :  { %280 = vperm.xlu1 %2122, %v177_v17   ;;  %275 = vperm.xlu0 %2121, %v176_v18   ;;  %v447_v17 = vunpack.c.0.s8 %v431_v0  ;;  %v385_v18 = vpack.c.b16 %v363_v62, %v363_v62 }
  0x39   :  { %v386_v34 = vpack.c.b8 %v385_v18, %v385_v18  ;;  %vm2526_vm9 = vcmp.ne.s32.totalorder %v447_v17, 0  ;;  %v402_v18 = vpack.c.b8 %v401_v43, %v401_v43 }
  0x3b   :  { %vm2535_vm11 = vnez %v386_v34 }
  0x3c   :  { %v427_v10 = vsel %vm2535_vm11, 16843009, %v2271_v4 }
  0x96   :  { %v246_v13 = vpop.permute.xlu1 %245  ;;  %v206_v14 = vpop.permute.xlu0 %205 }
  0x97   :  { %v297_v19 = vadd.f32 %v2478_v3, %v246_v13  ;;  %v289_v20 = vadd.f32 %v2478_v3, %v206_v14  ;;  %v433_v14 = vsel %vm2547_vm12, 16843009, %v2271_v4  ;;  %vm2585_vm12 = vcmp.ne.s32.totalorder %v441_v51, 0 }
  0x98   :  { %v3346_v25 = vsel %vm2585_vm12, 4294967295, %v3345_v25  ;;  %v449_v33 = vunpack.c.0.s8 %v433_v14 }
  0x99   :  { %v329_v26 = vmul.f32 0.2, %v297_v19  ;;  %v321_v27 = vmul.f32 0.2, %v289_v20  ;;  %vm305_vm2 = vcmp.ge.f32.partialorder %v289_v20, 0.0  ;;  %vm313_vm5 = vcmp.ge.f32.partialorder %v297_v19, 0.0 }
  0x9a   :  { %v251_v31 = vpop.permute.xlu1 %250  ;;  %v211_v32 = vpop.permute.xlu0 %210  ;;  %vm2618_vm0 = vcmp.ne.s32.totalorder %v449_v33, 0 }
  0x9b   :  { %v298_v36 = vadd.f32 %v2478_v3, %v251_v31  ;;  %v290_v37 = vadd.f32 %v2478_v3, %v211_v32  ;;  %v337_v38 = vsel %vm305_vm2, %v289_v20, %v321_v27  ;;  %v345_v46 = vsel %vm313_vm5, %v297_v19, %v329_v26 }
  0x9c   :  { %v2519_v40 = vsel %vm2480_vm13, %v337_v38, -1e+30  ;;  %v2541_v58 = vsel %vm2493_vm15, %v345_v46, -1e+30  ;;  %vm2558_vm5 = vcmp.ne.s32.totalorder %v448_v22, 0  ;;  %v403_v19 = vpack.c.b16 %v372_v35, %v372_v35 }
  0x9d   :  { %v330_v44 = vmul.f32 0.2, %v298_v36  ;;  %v322_v45 = vmul.f32 0.2, %v290_v37  ;;  %501 = vmax.xlane.f32.xlu0 %v2519_v40  ;;  %vm306_vm7 = vcmp.ge.f32.partialorder %v290_v37, 0.0  ;;  %vm314_vm10 = vcmp.ge.f32.partialorder %v298_v36, 0.0 }
  0x9e   :  { %v221_v49 = vpop.permute.xlu1 %220  ;;  %v216_v50 = vpop.permute.xlu0 %215  ;;  %v443_v27 = vunpack.c.0.s8 %v427_v10  ;;  %v428_v46 = vsel %vm2551_vm1, 16843009, %v2271_v4  ;;  %v3352_v52 = vsel %vm2618_vm0, 4294967295, %v3351_v52 }
  0x9f   :  { %v292_v54 = vadd.f32 %v2478_v3, %v221_v49  ;;  %v291_v55 = vadd.f32 %v2478_v3, %v216_v50  ;;  %v338_v56 = vsel %vm306_vm7, %v290_v37, %v322_v45  ;;  %v346_v0 = vsel %vm314_vm10, %v298_v36, %v330_v44 }
  0xa0   :  { %v2545_v59 = vsel %vm2485_vm14, %v338_v56, -1e+30  ;;  %vm2562_vm7 = vnez %v400_v53  ;;  %v2576_v16 = vsel %vm2501_vm3, %v346_v0, -1e+30  ;;  %v404_v37 = vpack.c.b8 %v403_v19, %v403_v19  ;;  %v2124_v56 = vld [vmem:[%s2401_s23 + $0x30] sm:$0xff]  }
  0xa1   :  { %v324_v62 = vmul.f32 0.2, %v292_v54  ;;  %v323_v63 = vmul.f32 0.2, %v291_v55  ;;  %517 = vmax.xlane.f32.xlu0 %v2541_v58  ;;  %503 = vmax.xlane.f32.xlu1 %v2545_v59  ;;  %vm307_vm2 = vcmp.ge.f32.partialorder %v291_v55, 0.0  ;;  %vm308_vm6 = vcmp.ge.f32.partialorder %v292_v54, 0.0 }
  0xa2   :  { %v261_v2 = vpop.permute.xlu1 %260  ;;  %v256_v6 = vpop.permute.xlu0 %255  ;;  %v434_v26 = vsel %vm2562_vm7, 16843009, %v2271_v4  ;;  %vm2633_vm1 = vnez %v404_v37  ;;  %v3355_v0 = vmov 0 }
  0xa3   :  { %v300_v11 = vadd.f32 %v2478_v3, %v261_v2  ;;  %v299_v12 = vadd.f32 %v2478_v3, %v256_v6  ;;  %v339_v13 = vsel %vm307_vm2, %v291_v55, %v323_v63  ;;  %v340_v22 = vsel %vm308_vm6, %v292_v54, %v324_v62 }
  0xa4   :  { %v2580_v17 = vsel %vm2505_vm4, %v339_v13, -1e+30  ;;  %v2596_v34 = vsel %vm2522_vm8, %v340_v22, -1e+30  ;;  %vm2602_vm2 = vnez %v402_v18  ;;  %v450_v45 = vunpack.c.0.s8 %v434_v26 }
  0xa5   :  { %v332_v20 = vmul.f32 0.2, %v300_v11  ;;  %v331_v21 = vmul.f32 0.2, %v299_v12  ;;  %519 = vmax.xlane.f32.xlu0 %v2576_v16  ;;  %505 = vmax.xlane.f32.xlu1 %v2580_v17  ;;  %vm315_vm10 = vcmp.ge.f32.partialorder %v299_v12, 0.0  ;;  %vm316_vm11 = vcmp.ge.f32.partialorder %v300_v11, 0.0 }
  0xa6   :  { %v231_v23 = vpop.permute.xlu1 %230  ;;  %v226_v24 = vpop.permute.xlu0 %225  ;;  %v435_v55 = vsel %vm2602_vm2, 16843009, %v2271_v4  ;;  %v444_v2 = vunpack.c.0.s8 %v428_v46  ;;  %vm2646_vm2 = vcmp.ne.s32.totalorder %v450_v45, 0  ;;  %v436_v14 = vsel %vm2633_vm1, 16843009, %v2271_v4  ;;  %v2702_v45 = vld [vmem:[#allocation2] sm:$0xff] }
  0xa7   :  { %v294_v30 = vadd.f32 %v2478_v3, %v231_v23  ;;  %v293_v31 = vadd.f32 %v2478_v3, %v226_v24  ;;  %v347_v32 = vsel %vm315_vm10, %v299_v12, %v331_v21  ;;  %v348_v41 = vsel %vm316_vm11, %v300_v11, %v332_v20  ;;  %v2123_v46 = vld [vmem:[%s2401_s23 + $0x38] sm:$0xff]  }
  0xa8   :  { %v2600_v35 = vsel %vm2526_vm9, %v347_v32, -1e+30  ;;  %vm2609_vm10 = vcmp.ne.s32.totalorder %v442_v7, 0  ;;  %v2624_v53 = vsel %vm2558_vm5, %v348_v41, -1e+30  ;;  %v451_v13 = vunpack.c.0.s8 %v435_v55  ;;  %2021 = vmatprep.subr.bf16.mxu0 %v2123_v46  ;;  %2085 = vmatprep.subr.bf16.mxu1 %v2123_v46  ;;  %v2708_v55 = vld [vmem:[#allocation2 + $0x40] sm:$0xff] }
  0xa9   :  { %v326_v38 = vmul.f32 0.2, %v294_v30  ;;  %v325_v39 = vmul.f32 0.2, %v293_v31  ;;  %507 = vmax.xlane.f32.xlu0 %v2596_v34  ;;  %521 = vmax.xlane.f32.xlu1 %v2600_v35  ;;  %vm309_vm6 = vcmp.ge.f32.partialorder %v293_v31, 0.0  ;;  %vm310_vm7 = vcmp.ge.f32.partialorder %v294_v30, 0.0 }
  0xaa   :  { %v271_v42 = vpop.permute.xlu1 %270  ;;  %v266_v43 = vpop.permute.xlu0 %265  ;;  %vm2677_vm1 = vcmp.ne.s32.totalorder %v451_v13, 0  ;;  %v452_v32 = vunpack.c.0.s8 %v436_v14  ;;  %2022 = vmatpush3.bf16.msra.mxu0 %v2123_v46  ;;  %2093 = vmatpush3.bf16.msra.mxu1 %v2123_v46 }
  0xab   :  { %v302_v49 = vadd.f32 %v2478_v3, %v271_v42  ;;  %v301_v50 = vadd.f32 %v2478_v3, %v266_v43  ;;  %v341_v51 = vsel %vm309_vm6, %v293_v31, %v325_v39  ;;  %v342_v61 = vsel %vm310_vm7, %v294_v30, %v326_v38  ;;  %2023 = vmatprep.subr.bf16.mxu0 %v2124_v56 }
  0xac   :  { %v2628_v54 = vsel %vm2585_vm12, %v341_v51, -1e+30  ;;  %vm2640_vm12 = vcmp.ne.s32.totalorder %v443_v27, 0  ;;  %v2652_v11 = vsel %vm2609_vm10, %v342_v61, -1e+30  ;;  %v486_v51 = vld [vmem:[#allocation2 + $0x8] sm:$0xff]  ;;  %2086 = vmatprep.subr.bf16.mxu1 %v2124_v56 }
  0xad   :  { %v334_v57 = vmul.f32 0.2, %v302_v49  ;;  %v333_v60 = vmul.f32 0.2, %v301_v50  ;;  %523 = vmax.xlane.f32.xlu0 %v2624_v53  ;;  %509 = vmax.xlane.f32.xlu1 %v2628_v54  ;;  %vm317_vm11 = vcmp.ge.f32.partialorder %v301_v50, 0.0  ;;  %vm318_vm6 = vcmp.ge.f32.partialorder %v302_v49, 0.0 }
  0xae   :  { %v241_v62 = vpop.permute.xlu1 %240  ;;  %v236_v63 = vpop.permute.xlu0 %235  ;;  %v3356_v0 = vsel %vm2640_vm12, 4294967295, %v3355_v0  ;;  %2024 = vmatpush3.bf16.msra.mxu0 %v2124_v56  ;;  %2094 = vmatpush3.bf16.msra.mxu1 %v2124_v56  ;;  %v2763_v56 = vld [vmem:[#allocation2 + $0x60] sm:$0xff] }
  0xaf   :  { %v296_v6 = vadd.f32 %v2478_v3, %v241_v62  ;;  %v295_v7 = vadd.f32 %v2478_v3, %v236_v63  ;;  %v349_v8 = vsel %vm317_vm11, %v301_v50, %v333_v60  ;;  %v350_v20 = vsel %vm318_vm6, %v302_v49, %v334_v57  ;;  %v2717_v63 = vld [vmem:[#allocation2 + $0x10] sm:$0xff] }
  0xb0   :  { %v2656_v12 = vsel %vm2618_vm0, %v349_v8, -1e+30  ;;  %vm2665_vm0 = vcmp.ne.s32.totalorder %v444_v2, 0  ;;  %v2671_v4 = vsel %vm2646_vm2, %v350_v20, -1e+30  ;;  %v2719_v2 = vld [vmem:[#allocation2 + $0x48] sm:$0xff] }
  0xb1   :  { %v328_v18 = vmul.f32 0.2, %v296_v6  ;;  %v327_v19 = vmul.f32 0.2, %v295_v7  ;;  %511 = vmax.xlane.f32.xlu0 %v2652_v11  ;;  %525 = vmax.xlane.f32.xlu1 %v2656_v12  ;;  %vm311_vm7 = vcmp.ge.f32.partialorder %v295_v7, 0.0  ;;  %vm312_vm11 = vcmp.ge.f32.partialorder %v296_v6, 0.0 }
  0xb2   :  { %v281_v21 = vpop.permute.xlu1 %280  ;;  %v276_v22 = vpop.permute.xlu0 %275  ;;  %v2126_v20 = vld [vmem:[%s2401_s23 + $0x20] sm:$0xff]  }
  0xb3   :  { %v304_v23 = vadd.f32 %v2478_v3, %v281_v21  ;;  %v303_v24 = vadd.f32 %v2478_v3, %v276_v22  ;;  %v343_v26 = vsel %vm311_vm7, %v295_v7, %v327_v19  ;;  %v344_v36 = vsel %vm312_vm11, %v296_v6, %v328_v18  ;;  %v2125_v6 = vld [vmem:[%s2401_s23 + $0x28] sm:$0xff]   ;;  %v2732_v18 = vld [vmem:[#allocation2 + $0x50] sm:$0xff]  ;;  %v2734_v19 = vld [vmem:[#allocation2 + $0x18] sm:$0xff] }
  0xb4   :  { %v2675_v30 = vsel %vm2640_vm12, %v343_v26, -1e+30  ;;  %v2685_v38 = vsel %vm2665_vm0, %v344_v36, -1e+30  ;;  %vm2693_vm12 = vcmp.ne.s32.totalorder %v452_v32, 0  ;;  %vm3365_vm11 = vcmask 7168   ;;  %2025 = vmatprep.subr.bf16.mxu0 %v2125_v6  ;;  %2087 = vmatprep.subr.bf16.mxu1 %v2125_v6 }
  0xb5   :  { %v336_v33 = vmul.f32 0.2, %v304_v23  ;;  %v335_v3 = vmul.f32 0.2, %v303_v24  ;;  %527 = vmax.xlane.f32.xlu0 %v2671_v4  ;;  %513 = vmax.xlane.f32.xlu1 %v2675_v30  ;;  %vm319_vm6 = vcmp.ge.f32.partialorder %v303_v24, 0.0  ;;  %vm320_vm7 = vcmp.ge.f32.partialorder %v304_v23, 0.0 }
  0xb6   :  { %2026 = vmatpush3.bf16.msra.mxu0 %v2125_v6  ;;  %2095 = vmatpush3.bf16.msra.mxu1 %v2125_v6  ;;  %v489_v32 = vld [vmem:[#allocation2 + $0x20] sm:$0xff] }
  0xb7   :  { %v351_v37 = vsel %vm319_vm6, %v303_v24, %v335_v3  ;;  %v352_v41 = vsel %vm320_vm7, %v304_v23, %v336_v33  ;;  %vm3366_vm6 = vmmov %vm3365_vm11  ;;  %2027 = vmatprep.subr.bf16.mxu0 %v2126_v20  ;;  %2088 = vmatprep.subr.bf16.mxu1 %v2126_v20  ;;  %v2749_v33 = vld [vmem:[#allocation2 + $0x58] sm:$0xff] }
  0xb8   :  { %v2689_v39 = vsel %vm2677_vm1, %v351_v37, -1e+30  ;;  %v2699_v43 = vsel %vm2693_vm12, %v352_v41, -1e+30  ;;  %vm3367_vm7 = vmmov %vm3366_vm6  ;;  %v2127_v3 = vld [vmem:[%s2401_s23 + $0x18] sm:$0xff]  }
  0xb9   :  { %515 = vmax.xlane.f32.xlu0 %v2685_v38  ;;  %529 = vmax.xlane.f32.xlu1 %v2689_v39 }
  0xba   :  { %2028 = vmatpush3.bf16.msra.mxu0 %v2126_v20  ;;  %2096 = vmatpush3.bf16.msra.mxu1 %v2126_v20 }
  0xbb   :  { %2029 = vmatprep.subr.bf16.mxu0 %v2127_v3  ;;  %2089 = vmatprep.subr.bf16.mxu1 %v2127_v3 }
  0xbd   :  { %531 = vmax.xlane.f32.xlu0 %v2699_v43 }
  0xbe   :  { %2030 = vmatpush3.bf16.msra.mxu0 %v2127_v3  ;;  %2097 = vmatpush3.bf16.msra.mxu1 %v2127_v3 }
 0x126   :  { %v502_v49 = vpop.xlane.xlu0 %501 }
 0x127   :  { %v2706_v50 = vmax.f32 %v2702_v45, %v502_v49 }
 0x129   :  { %1135 = vst.msk [vmem:[#allocation2] sm:$0xff] %vm3365_vm11, %v2706_v50  ;;  %551 = vperm.xlu1 %2122, %v2706_v50   ;;  %vm3368_vm11 = vmmov %vm3366_vm6  ;;  %v693_v36 = vsub.f32 %v2702_v45, %v2706_v50 }
 0x12a   :  { %v504_v57 = vpop.xlane.xlu1 %503  ;;  %v518_v60 = vpop.xlane.xlu0 %517 }
 0x12b   :  { %v534_v61 = vmax.f32 %v486_v51, %v504_v57  ;;  %v2715_v62 = vmax.f32 %v2708_v55, %v518_v60  ;;  %v2765_v57 = vld [vmem:[#allocation2 + $0x28] sm:$0xff]  ;;  %v2128_v60 = vld [vmem:[%s2401_s23 + $0x10] sm:$0xff]   ;;  %v709_v45 = vmul.f32 1.442695, %v693_v36 }
 0x12c   :  { %2031 = vmatprep.subr.bf16.mxu0 %v2128_v60  ;;  %2090 = vmatprep.subr.bf16.mxu1 %v2128_v60 }
 0x12d   :  { %1136 = vst.msk [vmem:[#allocation2 + $0x8] sm:$0xff] %vm3366_vm6, %v534_v61  ;;  %556 = vperm.xlu0 %2121, %v534_v61   ;;  %591 = vperm.xlu1 %2122, %v2715_v62   ;;  %v694_v23 = vsub.f32 %v486_v51, %v534_v61 }
 0x12e   :  { %1143 = vst.msk [vmem:[#allocation2 + $0x40] sm:$0xff] %vm3367_vm7, %v2715_v62  ;;  %v506_v7 = vpop.xlane.xlu1 %505  ;;  %v520_v8 = vpop.xlane.xlu0 %519  ;;  %vm3369_vm7 = vmmov %vm3366_vm6  ;;  %2032 = vmatpush3.bf16.msra.mxu0 %v2128_v60  ;;  %2098 = vmatpush3.bf16.msra.mxu1 %v2128_v60  ;;  %v2130_v60 = vld [vmem:[%s2401_s23] sm:$0xff]  }
 0x12f   :  { %v2727_v13 = vmax.f32 %v2717_v63, %v506_v7  ;;  %v2730_v14 = vmax.f32 %v2719_v2, %v520_v8  ;;  %v711_v46 = vmul.f32 1.442695, %v694_v23  ;;  %v2778_v23 = vld [vmem:[#allocation2 + $0x68] sm:$0xff] }
 0x131   :  { %1137 = vst.msk [vmem:[#allocation2 + $0x10] sm:$0xff] %vm3368_vm11, %v2727_v13  ;;  %561 = vperm.xlu0 %2121, %v2727_v13   ;;  %596 = vperm.xlu1 %2122, %v2730_v14   ;;  %vm3370_vm11 = vmmov %vm3366_vm6  ;;  %v695_v50 = vsub.f32 %v2717_v63, %v2727_v13  ;;  %2131 = vpow2.f32 %v711_v46  ;;  %v2790_v46 = vld [vmem:[#allocation2 + $0x70] sm:$0xff] }
 0x132   :  { %1144 = vst.msk [vmem:[#allocation2 + $0x48] sm:$0xff] %vm3366_vm6, %v2730_v14  ;;  %v522_v21 = vpop.xlane.xlu1 %521  ;;  %v508_v22 = vpop.xlane.xlu0 %507  ;;  %2133 = vpow2.f32 %v709_v45 }
 0x133   :  { %v2744_v24 = vmax.f32 %v2732_v18, %v522_v21  ;;  %v2747_v26 = vmax.f32 %v2734_v19, %v508_v22  ;;  %v491_v22 = vld [vmem:[#allocation2 + $0x30] sm:$0xff]  ;;  %v713_v63 = vmul.f32 1.442695, %v695_v50 }
 0x135   :  { %1145 = vst.msk [vmem:[#allocation2 + $0x50] sm:$0xff] %vm3369_vm7, %v2744_v24  ;;  %601 = vperm.xlu0 %2121, %v2744_v24   ;;  %566 = vperm.xlu1 %2122, %v2747_v26   ;;  %vm3371_vm7 = vmmov %vm3366_vm6  ;;  %v696_v13 = vsub.f32 %v2734_v19, %v2747_v26 }
 0x136   :  { %1138 = vst.msk [vmem:[#allocation2 + $0x18] sm:$0xff] %vm3370_vm11, %v2747_v26  ;;  %v510_v37 = vpop.xlane.xlu1 %509  ;;  %v524_v41 = vpop.xlane.xlu0 %523  ;;  %vm3372_vm11 = vmmov %vm3366_vm6 }
 0x137   :  { %v537_v49 = vmax.f32 %v489_v32, %v510_v37  ;;  %v2761_v51 = vmax.f32 %v2749_v33, %v524_v41  ;;  %v715_v19 = vmul.f32 1.442695, %v696_v13 }
 0x139   :  { %v697_v61 = vsub.f32 %v489_v32, %v537_v49  ;;  %1139 = vst.msk [vmem:[#allocation2 + $0x20] sm:$0xff] %vm3366_vm6, %v537_v49  ;;  %571 = vperm.xlu0 %2121, %v537_v49   ;;  %606 = vperm.xlu1 %2122, %v2761_v51   ;;  %v2129_v32 = vld [vmem:[%s2401_s23 + $0x8] sm:$0xff]   ;;  %v492_v49 = vld [vmem:[#allocation2 + $0x38] sm:$0xff] }
 0x13a   :  { %1146 = vst.msk [vmem:[#allocation2 + $0x58] sm:$0xff] %vm3371_vm7, %v2761_v51  ;;  %v526_v6 = vpop.xlane.xlu1 %525  ;;  %v512_v7 = vpop.xlane.xlu0 %511  ;;  %2033 = vmatprep.subr.bf16.mxu0 %v2129_v32  ;;  %2091 = vmatprep.subr.bf16.mxu1 %v2129_v32  ;;  %vm3373_vm7 = vmmov %vm3366_vm6 }
 0x13b   :  { %v717_v8 = vmul.f32 1.442695, %v697_v61  ;;  %v2775_v20 = vmax.f32 %v2763_v56, %v526_v6  ;;  %v538_v21 = vmax.f32 %v2765_v57, %v512_v7  ;;  %2034 = vmatpush3.bf16.msra.mxu0 %v2129_v32  ;;  %2099 = vmatpush3.bf16.msra.mxu1 %v2129_v32  ;;  %v701_v61 = vsub.f32 %v2708_v55, %v2715_v62 }
 0x13c   :  { %2035 = vmatprep.subr.bf16.mxu0 %v2130_v60  ;;  %2092 = vmatprep.subr.bf16.mxu1 %v2130_v60  ;;  %v703_v32 = vsub.f32 %v2732_v18, %v2744_v24 }
 0x13d   :  { %1147 = vst.msk [vmem:[#allocation2 + $0x60] sm:$0xff] %vm3372_vm11, %v2775_v20  ;;  %611 = vperm.xlu0 %2121, %v2775_v20   ;;  %576 = vperm.xlu1 %2122, %v538_v21   ;;  %2135 = vpow2.f32 %v717_v8  ;;  %vm3374_vm11 = vmmov %vm3366_vm6  ;;  %v698_v6 = vsub.f32 %v2765_v57, %v538_v21  ;;  %v2803_v8 = vld [vmem:[#allocation2 + $0x78] sm:$0xff] }
 0x13e   :  { %1140 = vst.msk [vmem:[#allocation2 + $0x28] sm:$0xff] %vm3366_vm6, %v538_v21  ;;  %v514_v3 = vpop.xlane.xlu1 %513  ;;  %v528_v36 = vpop.xlane.xlu0 %527  ;;  %2137 = vpow2.f32 %v713_v63  ;;  %v729_v24 = vmul.f32 1.442695, %v703_v32 }
 0x13f   :  { %v539_v37 = vmax.f32 %v491_v22, %v514_v3  ;;  %v2788_v41 = vmax.f32 %v2778_v23, %v528_v36  ;;  %2036 = vmatpush3.bf16.msra.mxu0 %v2130_v60  ;;  %2100 = vmatpush3.bf16.msra.mxu1 %v2130_v60  ;;  %v719_v21 = vmul.f32 1.442695, %v698_v6  ;;  %v2816_v18 = vpop.eup %2131  ;;  %v705_v36 = vsub.f32 %v2763_v56, %v2775_v20 }
 0x140   :  { %v702_v60 = vsub.f32 %v2719_v2, %v2730_v14 }
 0x141   :  { %v699_v45 = vsub.f32 %v491_v22, %v539_v37  ;;  %1141 = vst.msk [vmem:[#allocation2 + $0x30] sm:$0xff] %vm3373_vm7, %v539_v37  ;;  %581 = vperm.xlu0 %2121, %v539_v37   ;;  %616 = vperm.xlu1 %2122, %v2788_v41   ;;  %v725_v22 = vmul.f32 1.442695, %v701_v61  ;;  %vm3375_vm7 = vmmov %vm3366_vm6  ;;  %v733_v56 = vmul.f32 1.442695, %v705_v36 }
 0x142   :  { %1148 = vst.msk [vmem:[#allocation2 + $0x68] sm:$0xff] %vm3374_vm11, %v2788_v41  ;;  %v530_v26 = vpop.xlane.xlu1 %529  ;;  %v516_v50 = vpop.xlane.xlu0 %515  ;;  %vm3376_vm11 = vmmov %vm3366_vm6 }
 0x143   :  { %v721_v7 = vmul.f32 1.442695, %v699_v45  ;;  %v2801_v55 = vmax.f32 %v2790_v46, %v530_v26  ;;  %v540_v62 = vmax.f32 %v492_v49, %v516_v50  ;;  %v704_v26 = vsub.f32 %v2749_v33, %v2761_v51 }
 0x144   :  { %v706_v50 = vsub.f32 %v2778_v23, %v2788_v41 }
 0x145   :  { %2139 = vpow2.f32 %v721_v7  ;;  %1149 = vst.msk [vmem:[#allocation2 + $0x70] sm:$0xff] %vm3366_vm6, %v2801_v55  ;;  %621 = vperm.xlu0 %2121, %v2801_v55   ;;  %586 = vperm.xlu1 %2122, %v540_v62   ;;  %v700_v13 = vsub.f32 %v492_v49, %v540_v62  ;;  %v2826_v49 = vpop.eup %2133  ;;  %v731_v14 = vmul.f32 1.442695, %v704_v26  ;;  %vm1860_vm6 = vmpackc.low %vm2485_vm14, %vm2480_vm13 }
 0x146   :  { %1142 = vst.msk [vmem:[#allocation2 + $0x38] sm:$0xff] %vm3375_vm7, %v540_v62  ;;  %v532_v57 = vpop.xlane.xlu0 %531  ;;  %2141 = vpow2.f32 %v715_v19  ;;  %v727_v19 = vmul.f32 1.442695, %v702_v60  ;;  %v735_v33 = vmul.f32 1.442695, %v706_v50  ;;  %vm1875_vm7 = vmpackc.low %vm2558_vm5, %vm2526_vm9 }
 0x147   :  { %v2814_v3 = vmax.f32 %v2803_v8, %v532_v57  ;;  %2143 = vpow2.f32 %v725_v22  ;;  %v723_v61 = vmul.f32 1.442695, %v700_v13 }
 0x148   :  { %2145 = vpow2.f32 %v719_v21 }
 0x149   :  { %1150 = vst.msk [vmem:[#allocation2 + $0x78] sm:$0xff] %vm3376_vm11, %v2814_v3  ;;  %861 = vperm.xlu0 %2121, %v2816_v18   ;;  %626 = vperm.xlu1 %2122, %v2814_v3   ;;  %2147 = vpow2.f32 %v729_v24  ;;  %vm3379_vm11 = vnez %v3352_v52  ;;  %v3381_v28 = vsub.f32 %v2803_v8, %v2814_v3  ;;  %v3382_v52 = vsub.f32 %v2790_v46, %v2801_v55 }
 0x14a   :  { %v2830_v45 = vpop.eup %2135  ;;  %2149 = vpow2.f32 %v723_v61 }
 0x14b   :  { %v2834_v20 = vpop.eup %2137  ;;  %2151 = vpow2.f32 %v733_v56 }
 0x14c   :  { %2153 = vpow2.f32 %v727_v19 }
 0x14d   :  { %876 = vperm.xlu0 %2121, %v2830_v45   ;;  %856 = vperm.xlu1 %2122, %v2826_v49   ;;  %2155 = vpow2.f32 %v731_v14 }
 0x14e   :  { %2157 = vpow2.f32 %v735_v33 }
 0x151   :  { %866 = vperm.xlu1 %2122, %v2834_v20  }
 0x152   :  { %v2839_v2 = vpop.eup %2139 }
 0x153   :  { %886 = vperm.xlu0 %2121, %v2839_v2   ;;  %v2844_v6 = vpop.eup %2141 }
 0x154   :  { %v2847_v7 = vpop.eup %2143 }
 0x155   :  { %871 = vperm.xlu1 %2122, %v2844_v6   ;;  %v2850_v51 = vpop.eup %2145 }
 0x156   :  { %v2853_v62 = vpop.eup %2147 }
 0x157   :  { %896 = vperm.xlu0 %2121, %v2847_v7   ;;  %v2856_v23 = vpop.eup %2149 }
 0x158   :  { %v2859_v41 = vpop.eup %2151 }
 0x159   :  { %881 = vperm.xlu1 %2122, %v2850_v51   ;;  %v2862_v22 = vpop.eup %2153 }
 0x15a   :  { %v2865_v32 = vpop.eup %2155 }
 0x15b   :  { %906 = vperm.xlu0 %2121, %v2853_v62   ;;  %v2868_v57 = vpop.eup %2157 }
 0x15c   :  { %3377 = vst [vmem:[#allocation8_spill] sm:$0xff] %v2868_v57 }
 0x15d   :  { %891 = vperm.xlu1 %2122, %v2856_v23  }
 0x15f   :  { %916 = vperm.xlu0 %2121, %v2859_v41  }
 0x161   :  { %901 = vperm.xlu1 %2122, %v2862_v22  }
 0x165   :  { %911 = vperm.xlu1 %2122, %v2865_v32  }
 0x169   :  { %921 = vperm.xlu1 %2122, %v2868_v57  }
 0x1a4   :  { %v552_v21 = vpop.permute.xlu1 %551 }
 0x1a5   :  { %v629_v13 = vsub.f32 %v2519_v40, %v552_v21 }
 0x1a7   :  { %v645_v24 = vmul.f32 1.442695, %v629_v13 }
 0x1a8   :  { %v592_v36 = vpop.permute.xlu1 %591  ;;  %v557_v60 = vpop.permute.xlu0 %556 }
 0x1a9   :  { %2159 = vpow2.f32 %v645_v24  ;;  %v637_v61 = vsub.f32 %v2541_v58, %v592_v36  ;;  %v630_v56 = vsub.f32 %v2545_v59, %v557_v60 }
 0x1ab   :  { %v647_v19 = vmul.f32 1.442695, %v630_v56  ;;  %v661_v26 = vmul.f32 1.442695, %v637_v61 }
 0x1ac   :  { %v597_v14 = vpop.permute.xlu1 %596  ;;  %v562_v50 = vpop.permute.xlu0 %561 }
 0x1ad   :  { %v638_v33 = vsub.f32 %v2576_v16, %v597_v14  ;;  %v631_v63 = vsub.f32 %v2580_v17, %v562_v50  ;;  %2161 = vpow2.f32 %v647_v19 }
 0x1ae   :  { %2163 = vpow2.f32 %v661_v26 }
 0x1af   :  { %v663_v37 = vmul.f32 1.442695, %v638_v33  ;;  %v649_v57 = vmul.f32 1.442695, %v631_v63 }
 0x1b0   :  { %v567_v40 = vpop.permute.xlu1 %566  ;;  %v602_v21 = vpop.permute.xlu0 %601 }
 0x1b1   :  { %2165 = vpow2.f32 %v663_v37  ;;  %v632_v13 = vsub.f32 %v2596_v34, %v567_v40  ;;  %v639_v58 = vsub.f32 %v2600_v35, %v602_v21 }
 0x1b2   :  { %2167 = vpow2.f32 %v649_v57 }
 0x1b3   :  { %v651_v59 = vmul.f32 1.442695, %v632_v13  ;;  %v665_v24 = vmul.f32 1.442695, %v639_v58 }
 0x1b4   :  { %v607_v36 = vpop.permute.xlu1 %606  ;;  %v572_v60 = vpop.permute.xlu0 %571 }
 0x1b5   :  { %2169 = vpow2.f32 %v651_v59  ;;  %v640_v16 = vsub.f32 %v2624_v53, %v607_v36  ;;  %v633_v17 = vsub.f32 %v2628_v54, %v572_v60 }
 0x1b6   :  { %v2160_v61 = vpop.eup %2159  ;;  %2171 = vpow2.f32 %v665_v24 }
 0x1b7   :  { %v667_v63 = vmul.f32 1.442695, %v640_v16  ;;  %v653_v56 = vmul.f32 1.442695, %v633_v17  ;;  %v677_v37 = vsel %vm2480_vm13, %v2160_v61, 0.0  ;;  %vm1872_vm13 = vmpackc.low %vm2501_vm3, %vm2493_vm15 }
 0x1b8   :  { %773 = vadd.xlane.f32.xlu0 %v677_v37  ;;  %v577_v34 = vpop.permute.xlu1 %576  ;;  %v612_v35 = vpop.permute.xlu0 %611 }
 0x1b9   :  { %2173 = vpow2.f32 %v667_v63  ;;  %v634_v57 = vsub.f32 %v2652_v11, %v577_v34  ;;  %v641_v19 = vsub.f32 %v2656_v12, %v612_v35 }
 0x1ba   :  { %2175 = vpow2.f32 %v653_v56  ;;  %v2162_v26 = vpop.eup %2161 }
 0x1bb   :  { %v655_v53 = vmul.f32 1.442695, %v634_v57  ;;  %v669_v54 = vmul.f32 1.442695, %v641_v19  ;;  %v678_v50 = vsel %vm2485_vm14, %v2162_v26, 0.0  ;;  %v1861_v40 = vpack.c.bf16 %v2162_v26, %v2160_v61  ;;  %v2890_v21 = vpop.eup %2163  ;;  %vm1863_vm14 = vmpackc.low %vm2522_vm8, %vm2505_vm4 }
 0x1bc   :  { %v617_v14 = vpop.permute.xlu1 %616  ;;  %v582_v33 = vpop.permute.xlu0 %581  ;;  %775 = vadd.xlane.f32.xlu1 %v678_v50 }
 0x1bd   :  { %2177 = vpow2.f32 %v655_v53  ;;  %v642_v11 = vsub.f32 %v2671_v4, %v617_v14  ;;  %v635_v12 = vsub.f32 %v2675_v30, %v582_v33  ;;  %2037 = vmatprep.mubr.msk.bf16.mxu0 %vm1860_vm6, %v1861_v40  ;;  %vm1878_vm6 = vmpackc.low %vm2646_vm2, %vm3379_vm11 }
 0x1be   :  { %v2894_v13 = vpop.eup %2165  ;;  %2179 = vpow2.f32 %v669_v54 }
 0x1bf   :  { %v2168_v5 = vpop.eup %2167  ;;  %v671_v9 = vmul.f32 1.442695, %v642_v11  ;;  %v657_v58 = vmul.f32 1.442695, %v635_v12  ;;  %v1873_v59 = vpack.c.bf16 %v2894_v13, %v2890_v21  ;;  %v685_v11 = vsel %vm2493_vm15, %v2890_v21, 0.0 }
 0x1c0   :  { %v587_v24 = vpop.permute.xlu1 %586  ;;  %v679_v4 = vsel %vm2505_vm4, %v2168_v5, 0.0  ;;  %v622_v30 = vpop.permute.xlu0 %621  ;;  %vm3378_vm4 = vnez %v3346_v25 }
 0x1c1   :  { %2181 = vpow2.f32 %v671_v9  ;;  %v636_v36 = vsub.f32 %v2685_v38, %v587_v24  ;;  %777 = vadd.xlane.f32.xlu0 %v679_v4  ;;  %v643_v60 = vsub.f32 %v2689_v39, %v622_v30  ;;  %2045 = vmatprep.mubr.msk.bf16.mxu1 %vm1872_vm13, %v1873_v59  ;;  %vm3380_vm13 = vnez %v3356_v0 }
 0x1c2   :  { %v2170_v16 = vpop.eup %2169  ;;  %2183 = vpow2.f32 %v657_v58  ;;  %v686_v0 = vsel %vm2501_vm3, %v2894_v13, 0.0  ;;  %v739_v13 = vmul.f32 1.442695, %v3381_v28  ;;  %v737_v59 = vmul.f32 1.442695, %v3382_v52 }
 0x1c3   :  { %v659_v17 = vmul.f32 1.442695, %v636_v36  ;;  %v680_v61 = vsel %vm2522_vm8, %v2170_v16, 0.0  ;;  %v1864_v63 = vpack.c.bf16 %v2170_v16, %v2168_v5  ;;  %v673_v56 = vmul.f32 1.442695, %v643_v60  ;;  %v2172_v34 = vpop.eup %2171  ;;  %vm1866_vm8 = vmpackc.low %vm2609_vm10, %vm3378_vm4 }
 0x1c4   :  { %v627_v37 = vpop.permute.xlu1 %626  ;;  %v687_v9 = vsel %vm2526_vm9, %v2172_v34, 0.0  ;;  %v2975_v42 = vpop.permute.xlu0 %861 }
 0x1c5   :  { %2185 = vpow2.f32 %v659_v17  ;;  %v644_v38 = vsub.f32 %v2699_v43, %v627_v37  ;;  %779 = vadd.xlane.f32.xlu0 %v680_v61  ;;  %2038 = vmatmul.mubr.msk.bf16.vlgmr.msra.gmra.mxu0 %vm1863_vm14, %v1864_v63  ;;  %vm1881_vm14 = vmpackc.low %vm2693_vm12, %vm2677_vm1  ;;  %v741_v63 = vld [vmem:[#allocation3] sm:$0xff] }
 0x1c6   :  { %v2174_v39 = vpop.eup %2173  ;;  %2187 = vpow2.f32 %v673_v56  ;;  %v757_v56 = vmul.f32 %v2826_v49, %v741_v63 }
 0x1c7   :  { %v2176_v29 = vpop.eup %2175  ;;  %v675_v35 = vmul.f32 1.442695, %v644_v38  ;;  %v1876_v57 = vpack.c.bf16 %v2174_v39, %v2172_v34  ;;  %v688_v15 = vsel %vm2558_vm5, %v2174_v39, 0.0  ;;  %v742_v39 = vld [vmem:[#allocation3 + $0x8] sm:$0xff] }
 0x1c8   :  { %v681_v47 = vsel %vm3378_vm4, %v2176_v29, 0.0  ;;  %v2971_v31 = vpop.permute.xlu1 %856  ;;  %v2979_v4 = vpop.permute.xlu0 %876 }
 0x1c9   :  { %2189 = vpow2.f32 %v675_v35  ;;  %781 = vadd.xlane.f32.xlu1 %v681_v47  ;;  %2046 = vmatmul.mubr.msk.bf16.vlgmr.msra.gmra.mxu1 %vm1875_vm7, %v1876_v57  ;;  %v743_v57 = vld [vmem:[#allocation3 + $0x10] sm:$0xff] }
 0x1ca   :  { %v2178_v19 = vpop.eup %2177  ;;  %2191 = vpow2.f32 %v739_v13  ;;  %v751_v13 = vld [vmem:[#allocation3 + $0x50] sm:$0xff] }
 0x1cb   :  { %v682_v43 = vsel %vm2609_vm10, %v2178_v19, 0.0  ;;  %v1867_v26 = vpack.c.bf16 %v2178_v19, %v2176_v29  ;;  %v2180_v53 = vpop.eup %2179  ;;  %vm1869_vm10 = vmpackc.low %vm2665_vm0, %vm3380_vm13  ;;  %2193 = vpow2.f32 %v737_v59  ;;  %v758_v29 = vmul.f32 %v2816_v18, %v742_v39 }
 0x1cc   :  { %783 = vadd.xlane.f32.xlu0 %v682_v43  ;;  %v689_v21 = vsel %vm3379_vm11, %v2180_v53, 0.0  ;;  %v2973_v3 = vpop.permute.xlu1 %866  ;;  %v759_v19 = vmul.f32 %v2834_v20, %v743_v57  ;;  %v755_v57 = vld [vmem:[#allocation3 + $0x70] sm:$0xff] }
 0x1cd   :  { %2041 = vmatprep.mubr.msk.bf16.mxu0 %vm1866_vm8, %v1867_v26  ;;  %v744_v26 = vld [vmem:[#allocation3 + $0x18] sm:$0xff] }
 0x1ce   :  { %v2182_v54 = vpop.eup %2181  ;;  %v2983_v55 = vpop.permute.xlu0 %886  ;;  %v760_v49 = vmul.f32 %v2844_v6, %v744_v26 }
 0x1cf   :  { %v2184_v14 = vpop.eup %2183  ;;  %v1879_v50 = vpack.c.bf16 %v2182_v54, %v2180_v53  ;;  %v690_v58 = vsel %vm2646_vm2, %v2182_v54, 0.0 }
 0x1d0   :  { %v683_v25 = vsel %vm3380_vm13, %v2184_v14, 0.0  ;;  %v2977_v24 = vpop.permute.xlu1 %871 }
 0x1d1   :  { %785 = vadd.xlane.f32.xlu1 %v683_v25  ;;  %2049 = vmatprep.mubr.msk.bf16.mxu1 %vm1878_vm6, %v1879_v50  ;;  %v746_v25 = vld [vmem:[#allocation3 + $0x28] sm:$0xff] }
 0x1d2   :  { %v2186_v33 = vpop.eup %2185  ;;  %v2987_v36 = vpop.permute.xlu0 %896 }
 0x1d3   :  { %v684_v44 = vsel %vm2665_vm0, %v2186_v33, 0.0  ;;  %v1870_v40 = vpack.c.bf16 %v2186_v33, %v2184_v14  ;;  %v2188_v12 = vpop.eup %2187  ;;  %vm3383_vm0 = vcmask 7168   ;;  %v745_v14 = vld [vmem:[#allocation3 + $0x20] sm:$0xff] }
 0x1d4   :  { %787 = vadd.xlane.f32.xlu0 %v684_v44  ;;  %v691_v48 = vsel %vm2677_vm1, %v2188_v12, 0.0  ;;  %v2981_v46 = vpop.permute.xlu1 %881  ;;  %vm3384_vm15 = vmmov %vm3383_vm0  ;;  %v761_v18 = vmul.f32 %v2830_v45, %v745_v14 }
 0x1d5   :  { %789 = vadd.xlane.f32.xlu1 %v685_v11  ;;  %2042 = vmatmul.mubr.msk.bf16.gmra.mxu0 %vm1869_vm10, %v1870_v40  ;;  %vm3385_vm3 = vmmov %vm3383_vm0  ;;  %v762_v40 = vmul.f32 %v2850_v51, %v746_v25  ;;  %v838_v25 = vld [vmem:[#allocation4 + $0x30] sm:$0xff] }
 0x1d6   :  { %v2190_v5 = vpop.eup %2189  ;;  %v2991_v16 = vpop.permute.xlu0 %906  ;;  %vm3386_vm9 = vmmov %vm3383_vm0 }
 0x1d7   :  { %v1882_v27 = vpack.c.bf16 %v2190_v5, %v2188_v12  ;;  %v692_v1 = vsel %vm2693_vm12, %v2190_v5, 0.0  ;;  %v2965_v10 = vpop.eup %2191  ;;  %vm3387_vm5 = vmmov %vm3383_vm0  ;;  %v747_v12 = vld [vmem:[#allocation3 + $0x30] sm:$0xff]  ;;  %v748_v5 = vld [vmem:[#allocation3 + $0x38] sm:$0xff] }
 0x1d8   :  { %791 = vadd.xlane.f32.xlu0 %v686_v0  ;;  %v2968_v8 = vpop.eup %2193  ;;  %v2985_v30 = vpop.permute.xlu1 %891  ;;  %vm3388_vm12 = vmmov %vm3383_vm0  ;;  %v763_v6 = vmul.f32 %v2839_v2, %v747_v12  ;;  %v764_v45 = vmul.f32 %v2856_v23, %v748_v5  ;;  %v752_v23 = vld [vmem:[#allocation3 + $0x58] sm:$0xff]  ;;  %v839_v12 = vld [vmem:[#allocation4] sm:$0xff] }
 0x1d9   :  { %793 = vadd.xlane.f32.xlu1 %v687_v9  ;;  %2050 = vmatmul.mubr.msk.bf16.gmra.mxu1 %vm1881_vm14, %v1882_v27  ;;  %v749_v27 = vld [vmem:[#allocation3 + $0x40] sm:$0xff]  ;;  %vm3389_vm2 = vmmov %vm3383_vm0 }
 0x1da   :  { %v2995_v61 = vpop.permute.xlu0 %916  ;;  %vm3390_vm1 = vmmov %vm3383_vm0 }
 0x1db   :  { %vm3391_vm7 = vmmov %vm3383_vm0 }
 0x1dc   :  { %795 = vadd.xlane.f32.xlu0 %v688_v15  ;;  %v2989_v60 = vpop.permute.xlu1 %901  ;;  %v765_v15 = vmul.f32 %v2847_v7, %v749_v27  ;;  %vm3392_vm4 = vmmov %vm3383_vm0 }
 0x1dd   :  { %797 = vadd.xlane.f32.xlu1 %v689_v21  ;;  %v750_v21 = vld [vmem:[#allocation3 + $0x48] sm:$0xff]  ;;  %vm3393_vm8 = vmmov %vm3383_vm0 }
 0x1de   :  { %v766_v2 = vmul.f32 %v2862_v22, %v750_v21  ;;  %v754_v22 = vld [vmem:[#allocation3 + $0x68] sm:$0xff]  ;;  %vm3394_vm11 = vmmov %vm3383_vm0 }
 0x1df   :  { %vm3396_vm6 = vmmov %vm3383_vm0 }
 0x1e0   :  { %799 = vadd.xlane.f32.xlu0 %v690_v58  ;;  %v2993_v17 = vpop.permute.xlu1 %911  ;;  %vm3397_vm13 = vmmov %vm3383_vm0 }
 0x1e1   :  { %801 = vadd.xlane.f32.xlu1 %v691_v48  ;;  %vm3398_vm10 = vmmov %vm3383_vm0 }
 0x1e2   :  { %vm3399_vm14 = vmmov %vm3383_vm0 }
 0x1e4   :  { %803 = vadd.xlane.f32.xlu0 %v692_v1  ;;  %v2998_v34 = vpop.permute.xlu1 %921  ;;  %v767_v1 = vmul.f32 %v2853_v62, %v751_v13 }
 0x1f2   :  { %931 = vperm.xlu1 %2122, %v2965_v10  }
 0x1fa   :  { %926 = vperm.xlu0 %2121, %v2968_v8  }
 0x241   :  { %v774_v37 = vpop.xlane.xlu0 %773 }
 0x242   :  { %v805_v38 = vadd.f32 %v774_v37, %v757_v56  ;;  %v753_v56 = vld [vmem:[#allocation3 + $0x60] sm:$0xff]  ;;  %v768_v37 = vmul.f32 %v2865_v32, %v752_v23  ;;  %v756_v32 = vld [vmem:[#allocation3 + $0x78] sm:$0xff]  ;;  %v844_v23 = vld [vmem:[#allocation4 + $0x8] sm:$0xff] }
 0x244   :  { %822 = vst.msk [vmem:[#allocation3] sm:$0xff] %vm3383_vm0, %v805_v38  ;;  %v769_v38 = vmul.f32 %v2859_v41, %v753_v56  ;;  %v772_v41 = vmul.f32 %v2965_v10, %v756_v32  ;;  %v845_v56 = vld [vmem:[#allocation4 + $0x48] sm:$0xff] }
 0x245   :  { %v776_v35 = vpop.xlane.xlu1 %775 }
 0x246   :  { %v806_v47 = vadd.f32 %v776_v35, %v758_v29 }
 0x248   :  { %823 = vst.msk [vmem:[#allocation3 + $0x8] sm:$0xff] %vm3384_vm15, %v806_v47  ;;  %v3395_v47 = vld [vmem:[#allocation8_spill] sm:$0xff] }
 0x24a   :  { %v778_v43 = vpop.xlane.xlu0 %777 }
 0x24b   :  { %v807_v53 = vadd.f32 %v778_v43, %v759_v19  ;;  %v770_v19 = vmul.f32 %v3395_v47, %v754_v22  ;;  %v771_v43 = vmul.f32 %v2968_v8, %v755_v57  ;;  %v841_v8 = vld [vmem:[#allocation4 + $0x18] sm:$0xff]  ;;  %v843_v22 = vld [vmem:[#allocation4 + $0x68] sm:$0xff] }
 0x24c   :  { %v937_v10 = vmul.f32 %v2977_v24, %v841_v8 }
 0x24d   :  { %824 = vst.msk [vmem:[#allocation3 + $0x10] sm:$0xff] %vm3385_vm3, %v807_v53 }
 0x24e   :  { %v780_v54 = vpop.xlane.xlu0 %779 }
 0x24f   :  { %v808_v50 = vadd.f32 %v780_v54, %v760_v49 }
 0x251   :  { %825 = vst.msk [vmem:[#allocation3 + $0x18] sm:$0xff] %vm3386_vm9, %v808_v50 }
 0x252   :  { %v782_v33 = vpop.xlane.xlu1 %781 }
 0x253   :  { %v809_v44 = vadd.f32 %v782_v33, %v761_v18  ;;  %v840_v18 = vld [vmem:[#allocation4 + $0x58] sm:$0xff] }
 0x254   :  { %v936_v33 = vmul.f32 %v2973_v3, %v840_v18  ;;  %v935_v3 = vmul.f32 %v2975_v42, %v839_v12 }
 0x255   :  { %826 = vst.msk [vmem:[#allocation3 + $0x20] sm:$0xff] %vm3387_vm5, %v809_v44  ;;  %v784_v20 = vpop.xlane.xlu0 %783  ;;  %v848_v44 = vld [vmem:[#allocation4 + $0x10] sm:$0xff] }
 0x256   :  { %v810_v11 = vadd.f32 %v784_v20, %v762_v40  ;;  %v934_v20 = vmul.f32 %v2971_v31, %v838_v25 }
 0x258   :  { %827 = vst.msk [vmem:[#allocation3 + $0x28] sm:$0xff] %vm3388_vm12, %v810_v11 }
 0x25a   :  { %v786_v0 = vpop.xlane.xlu1 %785 }
 0x25b   :  { %v811_v9 = vadd.f32 %v786_v0, %v763_v6  ;;  %v846_v6 = vld [vmem:[#allocation4 + $0x40] sm:$0xff]  ;;  %v944_v0 = vmul.f32 %v2991_v16, %v848_v44 }
 0x25d   :  { %828 = vst.msk [vmem:[#allocation3 + $0x30] sm:$0xff] %vm3389_vm2, %v811_v9  ;;  %v788_v51 = vpop.xlane.xlu0 %787  ;;  %v849_v9 = vld [vmem:[#allocation4 + $0x38] sm:$0xff] }
 0x25e   :  { %v790_v58 = vpop.xlane.xlu1 %789  ;;  %v812_v28 = vadd.f32 %v788_v51, %v764_v45  ;;  %v942_v51 = vmul.f32 %v2987_v36, %v846_v6 }
 0x25f   :  { %v813_v48 = vadd.f32 %v790_v58, %v765_v15  ;;  %v847_v58 = vld [vmem:[#allocation4 + $0x20] sm:$0xff] }
 0x260   :  { %829 = vst.msk [vmem:[#allocation3 + $0x38] sm:$0xff] %vm3390_vm1, %v812_v28 }
 0x261   :  { %830 = vst.msk [vmem:[#allocation3 + $0x40] sm:$0xff] %vm3391_vm7, %v813_v48  ;;  %v792_v52 = vpop.xlane.xlu0 %791  ;;  %v945_v48 = vmul.f32 %v2993_v17, %v849_v9  ;;  %v852_v17 = vld [vmem:[#allocation4 + $0x78] sm:$0xff] }
 0x262   :  { %v794_v59 = vpop.xlane.xlu1 %793  ;;  %v814_v63 = vadd.f32 %v792_v52, %v766_v2 }
 0x263   :  { %v815_v7 = vadd.f32 %v794_v59, %v767_v1  ;;  %v943_v1 = vmul.f32 %v2989_v60, %v847_v58  ;;  %v842_v59 = vld [vmem:[#allocation4 + $0x50] sm:$0xff]  ;;  %v850_v60 = vld [vmem:[#allocation4 + $0x60] sm:$0xff] }
 0x264   :  { %831 = vst.msk [vmem:[#allocation3 + $0x48] sm:$0xff] %vm3392_vm4, %v814_v63  ;;  %v940_v63 = vmul.f32 %v2983_v55, %v844_v23  ;;  %v939_v55 = vmul.f32 %v2981_v46, %v843_v22  ;;  %v946_v32 = vmul.f32 %v2995_v61, %v850_v60 }
 0x265   :  { %832 = vst.msk [vmem:[#allocation3 + $0x50] sm:$0xff] %vm3393_vm8, %v815_v7  ;;  %v796_v39 = vpop.xlane.xlu0 %795 }
 0x266   :  { %v798_v29 = vpop.xlane.xlu1 %797  ;;  %v816_v35 = vadd.f32 %v796_v39, %v768_v37 }
 0x267   :  { %v817_v62 = vadd.f32 %v798_v29, %v769_v38  ;;  %v938_v38 = vmul.f32 %v2979_v4, %v842_v59 }
 0x268   :  { %833 = vst.msk [vmem:[#allocation3 + $0x58] sm:$0xff] %vm3394_vm11, %v816_v35  ;;  %v941_v35 = vmul.f32 %v2985_v30, %v845_v56 }
 0x269   :  { %834 = vst.msk [vmem:[#allocation3 + $0x60] sm:$0xff] %vm3396_vm6, %v817_v62  ;;  %v800_v26 = vpop.xlane.xlu0 %799 }
 0x26a   :  { %v802_v53 = vpop.xlane.xlu1 %801  ;;  %v818_v49 = vadd.f32 %v800_v26, %v770_v19  ;;  %v853_v19 = vld [vmem:[#allocation4 + $0x28] sm:$0xff] }
 0x26b   :  { %v819_v54 = vadd.f32 %v802_v53, %v771_v43 }
 0x26c   :  { %835 = vst.msk [vmem:[#allocation3 + $0x68] sm:$0xff] %vm3397_vm13, %v818_v49  ;;  %v851_v49 = vld [vmem:[#allocation4 + $0x70] sm:$0xff] }
 0x26d   :  { %836 = vst.msk [vmem:[#allocation3 + $0x70] sm:$0xff] %vm3398_vm10, %v819_v54  ;;  %v804_v14 = vpop.xlane.xlu0 %803  ;;  %v947_v25 = vmul.f32 %v2998_v34, %v851_v49 }
 0x26e   :  { %v820_v50 = vadd.f32 %v804_v14, %v772_v41  ;;  %v932_v57 = vpop.permute.xlu1 %931 }
 0x26f   :  { %v949_v14 = vmul.f32 %v932_v57, %v853_v19 }
 0x270   :  { %837 = vst.msk [vmem:[#allocation3 + $0x78] sm:$0xff] %vm3399_vm14, %v820_v50 }
 0x275   :  { %v927_v7 = vpop.permute.xlu0 %926 }
 0x276   :  { %v948_v62 = vmul.f32 %v927_v7, %v852_v17 }
 0x285   :  { %v2039_v40 = vpop.f32.mrf.mxu0 }
 0x286   :  { %v1105_v11 = vadd.f32 %v2039_v40, %v936_v33 }
 0x287   :  { %v1040_v5 = vpop.f32.mrf.mxu0 }
 0x288   :  { %1121 = vst [vmem:[#allocation4 + $0x58] sm:$0xff] %v1105_v11  ;;  %v1103_v27 = vadd.f32 %v1040_v5, %v934_v20 }
 0x289   :  { %v2040_v45 = vpop.f32.mrf.mxu0  ;;  %v2047_v15 = vpop.f32.mrf.mxu1 }
 0x28a   :  { %1119 = vst [vmem:[#allocation4 + $0x30] sm:$0xff] %v1103_v27  ;;  %v1106_v21 = vadd.f32 %v2040_v45, %v937_v10  ;;  %v1113_v31 = vadd.f32 %v2047_v15, %v944_v0 }
 0x28b   :  { %v1043_v28 = vpop.f32.mrf.mxu0  ;;  %v1072_v13 = vpop.f32.mrf.mxu1 }
 0x28c   :  { %1122 = vst [vmem:[#allocation4 + $0x18] sm:$0xff] %v1106_v21  ;;  %1129 = vst [vmem:[#allocation4 + $0x10] sm:$0xff] %v1113_v31  ;;  %v1104_v24 = vadd.f32 %v1043_v28, %v935_v3  ;;  %v1111_v16 = vadd.f32 %v1072_v13, %v942_v51 }
 0x28d   :  { %v2048_v2 = vpop.f32.mrf.mxu1 }
 0x28e   :  { %1120 = vst [vmem:[#allocation4] sm:$0xff] %v1104_v24  ;;  %1127 = vst [vmem:[#allocation4 + $0x40] sm:$0xff] %v1111_v16  ;;  %v1114_v42 = vadd.f32 %v2048_v2, %v945_v48 }
 0x28f   :  { %v1075_v52 = vpop.f32.mrf.mxu1 }
 0x290   :  { %1130 = vst [vmem:[#allocation4 + $0x38] sm:$0xff] %v1114_v42  ;;  %v1112_v36 = vadd.f32 %v1075_v52, %v943_v1 }
 0x292   :  { %1128 = vst [vmem:[#allocation4 + $0x20] sm:$0xff] %v1112_v36 }
 0x295   :  { %v2043_v37 = vpop.f32.mrf.mxu0 }
 0x296   :  { %v1109_v39 = vadd.f32 %v2043_v37, %v940_v63 }
 0x297   :  { %v1056_v29 = vpop.f32.mrf.mxu0 }
 0x298   :  { %1125 = vst [vmem:[#allocation4 + $0x8] sm:$0xff] %v1109_v39  ;;  %v1107_v47 = vadd.f32 %v1056_v29, %v938_v38 }
 0x299   :  { %v2044_v43 = vpop.f32.mrf.mxu0  ;;  %v2051_v26 = vpop.f32.mrf.mxu1 }
 0x29a   :  { %1123 = vst [vmem:[#allocation4 + $0x50] sm:$0xff] %v1107_v47  ;;  %v1110_v53 = vadd.f32 %v2044_v43, %v941_v35  ;;  %v1117_v4 = vadd.f32 %v2051_v26, %v948_v62 }
 0x29b   :  { %v1059_v54 = vpop.f32.mrf.mxu0  ;;  %v1088_v41 = vpop.f32.mrf.mxu1 }
 0x29c   :  { %1126 = vst [vmem:[#allocation4 + $0x48] sm:$0xff] %v1110_v53  ;;  %1133 = vst [vmem:[#allocation4 + $0x78] sm:$0xff] %v1117_v4  ;;  %v1108_v30 = vadd.f32 %v1059_v54, %v939_v55  ;;  %v1115_v50 = vadd.f32 %v1088_v41, %v946_v32 }
 0x29d   :  { %v2052_v18 = vpop.f32.mrf.mxu1 }
 0x29e   :  { %1124 = vst [vmem:[#allocation4 + $0x68] sm:$0xff] %v1108_v30  ;;  %1131 = vst [vmem:[#allocation4 + $0x60] sm:$0xff] %v1115_v50  ;;  %v1118_v33 = vadd.f32 %v2052_v18, %v949_v14 }
 0x29f   :  { %v1091_v46 = vpop.f32.mrf.mxu1 }
 0x2a0   :  { %1134 = vst [vmem:[#allocation4 + $0x28] sm:$0xff] %v1118_v33  ;;  %v1116_v61 = vadd.f32 %v1091_v46, %v947_v25 }
 0x2a2   :  { %1132 = vst [vmem:[#allocation4 + $0x70] sm:$0xff] %v1116_v61 }
 0x2a3 PF:  { %v1156_v8 = vld [vmem:[#allocation3 + $0x10] sm:$0xff]  ;;  %v1154_v44 = vld [vmem:[#allocation3] sm:$0xff]  ;;  %v1157_v40 = vld [vmem:[#allocation3 + $0x18] sm:$0xff]  ;;  %v2272_v20 = vmov 0  }
 0x2a4   :  { %2196 = vset.pattern.permute.xlu1 %v2272_v20  ;;  %2195 = vset.pattern.permute.xlu0 %v2272_v20  ;;  %v1172_v11 = vmax.f32 %v1156_v8, 1e-20  ;;  %v1170_v12 = vmax.f32 %v1154_v44, 1e-20  ;;  %v1173_v6 = vmax.f32 %v1157_v40, 1e-20 }
 0x2a5   :  { %v1155_v5 = vld [vmem:[#allocation3 + $0x8] sm:$0xff]  ;;  %v1158_v0 = vld [vmem:[#allocation3 + $0x20] sm:$0xff]  ;;  %v1161_v45 = vld [vmem:[#allocation3 + $0x38] sm:$0xff] }
 0x2a6   :  { %v1159_v10 = vld [vmem:[#allocation3 + $0x28] sm:$0xff]  ;;  %2205 = vrcp.f32 %v1172_v11  ;;  %v1171_v34 = vmax.f32 %v1155_v5, 1e-20  ;;  %v1174_v9 = vmax.f32 %v1158_v0, 1e-20  ;;  %v1160_v15 = vld [vmem:[#allocation3 + $0x30] sm:$0xff] }
 0x2a7   :  { %2207 = vrcp.f32 %v1170_v12  ;;  %v1175_v27 = vmax.f32 %v1159_v10, 1e-20  ;;  %v1163_v3 = vld [vmem:[#allocation3 + $0x48] sm:$0xff]  ;;  %v1177_v51 = vmax.f32 %v1161_v45, 1e-20  ;;  %v1162_v31 = vld [vmem:[#allocation3 + $0x40] sm:$0xff] }
 0x2a8   :  { %2209 = vrcp.f32 %v1173_v6  ;;  %v1176_v21 = vmax.f32 %v1160_v15, 1e-20  ;;  %v1179_v58 = vmax.f32 %v1163_v3, 1e-20  ;;  %v2197_v28 = vld [vmem:[%s3302_s6 + $0x38] sm:$0xff]   ;;  %v1164_v24 = vld [vmem:[#allocation3 + $0x50] sm:$0xff] }
 0x2a9   :  { %2211 = vrcp.f32 %v1171_v34  ;;  %v1165_v13 = vld [vmem:[#allocation3 + $0x58] sm:$0xff]  ;;  %v1178_v48 = vmax.f32 %v1162_v31, 1e-20  ;;  %2053 = vmatprep.subr.bf16.mxu0 %v2197_v28  ;;  %2101 = vmatprep.subr.bf16.mxu1 %v2197_v28  ;;  %v2198_v16 = vld [vmem:[%s3302_s6 + $0x30] sm:$0xff]   ;;  %v1180_v36 = vmax.f32 %v1164_v24, 1e-20 }
 0x2aa   :  { %2213 = vrcp.f32 %v1175_v27  ;;  %2054 = vmatpush3.bf16.msra.mxu0 %v2197_v28  ;;  %2109 = vmatpush3.bf16.msra.mxu1 %v2197_v28  ;;  %v1181_v42 = vmax.f32 %v1165_v13, 1e-20  ;;  %v1167_v23 = vld [vmem:[#allocation3 + $0x68] sm:$0xff]  ;;  %v1166_v56 = vld [vmem:[#allocation3 + $0x60] sm:$0xff]  ;;  %v1169_v38 = vld [vmem:[#allocation3 + $0x78] sm:$0xff] }
 0x2ab   :  { %2215 = vrcp.f32 %v1174_v9  ;;  %2055 = vmatprep.subr.bf16.mxu0 %v2198_v16  ;;  %2102 = vmatprep.subr.bf16.mxu1 %v2198_v16  ;;  %v2199_v59 = vld [vmem:[%s3302_s6 + $0x28] sm:$0xff]   ;;  %v1183_v17 = vmax.f32 %v1167_v23, 1e-20  ;;  %v1182_v37 = vmax.f32 %v1166_v56, 1e-20  ;;  %v2200_v39 = vld [vmem:[%s3302_s6 + $0x20] sm:$0xff]  }
 0x2ac   :  { %2217 = vrcp.f32 %v1177_v51  ;;  %v1168_v60 = vld [vmem:[#allocation3 + $0x70] sm:$0xff]  ;;  %v1185_v29 = vmax.f32 %v1169_v38, 1e-20  ;;  %v2201_v62 = vld [vmem:[%s3302_s6 + $0x18] sm:$0xff]   ;;  %v2203_v32 = vld [vmem:[%s3302_s6 + $0x8] sm:$0xff]  }
 0x2ad   :  { %2219 = vrcp.f32 %v1176_v21  ;;  %v1184_v57 = vmax.f32 %v1168_v60, 1e-20  ;;  %v2202_v43 = vld [vmem:[%s3302_s6 + $0x10] sm:$0xff]   ;;  %v2204_v49 = vld [vmem:[%s3302_s6] sm:$0xff]   ;;  %v1204_v30 = vld [vmem:[#allocation4 + $0x58] sm:$0xff] }
 0x2ae   :  { %2221 = vrcp.f32 %v1179_v58  ;;  %2056 = vmatpush3.bf16.msra.mxu0 %v2198_v16  ;;  %2110 = vmatpush3.bf16.msra.mxu1 %v2198_v16  ;;  %v1202_v50 = vld [vmem:[#allocation4 + $0x30] sm:$0xff]  ;;  %v1205_v61 = vld [vmem:[#allocation4 + $0x18] sm:$0xff]  ;;  %v1203_v44 = vld [vmem:[#allocation4] sm:$0xff] }
 0x2af   :  { %2223 = vrcp.f32 %v1178_v48  ;;  %2057 = vmatprep.subr.bf16.mxu0 %v2199_v59  ;;  %2103 = vmatprep.subr.bf16.mxu1 %v2199_v59  ;;  %v1207_v34 = vld [vmem:[#allocation4 + $0x68] sm:$0xff]  ;;  %v1206_v27 = vld [vmem:[#allocation4 + $0x50] sm:$0xff] }
 0x2b0   :  { %2225 = vrcp.f32 %v1181_v42  ;;  %v1209_v58 = vld [vmem:[#allocation4 + $0x48] sm:$0xff] }
 0x2b1   :  { %2227 = vrcp.f32 %v1180_v36  ;;  %v1208_v13 = vld [vmem:[#allocation4 + $0x8] sm:$0xff]  ;;  %v1211_v36 = vld [vmem:[#allocation4 + $0x20] sm:$0xff] }
 0x2b2   :  { %2058 = vmatpush3.bf16.msra.mxu0 %v2199_v59  ;;  %2111 = vmatpush3.bf16.msra.mxu1 %v2199_v59  ;;  %2229 = vrcp.f32 %v1183_v17  ;;  %v1210_v59 = vld [vmem:[#allocation4 + $0x40] sm:$0xff] }
 0x2b3   :  { %v2206_v2 = vpop.eup %2205  ;;  %2059 = vmatprep.subr.bf16.mxu0 %v2200_v39  ;;  %2104 = vmatprep.subr.bf16.mxu1 %v2200_v39  ;;  %2231 = vrcp.f32 %v1182_v37 }
 0x2b4   :  { %v2208_v1 = vpop.eup %2207  ;;  %1230 = vperm.xlu1 %2196, %v2206_v2   ;;  %2233 = vrcp.f32 %v1185_v29  ;;  %v1212_v29 = vld [vmem:[#allocation4 + $0x10] sm:$0xff] }
 0x2b5   :  { %v2210_v52 = vpop.eup %2209  ;;  %1220 = vperm.xlu0 %2195, %v2208_v1   ;;  %2235 = vrcp.f32 %v1184_v57 }
 0x2b6   :  { %v2212_v63 = vpop.eup %2211  ;;  %2060 = vmatpush3.bf16.msra.mxu0 %v2200_v39  ;;  %2112 = vmatpush3.bf16.msra.mxu1 %v2200_v39 }
 0x2b7   :  { %v2214_v7 = vpop.eup %2213  ;;  %2061 = vmatprep.subr.bf16.mxu0 %v2201_v62  ;;  %2105 = vmatprep.subr.bf16.mxu1 %v2201_v62 }
 0x2b8   :  { %1235 = vperm.xlu1 %2196, %v2210_v52   ;;  %v2216_v22 = vpop.eup %2215 }
 0x2b9   :  { %1225 = vperm.xlu0 %2195, %v2212_v63   ;;  %v2218_v35 = vpop.eup %2217 }
 0x2ba   :  { %v2220_v47 = vpop.eup %2219  ;;  %2062 = vmatpush3.bf16.msra.mxu0 %v2201_v62  ;;  %2113 = vmatpush3.bf16.msra.mxu1 %v2201_v62 }
 0x2bb   :  { %v2222_v19 = vpop.eup %2221  ;;  %2063 = vmatprep.subr.bf16.mxu0 %v2202_v43  ;;  %2106 = vmatprep.subr.bf16.mxu1 %v2202_v43 }
 0x2bc   :  { %1245 = vperm.xlu1 %2196, %v2214_v7   ;;  %v2224_v26 = vpop.eup %2223 }
 0x2bd   :  { %1240 = vperm.xlu0 %2195, %v2216_v22   ;;  %v2226_v55 = vpop.eup %2225  ;;  %v1213_v22 = vld [vmem:[#allocation4 + $0x38] sm:$0xff] }
 0x2be   :  { %2064 = vmatpush3.bf16.msra.mxu0 %v2202_v43  ;;  %v2228_v53 = vpop.eup %2227  ;;  %2114 = vmatpush3.bf16.msra.mxu1 %v2202_v43 }
 0x2bf   :  { %2065 = vmatprep.subr.bf16.mxu0 %v2203_v32  ;;  %2107 = vmatprep.subr.bf16.mxu1 %v2203_v32  ;;  %v2230_v4 = vpop.eup %2229 }
 0x2c0   :  { %1255 = vperm.xlu1 %2196, %v2218_v35   ;;  %v2232_v54 = vpop.eup %2231 }
 0x2c1   :  { %1250 = vperm.xlu0 %2195, %v2220_v47   ;;  %v2234_v41 = vpop.eup %2233 }
 0x2c2   :  { %2066 = vmatpush3.bf16.msra.mxu0 %v2203_v32  ;;  %2115 = vmatpush3.bf16.msra.mxu1 %v2203_v32  ;;  %v2236_v14 = vpop.eup %2235 }
 0x2c3   :  { %2067 = vmatprep.subr.bf16.mxu0 %v2204_v49  ;;  %2108 = vmatprep.subr.bf16.mxu1 %v2204_v49 }
 0x2c4   :  { %1265 = vperm.xlu1 %2196, %v2222_v19  }
 0x2c5   :  { %1260 = vperm.xlu0 %2195, %v2224_v26  }
 0x2c6   :  { %2068 = vmatpush3.bf16.msra.mxu0 %v2204_v49  ;;  %2116 = vmatpush3.bf16.msra.mxu1 %v2204_v49  ;;  %v1214_v49 = vld [vmem:[#allocation4 + $0x60] sm:$0xff] }
 0x2c8   :  { %1275 = vperm.xlu1 %2196, %v2226_v55  }
 0x2c9   :  { %1270 = vperm.xlu0 %2195, %v2228_v53   ;;  %v1215_v53 = vld [vmem:[#allocation4 + $0x70] sm:$0xff] }
 0x2cc   :  { %1285 = vperm.xlu1 %2196, %v2230_v4  }
 0x2cd   :  { %1280 = vperm.xlu0 %2195, %v2232_v54  }
 0x2d0   :  { %1295 = vperm.xlu1 %2196, %v2234_v41  }
 0x2d1   :  { %1290 = vperm.xlu0 %2195, %v2236_v14  }
 0x32f   :  { %v1231_v18 = vpop.permute.xlu1 %1230 }
 0x330   :  { %v3069_v25 = vmul.f32 %v1231_v18, %v1204_v30  ;;  %v1221_v33 = vpop.permute.xlu0 %1220 }
 0x331   :  { %v3071_v46 = vmul.f32 %v1221_v33, %v1202_v50 }
 0x332   :  { %v1332_v8 = vmin.f32 %v3069_v25, 0.0  ;;  %vm1316_vm0 = vcmp.gt.f32.partialorder %v3069_v25, 0.0 }
 0x333   :  { %v1330_v40 = vmin.f32 %v3071_v46, 0.0  ;;  %v1236_v20 = vpop.permute.xlu1 %1235  ;;  %vm1314_vm15 = vcmp.gt.f32.partialorder %v3071_v46, 0.0 }
 0x334   :  { %v1350_v11 = vmul.f32 1.442695, %v1332_v8  ;;  %v3075_v12 = vmul.f32 %v1236_v20, %v1205_v61  ;;  %v1226_v6 = vpop.permute.xlu0 %1225 }
 0x335   :  { %v1346_v5 = vmul.f32 1.442695, %v1330_v40  ;;  %v3077_v10 = vmul.f32 %v1226_v6, %v1203_v44 }
 0x336   :  { %2237 = vpow2.f32 %v1350_v11  ;;  %v1333_v0 = vmin.f32 %v3075_v12, 0.0  ;;  %vm1317_vm3 = vcmp.gt.f32.partialorder %v3075_v12, 0.0  ;;  %v1217_v11 = vld [vmem:[#allocation4 + $0x28] sm:$0xff] }
 0x337   :  { %2239 = vpow2.f32 %v1346_v5  ;;  %v1331_v9 = vmin.f32 %v3077_v10, 0.0  ;;  %v1246_v45 = vpop.permute.xlu1 %1245  ;;  %vm1315_vm9 = vcmp.gt.f32.partialorder %v3077_v10, 0.0 }
 0x338   :  { %v1352_v15 = vmul.f32 1.442695, %v1333_v0  ;;  %v3081_v3 = vmul.f32 %v1246_v45, %v1207_v34  ;;  %v1241_v51 = vpop.permute.xlu0 %1240  ;;  %v1216_v34 = vld [vmem:[#allocation4 + $0x78] sm:$0xff] }
 0x339   :  { %v1348_v21 = vmul.f32 1.442695, %v1331_v9  ;;  %v3083_v31 = vmul.f32 %v1241_v51, %v1206_v27 }
 0x33a   :  { %2241 = vpow2.f32 %v1352_v15  ;;  %v1335_v28 = vmin.f32 %v3081_v3, 0.0  ;;  %vm1319_vm12 = vcmp.gt.f32.partialorder %v3081_v3, 0.0 }
 0x33b   :  { %2243 = vpow2.f32 %v1348_v21  ;;  %v1334_v48 = vmin.f32 %v3083_v31, 0.0  ;;  %v1256_v24 = vpop.permute.xlu1 %1255  ;;  %vm1318_vm5 = vcmp.gt.f32.partialorder %v3083_v31, 0.0 }
 0x33c   :  { %v1356_v16 = vmul.f32 1.442695, %v1335_v28  ;;  %v3087_v2 = vmul.f32 %v1256_v24, %v1209_v58  ;;  %v1251_v1 = vpop.permute.xlu0 %1250 }
 0x33d   :  { %v1354_v42 = vmul.f32 1.442695, %v1334_v48  ;;  %v3089_v52 = vmul.f32 %v1251_v1, %v1208_v13 }
 0x33e   :  { %2245 = vpow2.f32 %v1356_v16  ;;  %v1337_v23 = vmin.f32 %v3087_v2, 0.0  ;;  %vm1321_vm2 = vcmp.gt.f32.partialorder %v3087_v2, 0.0 }
 0x33f   :  { %2247 = vpow2.f32 %v1354_v42  ;;  %v1336_v63 = vmin.f32 %v3089_v52, 0.0  ;;  %v1266_v56 = vpop.permute.xlu1 %1265  ;;  %vm1320_vm1 = vcmp.gt.f32.partialorder %v3089_v52, 0.0 }
 0x340   :  { %v1360_v17 = vmul.f32 1.442695, %v1337_v23  ;;  %v3093_v7 = vmul.f32 %v1266_v56, %v1211_v36  ;;  %v1261_v37 = vpop.permute.xlu0 %1260 }
 0x341   :  { %v1358_v38 = vmul.f32 1.442695, %v1336_v63  ;;  %v3095_v39 = vmul.f32 %v1261_v37, %v1210_v59 }
 0x342   :  { %2249 = vpow2.f32 %v1360_v17  ;;  %v1339_v60 = vmin.f32 %v3093_v7, 0.0  ;;  %vm1323_vm7 = vcmp.gt.f32.partialorder %v3093_v7, 0.0 }
 0x343   :  { %v2238_v35 = vpop.eup %2237  ;;  %2251 = vpow2.f32 %v1358_v38  ;;  %v1338_v57 = vmin.f32 %v3095_v39, 0.0  ;;  %v1276_v62 = vpop.permute.xlu1 %1275  ;;  %vm1322_vm4 = vcmp.gt.f32.partialorder %v3095_v39, 0.0 }
 0x344   :  { %v2240_v47 = vpop.eup %2239  ;;  %v1364_v19 = vmul.f32 1.442695, %v1339_v60  ;;  %v3099_v43 = vmul.f32 %v1276_v62, %v1213_v22  ;;  %v1271_v26 = vpop.permute.xlu0 %1270  ;;  %v1886_v54 = vadd.f32 -1.0, %v2238_v35 }
 0x345   :  { %v1362_v55 = vmul.f32 1.442695, %v1338_v57  ;;  %v3101_v32 = vmul.f32 %v1271_v26, %v1212_v29  ;;  %v1884_v50 = vadd.f32 -1.0, %v2240_v47 }
 0x346   :  { %2253 = vpow2.f32 %v1364_v19  ;;  %v1341_v4 = vmin.f32 %v3099_v43, 0.0  ;;  %v1396_v0 = vsel %vm1316_vm0, %v3069_v25, %v1886_v54  ;;  %vm1325_vm8 = vcmp.gt.f32.partialorder %v3099_v43, 0.0 }
 0x347   :  { %v2242_v41 = vpop.eup %2241  ;;  %2255 = vpow2.f32 %v1362_v55  ;;  %v1340_v14 = vmin.f32 %v3101_v32, 0.0  ;;  %v1286_v30 = vpop.permute.xlu1 %1285  ;;  %v1394_v51 = vsel %vm1314_vm15, %v3071_v46, %v1884_v50  ;;  %vm1324_vm11 = vcmp.gt.f32.partialorder %v3101_v32, 0.0 }
 0x348   :  { %v2244_v18 = vpop.eup %2243  ;;  %v1368_v33 = vmul.f32 1.442695, %v1341_v4  ;;  %v3108_v61 = vmul.f32 %v1286_v30, %v1215_v53  ;;  %v1281_v8 = vpop.permute.xlu0 %1280  ;;  %v1887_v44 = vadd.f32 -1.0, %v2242_v41  ;;  %vm3400_vm0 = vcmask 7168  }
 0x349   :  { %v1366_v40 = vmul.f32 1.442695, %v1340_v14  ;;  %v3110_v20 = vmul.f32 %v1281_v8, %v1214_v49  ;;  %v1885_v6 = vadd.f32 -1.0, %v2244_v18  ;;  %vm3401_vm15 = vmmov %vm3400_vm0 }
 0x34a   :  { %2257 = vpow2.f32 %v1368_v33  ;;  %v1343_v5 = vmin.f32 %v3108_v61, 0.0  ;;  %v1397_v27 = vsel %vm1317_vm3, %v3075_v12, %v1887_v44  ;;  %vm1327_vm6 = vcmp.gt.f32.partialorder %v3108_v61, 0.0  ;;  %vm3402_vm3 = vmmov %vm3400_vm0 }
 0x34b   :  { %v2246_v9 = vpop.eup %2245  ;;  %2259 = vpow2.f32 %v1366_v40  ;;  %v1342_v45 = vmin.f32 %v3110_v20, 0.0  ;;  %v1296_v15 = vpop.permute.xlu1 %1295  ;;  %v1395_v21 = vsel %vm1315_vm9, %v3077_v10, %v1885_v6  ;;  %v1411_v25 = vpack.c.bf16 %v1397_v27, %v1396_v0  ;;  %vm3403_vm9 = vmmov %vm3400_vm0 }
 0x34c   :  { %v2248_v58 = vpop.eup %2247  ;;  %v1372_v28 = vmul.f32 1.442695, %v1343_v5  ;;  %v3123_v13 = vmul.f32 %v1296_v15, %v1217_v11  ;;  %v1291_v48 = vpop.permute.xlu0 %1290  ;;  %v1410_v24 = vpack.c.bf16 %v1395_v21, %v1394_v51  ;;  %v1889_v42 = vadd.f32 -1.0, %v2246_v9 }
 0x34d   :  { %v1370_v16 = vmul.f32 1.442695, %v1342_v45  ;;  %v3125_v12 = vmul.f32 %v1291_v48, %v1216_v34  ;;  %v1888_v1 = vadd.f32 -1.0, %v2248_v58  ;;  %vm1326_vm13 = vcmp.gt.f32.partialorder %v3110_v20, 0.0  ;;  %v3162_v34 = vld [vmem:[%s3304_s8] ss:$0 sm:$0xff] }
 0x34e   :  { %2261 = vpow2.f32 %v1372_v28  ;;  %v1345_v36 = vmin.f32 %v3123_v13, 0.0  ;;  %2069 = vmatprep.mubr.bf16.mxu0 %v1410_v24  ;;  %v1399_v56 = vsel %vm1319_vm12, %v3081_v3, %v1889_v42  ;;  %vm1329_vm10 = vcmp.gt.f32.partialorder %v3123_v13, 0.0  ;;  %vm3405_vm12 = vmmov %vm3400_vm0 }
 0x34f   :  { %v2250_v46 = vpop.eup %2249  ;;  %2263 = vpow2.f32 %v1370_v16  ;;  %v1344_v10 = vmin.f32 %v3125_v12, 0.0  ;;  %2070 = vmatmul.mubr.bf16.vlgmr.msra.gmra.mxu0 %v1411_v25  ;;  %v1398_v23 = vsel %vm1318_vm5, %v3083_v31, %v1888_v1  ;;  %vm1328_vm14 = vcmp.gt.f32.partialorder %v3125_v12, 0.0  ;;  %vm3404_vm5 = vmmov %vm3400_vm0 }
 0x350   :  { %v2252_v59 = vpop.eup %2251  ;;  %v1376_v63 = vmul.f32 1.442695, %v1345_v36  ;;  %v1891_v17 = vadd.f32 -1.0, %v2250_v46  ;;  %v1412_v38 = vpack.c.bf16 %v1399_v56, %v1398_v23 }
 0x351   :  { %v1374_v37 = vmul.f32 1.442695, %v1344_v10  ;;  %v1890_v22 = vadd.f32 -1.0, %v2252_v59 }
 0x352   :  { %2265 = vpow2.f32 %v1376_v63  ;;  %v1401_v60 = vsel %vm1321_vm2, %v3087_v2, %v1891_v17  ;;  %2073 = vmatprep.mubr.bf16.mxu0 %v1412_v38  ;;  %vm3406_vm2 = vmmov %vm3400_vm0 }
 0x353   :  { %v2254_v29 = vpop.eup %2253  ;;  %2267 = vpow2.f32 %v1374_v37  ;;  %v1400_v31 = vsel %vm1320_vm1, %v3089_v52, %v1890_v22  ;;  %vm3407_vm1 = vmmov %vm3400_vm0 }
 0x354   :  { %v2256_v35 = vpop.eup %2255  ;;  %v1413_v57 = vpack.c.bf16 %v1401_v60, %v1400_v31  ;;  %v1893_v62 = vadd.f32 -1.0, %v2254_v29 }
 0x355   :  { %v1892_v3 = vadd.f32 -1.0, %v2256_v35 }
 0x356   :  { %v1403_v47 = vsel %vm1323_vm7, %v3093_v7, %v1893_v62  ;;  %vm3408_vm7 = vmmov %vm3400_vm0 }
 0x357   :  { %v2258_v19 = vpop.eup %2257  ;;  %2074 = vmatmul.mubr.bf16.gmra.mxu0 %v1413_v57  ;;  %v1402_v26 = vsel %vm1322_vm4, %v3095_v39, %v1892_v3  ;;  %vm3409_vm4 = vmmov %vm3400_vm0 }
 0x358   :  { %v2260_v2 = vpop.eup %2259  ;;  %v1414_v55 = vpack.c.bf16 %v1403_v47, %v1402_v26  ;;  %v1895_v53 = vadd.f32 -1.0, %v2258_v19 }
 0x359   :  { %v1894_v52 = vadd.f32 -1.0, %v2260_v2 }
 0x35a   :  { %2077 = vmatprep.mubr.bf16.mxu1 %v1414_v55  ;;  %v1405_v4 = vsel %vm1325_vm8, %v3099_v43, %v1895_v53  ;;  %vm3410_vm8 = vmmov %vm3400_vm0 }
 0x35b   :  { %v2262_v49 = vpop.eup %2261  ;;  %v1404_v54 = vsel %vm1324_vm11, %v3101_v32, %v1894_v52  ;;  %vm3411_vm11 = vmmov %vm3400_vm0 }
 0x35c   :  { %v2264_v41 = vpop.eup %2263  ;;  %v1415_v7 = vpack.c.bf16 %v1405_v4, %v1404_v54  ;;  %v1897_v14 = vadd.f32 -1.0, %v2262_v49 }
 0x35d   :  { %v1896_v39 = vadd.f32 -1.0, %v2264_v41 }
 0x35e   :  { %2078 = vmatmul.mubr.bf16.vlgmr.msra.gmra.mxu1 %v1415_v7  ;;  %v1407_v30 = vsel %vm1327_vm6, %v3108_v61, %v1897_v14  ;;  %v3156_v61 = vld [vmem:[%s3303_s7] ss:$0 sm:$0xff]  ;;  %vm3412_vm6 = vmmov %vm3400_vm0 }
 0x35f   :  { %v2266_v50 = vpop.eup %2265  ;;  %v1406_v18 = vsel %vm1326_vm13, %v3110_v20, %v1896_v39  ;;  %vm3413_vm13 = vmmov %vm3400_vm0 }
 0x360   :  { %v2268_v33 = vpop.eup %2267  ;;  %v1416_v8 = vpack.c.bf16 %v1407_v30, %v1406_v18  ;;  %v1899_v43 = vadd.f32 -1.0, %v2266_v50 }
 0x361   :  { %v1898_v32 = vadd.f32 -1.0, %v2268_v33 }
 0x362   :  { %2081 = vmatprep.mubr.bf16.mxu1 %v1416_v8  ;;  %v1409_v44 = vsel %vm1329_vm10, %v3123_v13, %v1899_v43  ;;  %vm3414_vm10 = vmmov %vm3400_vm0 }
 0x363   :  { %v1408_v40 = vsel %vm1328_vm14, %v3125_v12, %v1898_v32  ;;  %vm3415_vm14 = vmmov %vm3400_vm0 }
 0x364   :  { %v1417_v11 = vpack.c.bf16 %v1409_v44, %v1408_v40 }
 0x366   :  { %2082 = vmatmul.mubr.bf16.gmra.mxu1 %v1417_v11 }
 0x40f   :  { %v2071_v20 = vpop.f32.mrf.mxu0 }
 0x410   :  { %v1588_v6 = vmul.f32 %v2071_v20, %v3156_v61  ;;  %v1676_v9 = vmul.f32 %v2071_v20, %v3162_v34 }
 0x411   :  { %v1516_v5 = vpop.f32.mrf.mxu0 }
 0x412   :  { %1606 = vadd.xlane.f32.xlu0 %v1588_v6  ;;  %v1586_v21 = vmul.f32 %v3156_v61, %v1516_v5  ;;  %v1674_v48 = vmul.f32 %v3162_v34, %v1516_v5 }
 0x413   :  { %v3164_v0 = vpop.f32.mrf.mxu0 }
 0x414   :  { %v1950_v27 = vpack.c.bf16 %v3164_v0, %v2071_v20  ;;  %v1589_v36 = vmul.f32 %v3164_v0, %v3156_v61  ;;  %v1677_v52 = vmul.f32 %v3164_v0, %v3162_v34 }
 0x415   :  { %v1519_v45 = vpop.f32.mrf.mxu0 }
 0x416   :  { %1982 = vst [vmem:[%s3305_s9 + $0x8] sm:$0xff] %v1950_v27   ;;  %v1945_v15 = vpack.c.bf16 %v1519_v45, %v1516_v5  ;;  %1694 = vadd.xlane.f32.xlu0 %v1676_v9  ;;  %v1587_v37 = vmul.f32 %v3156_v61, %v1519_v45  ;;  %v1675_v62 = vmul.f32 %v3162_v34, %v1519_v45 }
 0x417   :  { %v3171_v51 = vpop.f32.mrf.mxu0 }
 0x418   :  { %1946 = vst [vmem:[%s3305_s9] sm:$0xff] %v1945_v15   ;;  %v1592_v31 = vmul.f32 %v3171_v51, %v3156_v61  ;;  %v1680_v49 = vmul.f32 %v3171_v51, %v3162_v34 }
 0x419   :  { %v1532_v58 = vpop.f32.mrf.mxu0 }
 0x41a   :  { %1602 = vadd.xlane.f32.xlu0 %v1586_v21  ;;  %v1590_v26 = vmul.f32 %v3156_v61, %v1532_v58  ;;  %v1678_v4 = vmul.f32 %v3162_v34, %v1532_v58 }
 0x41b   :  { %v2076_v28 = vpop.f32.mrf.mxu0 }
 0x41c   :  { %v1960_v13 = vpack.c.bf16 %v2076_v28, %v3171_v51  ;;  %v1593_v19 = vmul.f32 %v2076_v28, %v3156_v61  ;;  %v1681_v41 = vmul.f32 %v2076_v28, %v3162_v34 }
 0x41d   :  { %v1535_v24 = vpop.f32.mrf.mxu0 }
 0x41e   :  { %1984 = vst [vmem:[%s3305_s9 + $0x18] sm:$0xff] %v1960_v13   ;;  %v1955_v25 = vpack.c.bf16 %v1535_v24, %v1532_v58  ;;  %1690 = vadd.xlane.f32.xlu0 %v1674_v48  ;;  %v2079_v16 = vpop.f32.mrf.mxu1  ;;  %v3183_v12 = vmul.f32 %v3162_v34, %v1535_v24  ;;  %v1591_v53 = vmul.f32 %v3156_v61, %v1535_v24 }
 0x41f   :  { %v1596_v1 = vmul.f32 %v2079_v16, %v3156_v61  ;;  %v1684_v39 = vmul.f32 %v2079_v16, %v3162_v34 }
 0x420   :  { %1983 = vst [vmem:[%s3305_s9 + $0x10] sm:$0xff] %v1955_v25   ;;  %v1548_v42 = vpop.f32.mrf.mxu1 }
 0x421   :  { %1622 = vadd.xlane.f32.xlu1 %v1596_v1  ;;  %v1594_v23 = vmul.f32 %v3156_v61, %v1548_v42  ;;  %v1682_v7 = vmul.f32 %v3162_v34, %v1548_v42 }
 0x422   :  { %1608 = vadd.xlane.f32.xlu0 %v1589_v36  ;;  %v2080_v46 = vpop.f32.mrf.mxu1 }
 0x423   :  { %v1970_v10 = vpack.c.bf16 %v2080_v46, %v2079_v16  ;;  %v1597_v59 = vmul.f32 %v2080_v46, %v3156_v61  ;;  %v1685_v30 = vmul.f32 %v2080_v46, %v3162_v34 }
 0x424   :  { %v1551_v63 = vpop.f32.mrf.mxu1 }
 0x425   :  { %1986 = vst [vmem:[%s3305_s9 + $0x28] sm:$0xff] %v1970_v10   ;;  %v1965_v56 = vpack.c.bf16 %v1551_v63, %v1548_v42  ;;  %1618 = vadd.xlane.f32.xlu1 %v1594_v23  ;;  %v1595_v22 = vmul.f32 %v3156_v61, %v1551_v63  ;;  %v1683_v14 = vmul.f32 %v3162_v34, %v1551_v63 }
 0x426   :  { %1624 = vadd.xlane.f32.xlu0 %v1597_v59  ;;  %v2083_v17 = vpop.f32.mrf.mxu1 }
 0x427   :  { %1985 = vst [vmem:[%s3305_s9 + $0x20] sm:$0xff] %v1965_v56   ;;  %v1600_v47 = vmul.f32 %v2083_v17, %v3156_v61  ;;  %v1688_v18 = vmul.f32 %v2083_v17, %v3162_v34 }
 0x428   :  { %v1564_v38 = vpop.f32.mrf.mxu1 }
 0x429   :  { %1604 = vadd.xlane.f32.xlu1 %v1587_v37  ;;  %v1598_v55 = vmul.f32 %v3156_v61, %v1564_v38  ;;  %v1686_v50 = vmul.f32 %v3162_v34, %v1564_v38 }
 0x42a   :  { %1620 = vadd.xlane.f32.xlu0 %v1595_v22  ;;  %v2084_v60 = vpop.f32.mrf.mxu1 }
 0x42b   :  { %v1980_v29 = vpack.c.bf16 %v2084_v60, %v2083_v17  ;;  %v1689_v35 = vmul.f32 %v2084_v60, %v3162_v34  ;;  %v1601_v2 = vmul.f32 %v2084_v60, %v3156_v61 }
 0x42c   :  { %v1567_v57 = vpop.f32.mrf.mxu1 }
 0x42d   :  { %1988 = vst [vmem:[%s3305_s9 + $0x38] sm:$0xff] %v1980_v29   ;;  %v1975_v3 = vpack.c.bf16 %v1567_v57, %v1564_v38  ;;  %1614 = vadd.xlane.f32.xlu1 %v1592_v31  ;;  %v1599_v54 = vmul.f32 %v3156_v61, %v1567_v57  ;;  %v1687_v33 = vmul.f32 %v3162_v34, %v1567_v57 }
 0x42e   :  { %1692 = vadd.xlane.f32.xlu0 %v1675_v62 }
 0x42f   :  { %1987 = vst [vmem:[%s3305_s9 + $0x30] sm:$0xff] %v1975_v3  }
 0x431   :  { %1630 = vadd.xlane.f32.xlu1 %v1600_v47 }
 0x432   :  { %1616 = vadd.xlane.f32.xlu0 %v1593_v19 }
 0x435   :  { %1610 = vadd.xlane.f32.xlu1 %v1590_v26 }
 0x436   :  { %1632 = vadd.xlane.f32.xlu0 %v1601_v2 }
 0x439   :  { %1626 = vadd.xlane.f32.xlu1 %v1598_v55 }
 0x43a   :  { %1612 = vadd.xlane.f32.xlu0 %v1591_v53 }
 0x43e   :  { %1696 = vadd.xlane.f32.xlu0 %v1677_v52 }
 0x442   :  { %1698 = vadd.xlane.f32.xlu0 %v1678_v4 }
 0x446   :  { %1702 = vadd.xlane.f32.xlu0 %v1680_v49 }
 0x44a   :  { %1628 = vadd.xlane.f32.xlu0 %v1599_v54 }
 0x44e   :  { %1704 = vadd.xlane.f32.xlu0 %v1681_v41 }
 0x452   :  { %1706 = vadd.xlane.f32.xlu0 %v1682_v7 }
 0x456   :  { %1708 = vadd.xlane.f32.xlu0 %v1683_v14 }
 0x45a   :  { %1710 = vadd.xlane.f32.xlu0 %v1684_v39 }
 0x45e   :  { %1712 = vadd.xlane.f32.xlu0 %v1685_v30 }
 0x462   :  { %1714 = vadd.xlane.f32.xlu0 %v1686_v50 }
 0x466   :  { %1718 = vadd.xlane.f32.xlu0 %v1688_v18 }
 0x46a   :  { %1700 = vadd.xlane.f32.xlu0 %v3183_v12 }
 0x46e   :  { %1716 = vadd.xlane.f32.xlu0 %v1687_v33 }
 0x472   :  { %1720 = vadd.xlane.f32.xlu0 %v1689_v35 }
 0x49b   :  { %v1607_v8 = vpop.xlane.xlu0 %1606 }
 0x49f   :  { %v1695_v43 = vpop.xlane.xlu0 %1694 }
 0x4a0   :  { %1725 = vst.msk [vmem:[%s3307_s11 + $0x10] sm:$0xff] %vm3400_vm0, %v1695_v43 }
 0x4a3   :  { %v1603_v32 = vpop.xlane.xlu0 %1602 }
 0x4a4   :  { %1634 = vxpose.xlu1.b32.start [1/16] (narrow) %v1603_v32, 8 }
 0x4a7   :  { %v1691_v44 = vpop.xlane.xlu0 %1690 }
 0x4a8   :  { %1723 = vst.msk [vmem:[%s3307_s11] sm:$0xff] %vm3401_vm15, %v1691_v44 }
 0x4aa   :  { %v1623_v40 = vpop.xlane.xlu1 %1622 }
 0x4ab   :  { %v1609_v11 = vpop.xlane.xlu0 %1608 }
 0x4ae   :  { %v1619_v61 = vpop.xlane.xlu1 %1618 }
 0x4af   :  { %v1625_v20 = vpop.xlane.xlu0 %1624 }
 0x4b2   :  { %v1605_v6 = vpop.xlane.xlu1 %1604 }
 0x4b3   :  { %1635 = vxpose.xlu1.b32.cont [2/16] (narrow) %v1605_v6, 8  ;;  %v1621_v5 = vpop.xlane.xlu0 %1620 }
 0x4b6   :  { %v1615_v34 = vpop.xlane.xlu1 %1614 }
 0x4b7   :  { %1636 = vxpose.xlu1.b32.cont [3/16] (narrow) %v1607_v8, 8  ;;  %v1693_v0 = vpop.xlane.xlu0 %1692 }
 0x4b8   :  { %1724 = vst.msk [vmem:[%s3307_s11 + $0x8] sm:$0xff] %vm3402_vm3, %v1693_v0 }
 0x4ba   :  { %v1631_v27 = vpop.xlane.xlu1 %1630 }
 0x4bb   :  { %1637 = vxpose.xlu1.b32.cont [4/16] (narrow) %v1609_v11, 8  ;;  %v1617_v9 = vpop.xlane.xlu0 %1616 }
 0x4be   :  { %v1611_v45 = vpop.xlane.xlu1 %1610 }
 0x4bf   :  { %1638 = vxpose.xlu1.b32.cont [5/16] (narrow) %v1611_v45, 8  ;;  %v1633_v15 = vpop.xlane.xlu0 %1632 }
 0x4c2   :  { %v1627_v25 = vpop.xlane.xlu1 %1626 }
 0x4c3   :  { %v1613_v51 = vpop.xlane.xlu0 %1612 }
 0x4c4   :  { %1639 = vxpose.xlu1.b32.cont [6/16] (narrow) %v1613_v51, 8 }
 0x4c7   :  { %v1697_v21 = vpop.xlane.xlu0 %1696 }
 0x4c8   :  { %1726 = vst.msk [vmem:[%s3307_s11 + $0x18] sm:$0xff] %vm3403_vm9, %v1697_v21  ;;  %1640 = vxpose.xlu1.b32.cont [7/16] (narrow) %v1615_v34, 8 }
 0x4cb   :  { %v1699_v58 = vpop.xlane.xlu0 %1698 }
 0x4cc   :  { %1727 = vst.msk [vmem:[%s3307_s11 + $0x20] sm:$0xff] %vm3404_vm5, %v1699_v58  ;;  %1641 = vxpose.xlu1.b32.cont [8/16] (narrow) %v1617_v9, 8 }
 0x4cf   :  { %v1703_v28 = vpop.xlane.xlu0 %1702 }
 0x4d0   :  { %1729 = vst.msk [vmem:[%s3307_s11 + $0x30] sm:$0xff] %vm3405_vm12, %v1703_v28  ;;  %1642 = vxpose.xlu1.b32.cont [9/16] (narrow) %v1619_v61, 8 }
 0x4d3   :  { %v1629_v13 = vpop.xlane.xlu0 %1628 }
 0x4d4   :  { %1643 = vxpose.xlu1.b32.cont [10/16] (narrow) %v1621_v5, 8 }
 0x4d7   :  { %v1705_v48 = vpop.xlane.xlu0 %1704 }
 0x4d8   :  { %1730 = vst.msk [vmem:[%s3307_s11 + $0x38] sm:$0xff] %vm3406_vm2, %v1705_v48  ;;  %1644 = vxpose.xlu1.b32.cont [11/16] (narrow) %v1623_v40, 8 }
 0x4db   :  { %v1707_v24 = vpop.xlane.xlu0 %1706 }
 0x4dc   :  { %1731 = vst.msk [vmem:[%s3307_s11 + $0x40] sm:$0xff] %vm3407_vm1, %v1707_v24  ;;  %1645 = vxpose.xlu1.b32.cont [12/16] (narrow) %v1625_v20, 8 }
 0x4df   :  { %v1709_v16 = vpop.xlane.xlu0 %1708 }
 0x4e0   :  { %1732 = vst.msk [vmem:[%s3307_s11 + $0x48] sm:$0xff] %vm3408_vm7, %v1709_v16  ;;  %1646 = vxpose.xlu1.b32.cont [13/16] (narrow) %v1627_v25, 8 }
 0x4e3   :  { %v1711_v12 = vpop.xlane.xlu0 %1710 }
 0x4e4   :  { %1733 = vst.msk [vmem:[%s3307_s11 + $0x50] sm:$0xff] %vm3409_vm4, %v1711_v12  ;;  %1647 = vxpose.xlu1.b32.cont [14/16] (narrow) %v1629_v13, 8 }
 0x4e7   :  { %v1713_v1 = vpop.xlane.xlu0 %1712 }
 0x4e8   :  { %1734 = vst.msk [vmem:[%s3307_s11 + $0x58] sm:$0xff] %vm3410_vm8, %v1713_v1  ;;  %1648 = vxpose.xlu1.b32.cont [15/16] (narrow) %v1631_v27, 8 }
 0x4eb   :  { %v1715_v42 = vpop.xlane.xlu0 %1714 }
 0x4ec   :  { %1735 = vst.msk [vmem:[%s3307_s11 + $0x60] sm:$0xff] %vm3411_vm11, %v1715_v42  ;;  %1649 = vxpose.xlu1.b32.end [16/16] (narrow) %v1633_v15, 8 }
 0x4ef   :  { %v1719_v36 = vpop.xlane.xlu0 %1718 }
 0x4f0   :  { %1737 = vst.msk [vmem:[%s3307_s11 + $0x70] sm:$0xff] %vm3412_vm6, %v1719_v36 }
 0x4f3   :  { %v1701_v46 = vpop.xlane.xlu0 %1700 }
 0x4f4   :  { %1728 = vst.msk [vmem:[%s3307_s11 + $0x28] sm:$0xff] %vm3413_vm13, %v1701_v46 }
 0x4f7   :  { %v1717_v10 = vpop.xlane.xlu0 %1716 }
 0x4f8   :  { %1736 = vst.msk [vmem:[%s3307_s11 + $0x68] sm:$0xff] %vm3414_vm10, %v1717_v10 }
 0x4fb   :  { %v1721_v23 = vpop.xlane.xlu0 %1720 }
 0x4fc   :  { %1738 = vst.msk [vmem:[%s3307_s11 + $0x78] sm:$0xff] %vm3415_vm14, %v1721_v23 }
 0x52c   :  { %v1650_v59 = vpop.trf.xlu1 }
 0x52d   :  { %1666 = vst [vmem:[%s3306_s10] sm:$0x1] %v1650_v59 }

// kernel: gat_model_forward.6
= control target key start
LH: loop header
LB: loop body
LE: loop exit
PB: predicated region body
PF: predicated region fallthrough
CT: control target
= control target key end

     0   :  { %vm2476_vm0 = vcmask 7168   ;;  %v1694_v0 = vmov -inf   ;;  %v1695_v1 = vmov 0.0   ;;  %s2469_s0 = inlined_call_operand.<no memory space> [shape: s32[1], index: 0, kind: input, shape index: {}]   ;;  %s2470_s1 = inlined_call_operand.<no memory space> [shape: s32[1], index: 1, kind: input, shape index: {}]   ;;  %s2471_s2 = inlined_call_operand.vmem [shape: f32[128,1], index: 2, kind: input, shape index: {}]   ;;  %s2472_s6 = inlined_call_operand.vmem [shape: bf16[128,128], index: 6, kind: output, shape index: {}]   ;;  %s2473_s3 = inlined_call_operand.vmem [shape: f32[1,128], index: 3, kind: input, shape index: {}]   ;;  %s2474_s5 = inlined_call_operand.vmem [shape: s8[128,128], index: 5, kind: input, shape index: {}]   ;;  %s2475_s4 = inlined_call_operand.vmem [shape: bf16[128,128], index: 4, kind: input, shape index: {}]  }
   0x1   :  { %p66_p0 = scmp.lt.s32.totalorder %s2469_s0, 0  ;;  %s1401_s25 = sshll.u32 %s2469_s0, 4  ;;  %97 = vst.msk [vmem:[#allocation2] sm:$0xff] %vm2476_vm0, %v1694_v0  ;;  %98 = vst.msk [vmem:[#allocation2 + $0x8] sm:$0xff] %vm2476_vm0, %v1694_v0 }
   0x2   :  { %99 = vst.msk [vmem:[#allocation2 + $0x10] sm:$0xff] %vm2476_vm0, %v1694_v0  ;;  %100 = vst.msk [vmem:[#allocation2 + $0x18] sm:$0xff] %vm2476_vm0, %v1694_v0  ;;  %p74_p1 = scmp.lt.s32.totalorder %s1401_s25, 15  ;;  %p1405_p2 = scmp.le.s32.totalorder %s2470_s1, 0 }
   0x3   :  { %101 = vst.msk [vmem:[#allocation2 + $0x20] sm:$0xff] %vm2476_vm0, %v1694_v0  ;;  %102 = vst.msk [vmem:[#allocation2 + $0x28] sm:$0xff] %vm2476_vm0, %v1694_v0  ;;  %s1782_s8 = scalar_select %p66_p0, %s2469_s0, 0 }
   0x4   :  { %103 = vst.msk [vmem:[#allocation2 + $0x30] sm:$0xff] %vm2476_vm0, %v1694_v0  ;;  %104 = vst.msk [vmem:[#allocation2 + $0x38] sm:$0xff] %vm2476_vm0, %v1694_v0  ;;  %s2566_s25 = smov (!%p74_p1, %s1401_s25), 15 }
   0x5   :  { %105 = vst.msk [vmem:[#allocation2 + $0x40] sm:$0xff] %vm2476_vm0, %v1694_v0  ;;  %106 = vst.msk [vmem:[#allocation2 + $0x48] sm:$0xff] %vm2476_vm0, %v1694_v0  ;;  %s68_s13 = scalar_lea.vmem %s2473_s3, %s1782_s8  ;;  %s1403_s14 = sshll.u32 %s1782_s8, 3 }
   0x6   :  { %107 = vst.msk [vmem:[#allocation2 + $0x50] sm:$0xff] %vm2476_vm0, %v1694_v0  ;;  %108 = vst.msk [vmem:[#allocation2 + $0x58] sm:$0xff] %vm2476_vm0, %v1694_v0  ;;  %s1402_s15 = sshll.u32 %s2566_s25, 2  ;;  %s1796_s18 = scalar_lea.vmem %s2474_s5, %s1403_s14 }
   0x7   :  { %109 = vst.msk [vmem:[#allocation2 + $0x60] sm:$0xff] %vm2476_vm0, %v1694_v0  ;;  %110 = vst.msk [vmem:[#allocation2 + $0x68] sm:$0xff] %vm2476_vm0, %v1694_v0  ;;  %s1801_s21 = scalar_lea.vmem %s2475_s4, %s1402_s15 }
   0x8   :  { %111 = vst.msk [vmem:[#allocation2 + $0x70] sm:$0xff] %vm2476_vm0, %v1694_v0  ;;  %112 = vst.msk [vmem:[#allocation2 + $0x78] sm:$0xff] %vm2476_vm0, %v1694_v0 }
   0x9   :  { %113 = vst.msk [vmem:[#allocation3] sm:$0xff] %vm2476_vm0, %v1695_v1  ;;  %114 = vst.msk [vmem:[#allocation3 + $0x8] sm:$0xff] %vm2476_vm0, %v1695_v1 }
   0xa   :  { %115 = vst.msk [vmem:[#allocation3 + $0x10] sm:$0xff] %vm2476_vm0, %v1695_v1  ;;  %116 = vst.msk [vmem:[#allocation3 + $0x18] sm:$0xff] %vm2476_vm0, %v1695_v1 }
   0xb   :  { %117 = vst.msk [vmem:[#allocation3 + $0x20] sm:$0xff] %vm2476_vm0, %v1695_v1  ;;  %118 = vst.msk [vmem:[#allocation3 + $0x28] sm:$0xff] %vm2476_vm0, %v1695_v1 }
   0xc   :  { %119 = vst.msk [vmem:[#allocation3 + $0x30] sm:$0xff] %vm2476_vm0, %v1695_v1  ;;  %120 = vst.msk [vmem:[#allocation3 + $0x38] sm:$0xff] %vm2476_vm0, %v1695_v1 }
   0xd   :  { %121 = vst.msk [vmem:[#allocation3 + $0x40] sm:$0xff] %vm2476_vm0, %v1695_v1  ;;  %122 = vst.msk [vmem:[#allocation3 + $0x48] sm:$0xff] %vm2476_vm0, %v1695_v1 }
   0xe   :  { %123 = vst.msk [vmem:[#allocation3 + $0x50] sm:$0xff] %vm2476_vm0, %v1695_v1  ;;  %124 = vst.msk [vmem:[#allocation3 + $0x58] sm:$0xff] %vm2476_vm0, %v1695_v1 }
   0xf   :  { %125 = vst.msk [vmem:[#allocation3 + $0x60] sm:$0xff] %vm2476_vm0, %v1695_v1  ;;  %126 = vst.msk [vmem:[#allocation3 + $0x68] sm:$0xff] %vm2476_vm0, %v1695_v1 }
  0x10   :  { %127 = vst.msk [vmem:[#allocation3 + $0x70] sm:$0xff] %vm2476_vm0, %v1695_v1  ;;  %128 = vst.msk [vmem:[#allocation3 + $0x78] sm:$0xff] %vm2476_vm0, %v1695_v1 }
  0x11   :  { %129 = vst [vmem:[#allocation4 + $0x30] sm:$0xff] %v1695_v1  ;;  %130 = vst [vmem:[#allocation4] sm:$0xff] %v1695_v1 }
  0x12   :  { %131 = vst [vmem:[#allocation4 + $0x58] sm:$0xff] %v1695_v1  ;;  %132 = vst [vmem:[#allocation4 + $0x18] sm:$0xff] %v1695_v1 }
  0x13   :  { %133 = vst [vmem:[#allocation4 + $0x50] sm:$0xff] %v1695_v1  ;;  %134 = vst [vmem:[#allocation4 + $0x68] sm:$0xff] %v1695_v1 }
  0x14   :  { %135 = vst [vmem:[#allocation4 + $0x8] sm:$0xff] %v1695_v1  ;;  %136 = vst [vmem:[#allocation4 + $0x48] sm:$0xff] %v1695_v1  ;;  %149 = sbr.rel (%p1405_p2) target bundleno = 675 (0x2a3), region = 25 }
  0x15   :  { %137 = vst [vmem:[#allocation4 + $0x40] sm:$0xff] %v1695_v1  ;;  %138 = vst [vmem:[#allocation4 + $0x20] sm:$0xff] %v1695_v1 }
  0x16   :  { %139 = vst [vmem:[#allocation4 + $0x10] sm:$0xff] %v1695_v1  ;;  %140 = vst [vmem:[#allocation4 + $0x38] sm:$0xff] %v1695_v1 }
  0x17   :  { %141 = vst [vmem:[#allocation4 + $0x60] sm:$0xff] %v1695_v1  ;;  %142 = vst [vmem:[#allocation4 + $0x70] sm:$0xff] %v1695_v1 }
  0x18   :  { %143 = vst [vmem:[#allocation4 + $0x78] sm:$0xff] %v1695_v1  ;;  %144 = vst [vmem:[#allocation4 + $0x28] sm:$0xff] %v1695_v1 }
  0x19   :  { %v158_v2 = vld [vmem:[%s2471_s2 + $0x40] sm:$0xff]  ;;  %v1696_v4 = vmov 0   ;;  %v159_v5 = vld [vmem:[%s2471_s2 + $0x48] sm:$0xff]  ;;  %v153_v7 = vld [vmem:[%s2471_s2 + $0x18] sm:$0xff] }
  0x1a   :  { %v150_v3 = vld [vmem:[%s2471_s2] sm:$0xff]  ;;  %1587 = vset.pattern.permute.xlu1 %v1696_v4  ;;  %1586 = vset.pattern.permute.xlu0 %v1696_v4  ;;  %v151_v6 = vld [vmem:[%s2471_s2 + $0x8] sm:$0xff]  ;;  %v152_v8 = vld [vmem:[%s2471_s2 + $0x10] sm:$0xff] }
  0x1b   :  { %233 = vperm.xlu1 %1587, %v158_v2   ;;  %193 = vperm.xlu0 %1586, %v150_v3   ;;  %v161_v9 = vld [vmem:[%s2471_s2 + $0x58] sm:$0xff]  ;;  %v160_v10 = vld [vmem:[%s2471_s2 + $0x50] sm:$0xff]  ;;  %v155_v11 = vld [vmem:[%s2471_s2 + $0x28] sm:$0xff] }
  0x1c   :  { %v154_v12 = vld [vmem:[%s2471_s2 + $0x20] sm:$0xff]  ;;  %v163_v13 = vld [vmem:[%s2471_s2 + $0x68] sm:$0xff]  ;;  %v157_v15 = vld [vmem:[%s2471_s2 + $0x38] sm:$0xff] }
  0x1d   :  { %v162_v14 = vld [vmem:[%s2471_s2 + $0x60] sm:$0xff]  ;;  %v156_v16 = vld [vmem:[%s2471_s2 + $0x30] sm:$0xff]  ;;  %v165_v17 = vld [vmem:[%s2471_s2 + $0x78] sm:$0xff] }
  0x1e   :  { %v164_v18 = vld [vmem:[%s2471_s2 + $0x70] sm:$0xff]  ;;  %v183_v19 = vld [vmem:[%s1796_s18] sm:$0xff]  ;;  %v184_v28 = vld [vmem:[%s1796_s18 + $0x8] sm:$0xff] }
  0x1f   :  { %238 = vperm.xlu1 %1587, %v159_v5   ;;  %198 = vperm.xlu0 %1586, %v151_v6   ;;  %v185_v20 = vld [vmem:[%s1796_s18 + $0x10] sm:$0xff]  ;;  %vm187_vm1 = vnez %v183_v19  ;;  %vm188_vm3 = vnez %v184_v28  ;;  %v186_v47 = vld [vmem:[%s1796_s18 + $0x18] sm:$0xff]  ;;  %v1878_v3 = vld [vmem:[%s68_s13] ss:$0 sm:$0xff] }
  0x20   :  { %vm189_vm2 = vnez %v185_v20  ;;  %v341_v21 = vsel %vm187_vm1, 16843009, %v1696_v4  ;;  %v342_v42 = vsel %vm188_vm3, 16843009, %v1696_v4  ;;  %vm190_vm8 = vnez %v186_v47 }
  0x21   :  { %v343_v22 = vsel %vm189_vm2, 16843009, %v1696_v4  ;;  %v345_v23 = vunpack.c.0.s8 %v341_v21  ;;  %v346_v24 = vunpack.c.1.s8 %v341_v21  ;;  %v347_v30 = vunpack.c.2.s8 %v341_v21 }
  0x22   :  { %v353_v25 = vunpack.c.0.s8 %v343_v22  ;;  %v354_v27 = vunpack.c.1.s8 %v343_v22  ;;  %v348_v32 = vunpack.c.3.s8 %v341_v21  ;;  %v355_v33 = vunpack.c.2.s8 %v343_v22 }
  0x23   :  { %208 = vperm.xlu1 %1587, %v153_v7   ;;  %203 = vperm.xlu0 %1586, %v152_v8   ;;  %v361_v26 = vpack.c.b16 %v345_v23, %v345_v23  ;;  %v363_v29 = vpack.c.b16 %v346_v24, %v346_v24  ;;  %v356_v36 = vunpack.c.3.s8 %v343_v22  ;;  %v365_v38 = vpack.c.b16 %v347_v30, %v347_v30 }
  0x24   :  { %v377_v31 = vpack.c.b16 %v353_v25, %v353_v25  ;;  %v379_v35 = vpack.c.b16 %v354_v27, %v354_v27  ;;  %v367_v40 = vpack.c.b16 %v348_v32, %v348_v32  ;;  %v381_v41 = vpack.c.b16 %v355_v33, %v355_v33 }
  0x25   :  { %v362_v34 = vpack.c.b8 %v361_v26, %v361_v26  ;;  %v364_v37 = vpack.c.b8 %v363_v29, %v363_v29  ;;  %v383_v44 = vpack.c.b16 %v356_v36, %v356_v36  ;;  %v366_v45 = vpack.c.b8 %v365_v38, %v365_v38 }
  0x26   :  { %v378_v39 = vpack.c.b8 %v377_v31, %v377_v31  ;;  %v380_v43 = vpack.c.b8 %v379_v35, %v379_v35  ;;  %v349_v46 = vunpack.c.0.s8 %v342_v42  ;;  %v368_v48 = vpack.c.b8 %v367_v40, %v367_v40 }
  0x27   :  { %248 = vperm.xlu1 %1587, %v161_v9   ;;  %243 = vperm.xlu0 %1586, %v160_v10   ;;  %vm393_vm4 = vnez %v362_v34  ;;  %vm394_vm5 = vnez %v364_v37  ;;  %v382_v49 = vpack.c.b8 %v381_v41, %v381_v41  ;;  %v384_v52 = vpack.c.b8 %v383_v44, %v383_v44 }
  0x28   :  { %vm401_vm6 = vnez %v378_v39  ;;  %v409_v50 = vsel %vm393_vm4, 16843009, %v1696_v4  ;;  %v410_v51 = vsel %vm394_vm5, 16843009, %v1696_v4  ;;  %vm402_vm7 = vnez %v380_v43 }
  0x29   :  { %v417_v53 = vsel %vm401_vm6, 16843009, %v1696_v4  ;;  %vm395_vm9 = vnez %v366_v45  ;;  %v369_v54 = vpack.c.b16 %v349_v46, %v349_v46  ;;  %v350_v55 = vunpack.c.1.s8 %v342_v42 }
  0x2a   :  { %v425_v56 = vunpack.c.0.s8 %v409_v50  ;;  %vm396_vm10 = vnez %v368_v48  ;;  %vm403_vm11 = vnez %v382_v49  ;;  %v426_v57 = vunpack.c.0.s8 %v410_v51 }
  0x2b   :  { %218 = vperm.xlu1 %1587, %v155_v11   ;;  %213 = vperm.xlu0 %1586, %v154_v12   ;;  %v418_v58 = vsel %vm402_vm7, 16843009, %v1696_v4  ;;  %v1868_v59 = vsel %vm190_vm8, 16843009, %v1696_v4  ;;  %v433_v60 = vunpack.c.0.s8 %v417_v53  ;;  %v411_v61 = vsel %vm395_vm9, 16843009, %v1696_v4 }
  0x2c   :  { %vm404_vm12 = vnez %v384_v52  ;;  %v351_v62 = vunpack.c.2.s8 %v342_v42  ;;  %v412_v63 = vsel %vm396_vm10, 16843009, %v1696_v4  ;;  %v419_v0 = vsel %vm403_vm11, 16843009, %v1696_v4 }
  0x2d   :  { %v370_v1 = vpack.c.b8 %v369_v54, %v369_v54  ;;  %v371_v2 = vpack.c.b16 %v350_v55, %v350_v55  ;;  %vm1880_vm13 = vcmp.ne.s32.totalorder %v425_v56, 0  ;;  %v434_v6 = vunpack.c.0.s8 %v418_v58 }
  0x2e   :  { %v357_v7 = vunpack.c.0.s8 %v1868_v59  ;;  %v352_v8 = vunpack.c.3.s8 %v342_v42  ;;  %vm1885_vm14 = vcmp.ne.s32.totalorder %v426_v57, 0  ;;  %v427_v10 = vunpack.c.0.s8 %v411_v61 }
  0x2f   :  { %258 = vperm.xlu1 %1587, %v163_v13   ;;  %253 = vperm.xlu0 %1586, %v162_v14   ;;  %v1890_v11 = vsel %vm404_vm12, 16843009, %v1696_v4  ;;  %v358_v12 = vunpack.c.1.s8 %v1868_v59  ;;  %vm1893_vm15 = vcmp.ne.s32.totalorder %v433_v60, 0  ;;  %vm397_vm1 = vnez %v370_v1 }
  0x30   :  { %v372_v21 = vpack.c.b8 %v371_v2, %v371_v2  ;;  %v436_v22 = vunpack.c.0.s8 %v1890_v11  ;;  %v385_v23 = vpack.c.b16 %v357_v7, %v357_v7  ;;  %v375_v24 = vpack.c.b16 %v352_v8, %v352_v8 }
  0x31   :  { %v359_v25 = vunpack.c.2.s8 %v1868_v59  ;;  %vm1901_vm3 = vcmp.ne.s32.totalorder %v434_v6, 0  ;;  %vm1905_vm4 = vcmp.ne.s32.totalorder %v427_v10, 0  ;;  %v387_v30 = vpack.c.b16 %v358_v12, %v358_v12 }
  0x32   :  { %v413_v33 = vsel %vm397_vm1, 16843009, %v1696_v4  ;;  %v360_v35 = vunpack.c.3.s8 %v1868_v59  ;;  %vm1913_vm6 = vnez %v372_v21  ;;  %v386_v41 = vpack.c.b8 %v385_v23, %v385_v23 }
  0x33   :  { %228 = vperm.xlu1 %1587, %v157_v15   ;;  %223 = vperm.xlu0 %1586, %v156_v16   ;;  %v428_v16 = vunpack.c.0.s8 %v412_v63  ;;  %v376_v42 = vpack.c.b8 %v375_v24, %v375_v24  ;;  %v389_v43 = vpack.c.b16 %v359_v25, %v359_v25  ;;  %v429_v51 = vunpack.c.0.s8 %v413_v33 }
  0x34   :  { %v414_v52 = vsel %vm1913_vm6, 16843009, %v1696_v4  ;;  %v388_v53 = vpack.c.b8 %v387_v30, %v387_v30  ;;  %vm1947_vm12 = vnez %v386_v41  ;;  %v2510_v25 = vmov 0 }
  0x35   :  { %vm1922_vm8 = vcmp.ne.s32.totalorder %v428_v16, 0  ;;  %vm1951_vm1 = vnez %v376_v42  ;;  %v430_v7 = vunpack.c.0.s8 %v414_v52  ;;  %v2516_v52 = vmov 0 }
  0x37   :  { %268 = vperm.xlu1 %1587, %v165_v17   ;;  %263 = vperm.xlu0 %1586, %v164_v18   ;;  %v435_v17 = vunpack.c.0.s8 %v419_v0  ;;  %v373_v18 = vpack.c.b16 %v351_v62, %v351_v62 }
  0x39   :  { %v374_v34 = vpack.c.b8 %v373_v18, %v373_v18  ;;  %vm1926_vm9 = vcmp.ne.s32.totalorder %v435_v17, 0  ;;  %v390_v18 = vpack.c.b8 %v389_v43, %v389_v43 }
  0x3b   :  { %vm1935_vm11 = vnez %v374_v34 }
  0x3c   :  { %v415_v10 = vsel %vm1935_vm11, 16843009, %v1696_v4 }
  0x96   :  { %v234_v13 = vpop.permute.xlu1 %233  ;;  %v194_v14 = vpop.permute.xlu0 %193 }
  0x97   :  { %v285_v19 = vadd.f32 %v1878_v3, %v234_v13  ;;  %v277_v20 = vadd.f32 %v1878_v3, %v194_v14  ;;  %v421_v14 = vsel %vm1947_vm12, 16843009, %v1696_v4  ;;  %vm1985_vm12 = vcmp.ne.s32.totalorder %v429_v51, 0 }
  0x98   :  { %v2511_v25 = vsel %vm1985_vm12, 4294967295, %v2510_v25  ;;  %v437_v33 = vunpack.c.0.s8 %v421_v14 }
  0x99   :  { %v317_v26 = vmul.f32 0.2, %v285_v19  ;;  %v309_v27 = vmul.f32 0.2, %v277_v20  ;;  %vm293_vm2 = vcmp.ge.f32.partialorder %v277_v20, 0.0  ;;  %vm301_vm5 = vcmp.ge.f32.partialorder %v285_v19, 0.0 }
  0x9a   :  { %v239_v31 = vpop.permute.xlu1 %238  ;;  %v199_v32 = vpop.permute.xlu0 %198  ;;  %vm2018_vm0 = vcmp.ne.s32.totalorder %v437_v33, 0 }
  0x9b   :  { %v286_v36 = vadd.f32 %v1878_v3, %v239_v31  ;;  %v278_v37 = vadd.f32 %v1878_v3, %v199_v32  ;;  %v325_v38 = vsel %vm293_vm2, %v277_v20, %v309_v27  ;;  %v333_v46 = vsel %vm301_vm5, %v285_v19, %v317_v26 }
  0x9c   :  { %v1919_v40 = vsel %vm1880_vm13, %v325_v38, -1e+30  ;;  %v1941_v58 = vsel %vm1893_vm15, %v333_v46, -1e+30  ;;  %vm1958_vm5 = vcmp.ne.s32.totalorder %v436_v22, 0  ;;  %v391_v19 = vpack.c.b16 %v360_v35, %v360_v35 }
  0x9d   :  { %v318_v44 = vmul.f32 0.2, %v286_v36  ;;  %v310_v45 = vmul.f32 0.2, %v278_v37  ;;  %489 = vmax.xlane.f32.xlu0 %v1919_v40  ;;  %vm294_vm7 = vcmp.ge.f32.partialorder %v278_v37, 0.0  ;;  %vm302_vm10 = vcmp.ge.f32.partialorder %v286_v36, 0.0 }
  0x9e   :  { %v209_v49 = vpop.permute.xlu1 %208  ;;  %v204_v50 = vpop.permute.xlu0 %203  ;;  %v431_v27 = vunpack.c.0.s8 %v415_v10  ;;  %v416_v46 = vsel %vm1951_vm1, 16843009, %v1696_v4  ;;  %v2517_v52 = vsel %vm2018_vm0, 4294967295, %v2516_v52 }
  0x9f   :  { %v280_v54 = vadd.f32 %v1878_v3, %v209_v49  ;;  %v279_v55 = vadd.f32 %v1878_v3, %v204_v50  ;;  %v326_v56 = vsel %vm294_vm7, %v278_v37, %v310_v45  ;;  %v334_v0 = vsel %vm302_vm10, %v286_v36, %v318_v44 }
  0xa0   :  { %v1945_v59 = vsel %vm1885_vm14, %v326_v56, -1e+30  ;;  %vm1962_vm7 = vnez %v388_v53  ;;  %v1976_v16 = vsel %vm1901_vm3, %v334_v0, -1e+30  ;;  %v392_v37 = vpack.c.b8 %v391_v19, %v391_v19  ;;  %v1589_v56 = vld [vmem:[%s1801_s21 + $0x30] sm:$0xff]  }
  0xa1   :  { %v312_v62 = vmul.f32 0.2, %v280_v54  ;;  %v311_v63 = vmul.f32 0.2, %v279_v55  ;;  %505 = vmax.xlane.f32.xlu0 %v1941_v58  ;;  %491 = vmax.xlane.f32.xlu1 %v1945_v59  ;;  %vm295_vm2 = vcmp.ge.f32.partialorder %v279_v55, 0.0  ;;  %vm296_vm6 = vcmp.ge.f32.partialorder %v280_v54, 0.0 }
  0xa2   :  { %v249_v2 = vpop.permute.xlu1 %248  ;;  %v244_v6 = vpop.permute.xlu0 %243  ;;  %v422_v26 = vsel %vm1962_vm7, 16843009, %v1696_v4  ;;  %vm2033_vm1 = vnez %v392_v37  ;;  %v2520_v0 = vmov 0 }
  0xa3   :  { %v288_v11 = vadd.f32 %v1878_v3, %v249_v2  ;;  %v287_v12 = vadd.f32 %v1878_v3, %v244_v6  ;;  %v327_v13 = vsel %vm295_vm2, %v279_v55, %v311_v63  ;;  %v328_v22 = vsel %vm296_vm6, %v280_v54, %v312_v62 }
  0xa4   :  { %v1980_v17 = vsel %vm1905_vm4, %v327_v13, -1e+30  ;;  %v1996_v34 = vsel %vm1922_vm8, %v328_v22, -1e+30  ;;  %vm2002_vm2 = vnez %v390_v18  ;;  %v438_v45 = vunpack.c.0.s8 %v422_v26 }
  0xa5   :  { %v320_v20 = vmul.f32 0.2, %v288_v11  ;;  %v319_v21 = vmul.f32 0.2, %v287_v12  ;;  %507 = vmax.xlane.f32.xlu0 %v1976_v16  ;;  %493 = vmax.xlane.f32.xlu1 %v1980_v17  ;;  %vm303_vm10 = vcmp.ge.f32.partialorder %v287_v12, 0.0  ;;  %vm304_vm11 = vcmp.ge.f32.partialorder %v288_v11, 0.0 }
  0xa6   :  { %v219_v23 = vpop.permute.xlu1 %218  ;;  %v214_v24 = vpop.permute.xlu0 %213  ;;  %v423_v55 = vsel %vm2002_vm2, 16843009, %v1696_v4  ;;  %v432_v2 = vunpack.c.0.s8 %v416_v46  ;;  %vm2046_vm2 = vcmp.ne.s32.totalorder %v438_v45, 0  ;;  %v424_v14 = vsel %vm2033_vm1, 16843009, %v1696_v4  ;;  %v2102_v45 = vld [vmem:[#allocation2] sm:$0xff] }
  0xa7   :  { %v282_v30 = vadd.f32 %v1878_v3, %v219_v23  ;;  %v281_v31 = vadd.f32 %v1878_v3, %v214_v24  ;;  %v335_v32 = vsel %vm303_vm10, %v287_v12, %v319_v21  ;;  %v336_v41 = vsel %vm304_vm11, %v288_v11, %v320_v20  ;;  %v1588_v46 = vld [vmem:[%s1801_s21 + $0x38] sm:$0xff]  }
  0xa8   :  { %v2000_v35 = vsel %vm1926_vm9, %v335_v32, -1e+30  ;;  %vm2009_vm10 = vcmp.ne.s32.totalorder %v430_v7, 0  ;;  %v2024_v53 = vsel %vm1958_vm5, %v336_v41, -1e+30  ;;  %v439_v13 = vunpack.c.0.s8 %v423_v55  ;;  %1534 = vmatprep.subr.bf16.mxu0 %v1588_v46  ;;  %1566 = vmatprep.subr.bf16.mxu1 %v1588_v46  ;;  %v2108_v55 = vld [vmem:[#allocation2 + $0x40] sm:$0xff] }
  0xa9   :  { %v314_v38 = vmul.f32 0.2, %v282_v30  ;;  %v313_v39 = vmul.f32 0.2, %v281_v31  ;;  %495 = vmax.xlane.f32.xlu0 %v1996_v34  ;;  %509 = vmax.xlane.f32.xlu1 %v2000_v35  ;;  %vm297_vm6 = vcmp.ge.f32.partialorder %v281_v31, 0.0  ;;  %vm298_vm7 = vcmp.ge.f32.partialorder %v282_v30, 0.0 }
  0xaa   :  { %v259_v42 = vpop.permute.xlu1 %258  ;;  %v254_v43 = vpop.permute.xlu0 %253  ;;  %vm2077_vm1 = vcmp.ne.s32.totalorder %v439_v13, 0  ;;  %v440_v32 = vunpack.c.0.s8 %v424_v14  ;;  %1535 = vmatpush3.bf16.msra.mxu0 %v1588_v46  ;;  %1574 = vmatpush3.bf16.msra.mxu1 %v1588_v46 }
  0xab   :  { %v290_v49 = vadd.f32 %v1878_v3, %v259_v42  ;;  %v289_v50 = vadd.f32 %v1878_v3, %v254_v43  ;;  %v329_v51 = vsel %vm297_vm6, %v281_v31, %v313_v39  ;;  %v330_v61 = vsel %vm298_vm7, %v282_v30, %v314_v38  ;;  %1536 = vmatprep.subr.bf16.mxu0 %v1589_v56 }
  0xac   :  { %v2028_v54 = vsel %vm1985_vm12, %v329_v51, -1e+30  ;;  %vm2040_vm12 = vcmp.ne.s32.totalorder %v431_v27, 0  ;;  %v2052_v11 = vsel %vm2009_vm10, %v330_v61, -1e+30  ;;  %v474_v51 = vld [vmem:[#allocation2 + $0x8] sm:$0xff]  ;;  %1567 = vmatprep.subr.bf16.mxu1 %v1589_v56 }
  0xad   :  { %v322_v57 = vmul.f32 0.2, %v290_v49  ;;  %v321_v60 = vmul.f32 0.2, %v289_v50  ;;  %511 = vmax.xlane.f32.xlu0 %v2024_v53  ;;  %497 = vmax.xlane.f32.xlu1 %v2028_v54  ;;  %vm305_vm11 = vcmp.ge.f32.partialorder %v289_v50, 0.0  ;;  %vm306_vm6 = vcmp.ge.f32.partialorder %v290_v49, 0.0 }
  0xae   :  { %v229_v62 = vpop.permute.xlu1 %228  ;;  %v224_v63 = vpop.permute.xlu0 %223  ;;  %v2521_v0 = vsel %vm2040_vm12, 4294967295, %v2520_v0  ;;  %1537 = vmatpush3.bf16.msra.mxu0 %v1589_v56  ;;  %1575 = vmatpush3.bf16.msra.mxu1 %v1589_v56  ;;  %v2163_v56 = vld [vmem:[#allocation2 + $0x60] sm:$0xff] }
  0xaf   :  { %v284_v6 = vadd.f32 %v1878_v3, %v229_v62  ;;  %v283_v7 = vadd.f32 %v1878_v3, %v224_v63  ;;  %v337_v8 = vsel %vm305_vm11, %v289_v50, %v321_v60  ;;  %v338_v20 = vsel %vm306_vm6, %v290_v49, %v322_v57  ;;  %v2117_v63 = vld [vmem:[#allocation2 + $0x10] sm:$0xff] }
  0xb0   :  { %v2056_v12 = vsel %vm2018_vm0, %v337_v8, -1e+30  ;;  %vm2065_vm0 = vcmp.ne.s32.totalorder %v432_v2, 0  ;;  %v2071_v4 = vsel %vm2046_vm2, %v338_v20, -1e+30  ;;  %v2119_v2 = vld [vmem:[#allocation2 + $0x48] sm:$0xff] }
  0xb1   :  { %v316_v18 = vmul.f32 0.2, %v284_v6  ;;  %v315_v19 = vmul.f32 0.2, %v283_v7  ;;  %499 = vmax.xlane.f32.xlu0 %v2052_v11  ;;  %513 = vmax.xlane.f32.xlu1 %v2056_v12  ;;  %vm299_vm7 = vcmp.ge.f32.partialorder %v283_v7, 0.0  ;;  %vm300_vm11 = vcmp.ge.f32.partialorder %v284_v6, 0.0 }
  0xb2   :  { %v269_v21 = vpop.permute.xlu1 %268  ;;  %v264_v22 = vpop.permute.xlu0 %263  ;;  %v1591_v20 = vld [vmem:[%s1801_s21 + $0x20] sm:$0xff]  }
  0xb3   :  { %v292_v23 = vadd.f32 %v1878_v3, %v269_v21  ;;  %v291_v24 = vadd.f32 %v1878_v3, %v264_v22  ;;  %v331_v26 = vsel %vm299_vm7, %v283_v7, %v315_v19  ;;  %v332_v36 = vsel %vm300_vm11, %v284_v6, %v316_v18  ;;  %v1590_v6 = vld [vmem:[%s1801_s21 + $0x28] sm:$0xff]   ;;  %v2132_v18 = vld [vmem:[#allocation2 + $0x50] sm:$0xff]  ;;  %v2134_v19 = vld [vmem:[#allocation2 + $0x18] sm:$0xff] }
  0xb4   :  { %v2075_v30 = vsel %vm2040_vm12, %v331_v26, -1e+30  ;;  %v2085_v38 = vsel %vm2065_vm0, %v332_v36, -1e+30  ;;  %vm2093_vm12 = vcmp.ne.s32.totalorder %v440_v32, 0  ;;  %vm2530_vm11 = vcmask 7168   ;;  %1538 = vmatprep.subr.bf16.mxu0 %v1590_v6  ;;  %1568 = vmatprep.subr.bf16.mxu1 %v1590_v6 }
  0xb5   :  { %v324_v33 = vmul.f32 0.2, %v292_v23  ;;  %v323_v3 = vmul.f32 0.2, %v291_v24  ;;  %515 = vmax.xlane.f32.xlu0 %v2071_v4  ;;  %501 = vmax.xlane.f32.xlu1 %v2075_v30  ;;  %vm307_vm6 = vcmp.ge.f32.partialorder %v291_v24, 0.0  ;;  %vm308_vm7 = vcmp.ge.f32.partialorder %v292_v23, 0.0 }
  0xb6   :  { %1539 = vmatpush3.bf16.msra.mxu0 %v1590_v6  ;;  %1576 = vmatpush3.bf16.msra.mxu1 %v1590_v6  ;;  %v477_v32 = vld [vmem:[#allocation2 + $0x20] sm:$0xff] }
  0xb7   :  { %v339_v37 = vsel %vm307_vm6, %v291_v24, %v323_v3  ;;  %v340_v41 = vsel %vm308_vm7, %v292_v23, %v324_v33  ;;  %vm2531_vm6 = vmmov %vm2530_vm11  ;;  %1540 = vmatprep.subr.bf16.mxu0 %v1591_v20  ;;  %1569 = vmatprep.subr.bf16.mxu1 %v1591_v20  ;;  %v2149_v33 = vld [vmem:[#allocation2 + $0x58] sm:$0xff] }
  0xb8   :  { %v2089_v39 = vsel %vm2077_vm1, %v339_v37, -1e+30  ;;  %v2099_v43 = vsel %vm2093_vm12, %v340_v41, -1e+30  ;;  %vm2532_vm7 = vmmov %vm2531_vm6  ;;  %v1592_v3 = vld [vmem:[%s1801_s21 + $0x18] sm:$0xff]  }
  0xb9   :  { %503 = vmax.xlane.f32.xlu0 %v2085_v38  ;;  %517 = vmax.xlane.f32.xlu1 %v2089_v39 }
  0xba   :  { %1541 = vmatpush3.bf16.msra.mxu0 %v1591_v20  ;;  %1577 = vmatpush3.bf16.msra.mxu1 %v1591_v20 }
  0xbb   :  { %1542 = vmatprep.subr.bf16.mxu0 %v1592_v3  ;;  %1570 = vmatprep.subr.bf16.mxu1 %v1592_v3 }
  0xbd   :  { %519 = vmax.xlane.f32.xlu0 %v2099_v43 }
  0xbe   :  { %1543 = vmatpush3.bf16.msra.mxu0 %v1592_v3  ;;  %1578 = vmatpush3.bf16.msra.mxu1 %v1592_v3 }
 0x126   :  { %v490_v49 = vpop.xlane.xlu0 %489 }
 0x127   :  { %v2106_v50 = vmax.f32 %v2102_v45, %v490_v49 }
 0x129   :  { %1123 = vst.msk [vmem:[#allocation2] sm:$0xff] %vm2530_vm11, %v2106_v50  ;;  %539 = vperm.xlu1 %1587, %v2106_v50   ;;  %vm2533_vm11 = vmmov %vm2531_vm6  ;;  %v681_v36 = vsub.f32 %v2102_v45, %v2106_v50 }
 0x12a   :  { %v492_v57 = vpop.xlane.xlu1 %491  ;;  %v506_v60 = vpop.xlane.xlu0 %505 }
 0x12b   :  { %v522_v61 = vmax.f32 %v474_v51, %v492_v57  ;;  %v2115_v62 = vmax.f32 %v2108_v55, %v506_v60  ;;  %v2165_v57 = vld [vmem:[#allocation2 + $0x28] sm:$0xff]  ;;  %v1593_v60 = vld [vmem:[%s1801_s21 + $0x10] sm:$0xff]   ;;  %v697_v45 = vmul.f32 1.442695, %v681_v36 }
 0x12c   :  { %1544 = vmatprep.subr.bf16.mxu0 %v1593_v60  ;;  %1571 = vmatprep.subr.bf16.mxu1 %v1593_v60 }
 0x12d   :  { %1124 = vst.msk [vmem:[#allocation2 + $0x8] sm:$0xff] %vm2531_vm6, %v522_v61  ;;  %544 = vperm.xlu0 %1586, %v522_v61   ;;  %579 = vperm.xlu1 %1587, %v2115_v62   ;;  %v682_v23 = vsub.f32 %v474_v51, %v522_v61 }
 0x12e   :  { %1131 = vst.msk [vmem:[#allocation2 + $0x40] sm:$0xff] %vm2532_vm7, %v2115_v62  ;;  %v494_v7 = vpop.xlane.xlu1 %493  ;;  %v508_v8 = vpop.xlane.xlu0 %507  ;;  %vm2534_vm7 = vmmov %vm2531_vm6  ;;  %1545 = vmatpush3.bf16.msra.mxu0 %v1593_v60  ;;  %1579 = vmatpush3.bf16.msra.mxu1 %v1593_v60  ;;  %v1595_v60 = vld [vmem:[%s1801_s21] sm:$0xff]  }
 0x12f   :  { %v2127_v13 = vmax.f32 %v2117_v63, %v494_v7  ;;  %v2130_v14 = vmax.f32 %v2119_v2, %v508_v8  ;;  %v699_v46 = vmul.f32 1.442695, %v682_v23  ;;  %v2178_v23 = vld [vmem:[#allocation2 + $0x68] sm:$0xff] }
 0x131   :  { %1125 = vst.msk [vmem:[#allocation2 + $0x10] sm:$0xff] %vm2533_vm11, %v2127_v13  ;;  %549 = vperm.xlu0 %1586, %v2127_v13   ;;  %584 = vperm.xlu1 %1587, %v2130_v14   ;;  %vm2535_vm11 = vmmov %vm2531_vm6  ;;  %v683_v50 = vsub.f32 %v2117_v63, %v2127_v13  ;;  %1596 = vpow2.f32 %v699_v46  ;;  %v2190_v46 = vld [vmem:[#allocation2 + $0x70] sm:$0xff] }
 0x132   :  { %1132 = vst.msk [vmem:[#allocation2 + $0x48] sm:$0xff] %vm2531_vm6, %v2130_v14  ;;  %v510_v21 = vpop.xlane.xlu1 %509  ;;  %v496_v22 = vpop.xlane.xlu0 %495  ;;  %1598 = vpow2.f32 %v697_v45 }
 0x133   :  { %v2144_v24 = vmax.f32 %v2132_v18, %v510_v21  ;;  %v2147_v26 = vmax.f32 %v2134_v19, %v496_v22  ;;  %v479_v22 = vld [vmem:[#allocation2 + $0x30] sm:$0xff]  ;;  %v701_v63 = vmul.f32 1.442695, %v683_v50 }
 0x135   :  { %1133 = vst.msk [vmem:[#allocation2 + $0x50] sm:$0xff] %vm2534_vm7, %v2144_v24  ;;  %589 = vperm.xlu0 %1586, %v2144_v24   ;;  %554 = vperm.xlu1 %1587, %v2147_v26   ;;  %vm2536_vm7 = vmmov %vm2531_vm6  ;;  %v684_v13 = vsub.f32 %v2134_v19, %v2147_v26 }
 0x136   :  { %1126 = vst.msk [vmem:[#allocation2 + $0x18] sm:$0xff] %vm2535_vm11, %v2147_v26  ;;  %v498_v37 = vpop.xlane.xlu1 %497  ;;  %v512_v41 = vpop.xlane.xlu0 %511  ;;  %vm2537_vm11 = vmmov %vm2531_vm6 }
 0x137   :  { %v525_v49 = vmax.f32 %v477_v32, %v498_v37  ;;  %v2161_v51 = vmax.f32 %v2149_v33, %v512_v41  ;;  %v703_v19 = vmul.f32 1.442695, %v684_v13 }
 0x139   :  { %v685_v61 = vsub.f32 %v477_v32, %v525_v49  ;;  %1127 = vst.msk [vmem:[#allocation2 + $0x20] sm:$0xff] %vm2531_vm6, %v525_v49  ;;  %559 = vperm.xlu0 %1586, %v525_v49   ;;  %594 = vperm.xlu1 %1587, %v2161_v51   ;;  %v1594_v32 = vld [vmem:[%s1801_s21 + $0x8] sm:$0xff]   ;;  %v480_v49 = vld [vmem:[#allocation2 + $0x38] sm:$0xff] }
 0x13a   :  { %1134 = vst.msk [vmem:[#allocation2 + $0x58] sm:$0xff] %vm2536_vm7, %v2161_v51  ;;  %v514_v6 = vpop.xlane.xlu1 %513  ;;  %v500_v7 = vpop.xlane.xlu0 %499  ;;  %1546 = vmatprep.subr.bf16.mxu0 %v1594_v32  ;;  %1572 = vmatprep.subr.bf16.mxu1 %v1594_v32  ;;  %vm2538_vm7 = vmmov %vm2531_vm6 }
 0x13b   :  { %v705_v8 = vmul.f32 1.442695, %v685_v61  ;;  %v2175_v20 = vmax.f32 %v2163_v56, %v514_v6  ;;  %v526_v21 = vmax.f32 %v2165_v57, %v500_v7  ;;  %1547 = vmatpush3.bf16.msra.mxu0 %v1594_v32  ;;  %1580 = vmatpush3.bf16.msra.mxu1 %v1594_v32  ;;  %v689_v61 = vsub.f32 %v2108_v55, %v2115_v62 }
 0x13c   :  { %1548 = vmatprep.subr.bf16.mxu0 %v1595_v60  ;;  %1573 = vmatprep.subr.bf16.mxu1 %v1595_v60  ;;  %v691_v32 = vsub.f32 %v2132_v18, %v2144_v24 }
 0x13d   :  { %1135 = vst.msk [vmem:[#allocation2 + $0x60] sm:$0xff] %vm2537_vm11, %v2175_v20  ;;  %599 = vperm.xlu0 %1586, %v2175_v20   ;;  %564 = vperm.xlu1 %1587, %v526_v21   ;;  %1600 = vpow2.f32 %v705_v8  ;;  %vm2539_vm11 = vmmov %vm2531_vm6  ;;  %v686_v6 = vsub.f32 %v2165_v57, %v526_v21  ;;  %v2203_v8 = vld [vmem:[#allocation2 + $0x78] sm:$0xff] }
 0x13e   :  { %1128 = vst.msk [vmem:[#allocation2 + $0x28] sm:$0xff] %vm2531_vm6, %v526_v21  ;;  %v502_v3 = vpop.xlane.xlu1 %501  ;;  %v516_v36 = vpop.xlane.xlu0 %515  ;;  %1602 = vpow2.f32 %v701_v63  ;;  %v717_v24 = vmul.f32 1.442695, %v691_v32 }
 0x13f   :  { %v527_v37 = vmax.f32 %v479_v22, %v502_v3  ;;  %v2188_v41 = vmax.f32 %v2178_v23, %v516_v36  ;;  %1549 = vmatpush3.bf16.msra.mxu0 %v1595_v60  ;;  %1581 = vmatpush3.bf16.msra.mxu1 %v1595_v60  ;;  %v707_v21 = vmul.f32 1.442695, %v686_v6  ;;  %v2216_v18 = vpop.eup %1596  ;;  %v693_v36 = vsub.f32 %v2163_v56, %v2175_v20 }
 0x140   :  { %v690_v60 = vsub.f32 %v2119_v2, %v2130_v14 }
 0x141   :  { %v687_v45 = vsub.f32 %v479_v22, %v527_v37  ;;  %1129 = vst.msk [vmem:[#allocation2 + $0x30] sm:$0xff] %vm2538_vm7, %v527_v37  ;;  %569 = vperm.xlu0 %1586, %v527_v37   ;;  %604 = vperm.xlu1 %1587, %v2188_v41   ;;  %v713_v22 = vmul.f32 1.442695, %v689_v61  ;;  %vm2540_vm7 = vmmov %vm2531_vm6  ;;  %v721_v56 = vmul.f32 1.442695, %v693_v36 }
 0x142   :  { %1136 = vst.msk [vmem:[#allocation2 + $0x68] sm:$0xff] %vm2539_vm11, %v2188_v41  ;;  %v518_v26 = vpop.xlane.xlu1 %517  ;;  %v504_v50 = vpop.xlane.xlu0 %503  ;;  %vm2541_vm11 = vmmov %vm2531_vm6 }
 0x143   :  { %v709_v7 = vmul.f32 1.442695, %v687_v45  ;;  %v2201_v55 = vmax.f32 %v2190_v46, %v518_v26  ;;  %v528_v62 = vmax.f32 %v480_v49, %v504_v50  ;;  %v692_v26 = vsub.f32 %v2149_v33, %v2161_v51 }
 0x144   :  { %v694_v50 = vsub.f32 %v2178_v23, %v2188_v41 }
 0x145   :  { %1604 = vpow2.f32 %v709_v7  ;;  %1137 = vst.msk [vmem:[#allocation2 + $0x70] sm:$0xff] %vm2531_vm6, %v2201_v55  ;;  %609 = vperm.xlu0 %1586, %v2201_v55   ;;  %574 = vperm.xlu1 %1587, %v528_v62   ;;  %v688_v13 = vsub.f32 %v480_v49, %v528_v62  ;;  %v2226_v49 = vpop.eup %1598  ;;  %v719_v14 = vmul.f32 1.442695, %v692_v26  ;;  %vm1415_vm6 = vmpackc.low %vm1885_vm14, %vm1880_vm13 }
 0x146   :  { %1130 = vst.msk [vmem:[#allocation2 + $0x38] sm:$0xff] %vm2540_vm7, %v528_v62  ;;  %v520_v57 = vpop.xlane.xlu0 %519  ;;  %1606 = vpow2.f32 %v703_v19  ;;  %v715_v19 = vmul.f32 1.442695, %v690_v60  ;;  %v723_v33 = vmul.f32 1.442695, %v694_v50  ;;  %vm1430_vm7 = vmpackc.low %vm1958_vm5, %vm1926_vm9 }
 0x147   :  { %v2214_v3 = vmax.f32 %v2203_v8, %v520_v57  ;;  %1608 = vpow2.f32 %v713_v22  ;;  %v711_v61 = vmul.f32 1.442695, %v688_v13 }
 0x148   :  { %1610 = vpow2.f32 %v707_v21 }
 0x149   :  { %1138 = vst.msk [vmem:[#allocation2 + $0x78] sm:$0xff] %vm2541_vm11, %v2214_v3  ;;  %849 = vperm.xlu0 %1586, %v2216_v18   ;;  %614 = vperm.xlu1 %1587, %v2214_v3   ;;  %1612 = vpow2.f32 %v717_v24  ;;  %vm2544_vm11 = vnez %v2517_v52  ;;  %v2546_v28 = vsub.f32 %v2203_v8, %v2214_v3  ;;  %v2547_v52 = vsub.f32 %v2190_v46, %v2201_v55 }
 0x14a   :  { %v2230_v45 = vpop.eup %1600  ;;  %1614 = vpow2.f32 %v711_v61 }
 0x14b   :  { %v2234_v20 = vpop.eup %1602  ;;  %1616 = vpow2.f32 %v721_v56 }
 0x14c   :  { %1618 = vpow2.f32 %v715_v19 }
 0x14d   :  { %864 = vperm.xlu0 %1586, %v2230_v45   ;;  %844 = vperm.xlu1 %1587, %v2226_v49   ;;  %1620 = vpow2.f32 %v719_v14 }
 0x14e   :  { %1622 = vpow2.f32 %v723_v33 }
 0x151   :  { %854 = vperm.xlu1 %1587, %v2234_v20  }
 0x152   :  { %v2239_v2 = vpop.eup %1604 }
 0x153   :  { %874 = vperm.xlu0 %1586, %v2239_v2   ;;  %v2244_v6 = vpop.eup %1606 }
 0x154   :  { %v2247_v7 = vpop.eup %1608 }
 0x155   :  { %859 = vperm.xlu1 %1587, %v2244_v6   ;;  %v2250_v51 = vpop.eup %1610 }
 0x156   :  { %v2253_v62 = vpop.eup %1612 }
 0x157   :  { %884 = vperm.xlu0 %1586, %v2247_v7   ;;  %v2256_v23 = vpop.eup %1614 }
 0x158   :  { %v2259_v41 = vpop.eup %1616 }
 0x159   :  { %869 = vperm.xlu1 %1587, %v2250_v51   ;;  %v2262_v22 = vpop.eup %1618 }
 0x15a   :  { %v2265_v32 = vpop.eup %1620 }
 0x15b   :  { %894 = vperm.xlu0 %1586, %v2253_v62   ;;  %v2268_v57 = vpop.eup %1622 }
 0x15c   :  { %2542 = vst [vmem:[#allocation8_spill] sm:$0xff] %v2268_v57 }
 0x15d   :  { %879 = vperm.xlu1 %1587, %v2256_v23  }
 0x15f   :  { %904 = vperm.xlu0 %1586, %v2259_v41  }
 0x161   :  { %889 = vperm.xlu1 %1587, %v2262_v22  }
 0x165   :  { %899 = vperm.xlu1 %1587, %v2265_v32  }
 0x169   :  { %909 = vperm.xlu1 %1587, %v2268_v57  }
 0x1a4   :  { %v540_v21 = vpop.permute.xlu1 %539 }
 0x1a5   :  { %v617_v13 = vsub.f32 %v1919_v40, %v540_v21 }
 0x1a7   :  { %v633_v24 = vmul.f32 1.442695, %v617_v13 }
 0x1a8   :  { %v580_v36 = vpop.permute.xlu1 %579  ;;  %v545_v60 = vpop.permute.xlu0 %544 }
 0x1a9   :  { %1624 = vpow2.f32 %v633_v24  ;;  %v625_v61 = vsub.f32 %v1941_v58, %v580_v36  ;;  %v618_v56 = vsub.f32 %v1945_v59, %v545_v60 }
 0x1ab   :  { %v635_v19 = vmul.f32 1.442695, %v618_v56  ;;  %v649_v26 = vmul.f32 1.442695, %v625_v61 }
 0x1ac   :  { %v585_v14 = vpop.permute.xlu1 %584  ;;  %v550_v50 = vpop.permute.xlu0 %549 }
 0x1ad   :  { %v626_v33 = vsub.f32 %v1976_v16, %v585_v14  ;;  %v619_v63 = vsub.f32 %v1980_v17, %v550_v50  ;;  %1626 = vpow2.f32 %v635_v19 }
 0x1ae   :  { %1628 = vpow2.f32 %v649_v26 }
 0x1af   :  { %v651_v37 = vmul.f32 1.442695, %v626_v33  ;;  %v637_v57 = vmul.f32 1.442695, %v619_v63 }
 0x1b0   :  { %v555_v40 = vpop.permute.xlu1 %554  ;;  %v590_v21 = vpop.permute.xlu0 %589 }
 0x1b1   :  { %1630 = vpow2.f32 %v651_v37  ;;  %v620_v13 = vsub.f32 %v1996_v34, %v555_v40  ;;  %v627_v58 = vsub.f32 %v2000_v35, %v590_v21 }
 0x1b2   :  { %1632 = vpow2.f32 %v637_v57 }
 0x1b3   :  { %v639_v59 = vmul.f32 1.442695, %v620_v13  ;;  %v653_v24 = vmul.f32 1.442695, %v627_v58 }
 0x1b4   :  { %v595_v36 = vpop.permute.xlu1 %594  ;;  %v560_v60 = vpop.permute.xlu0 %559 }
 0x1b5   :  { %1634 = vpow2.f32 %v639_v59  ;;  %v628_v16 = vsub.f32 %v2024_v53, %v595_v36  ;;  %v621_v17 = vsub.f32 %v2028_v54, %v560_v60 }
 0x1b6   :  { %v1625_v61 = vpop.eup %1624  ;;  %1636 = vpow2.f32 %v653_v24 }
 0x1b7   :  { %v655_v63 = vmul.f32 1.442695, %v628_v16  ;;  %v641_v56 = vmul.f32 1.442695, %v621_v17  ;;  %v665_v37 = vsel %vm1880_vm13, %v1625_v61, 0.0  ;;  %vm1427_vm13 = vmpackc.low %vm1901_vm3, %vm1893_vm15 }
 0x1b8   :  { %761 = vadd.xlane.f32.xlu0 %v665_v37  ;;  %v565_v34 = vpop.permute.xlu1 %564  ;;  %v600_v35 = vpop.permute.xlu0 %599 }
 0x1b9   :  { %1638 = vpow2.f32 %v655_v63  ;;  %v622_v57 = vsub.f32 %v2052_v11, %v565_v34  ;;  %v629_v19 = vsub.f32 %v2056_v12, %v600_v35 }
 0x1ba   :  { %1640 = vpow2.f32 %v641_v56  ;;  %v1627_v26 = vpop.eup %1626 }
 0x1bb   :  { %v643_v53 = vmul.f32 1.442695, %v622_v57  ;;  %v657_v54 = vmul.f32 1.442695, %v629_v19  ;;  %v666_v50 = vsel %vm1885_vm14, %v1627_v26, 0.0  ;;  %v1416_v40 = vpack.c.bf16 %v1627_v26, %v1625_v61  ;;  %v2290_v21 = vpop.eup %1628  ;;  %vm1418_vm14 = vmpackc.low %vm1922_vm8, %vm1905_vm4 }
 0x1bc   :  { %v605_v14 = vpop.permute.xlu1 %604  ;;  %v570_v33 = vpop.permute.xlu0 %569  ;;  %763 = vadd.xlane.f32.xlu1 %v666_v50 }
 0x1bd   :  { %1642 = vpow2.f32 %v643_v53  ;;  %v630_v11 = vsub.f32 %v2071_v4, %v605_v14  ;;  %v623_v12 = vsub.f32 %v2075_v30, %v570_v33  ;;  %1550 = vmatprep.mubr.msk.bf16.mxu0 %vm1415_vm6, %v1416_v40  ;;  %vm1433_vm6 = vmpackc.low %vm2046_vm2, %vm2544_vm11 }
 0x1be   :  { %v2294_v13 = vpop.eup %1630  ;;  %1644 = vpow2.f32 %v657_v54 }
 0x1bf   :  { %v1633_v5 = vpop.eup %1632  ;;  %v659_v9 = vmul.f32 1.442695, %v630_v11  ;;  %v645_v58 = vmul.f32 1.442695, %v623_v12  ;;  %v1428_v59 = vpack.c.bf16 %v2294_v13, %v2290_v21  ;;  %v673_v11 = vsel %vm1893_vm15, %v2290_v21, 0.0 }
 0x1c0   :  { %v575_v24 = vpop.permute.xlu1 %574  ;;  %v667_v4 = vsel %vm1905_vm4, %v1633_v5, 0.0  ;;  %v610_v30 = vpop.permute.xlu0 %609  ;;  %vm2543_vm4 = vnez %v2511_v25 }
 0x1c1   :  { %1646 = vpow2.f32 %v659_v9  ;;  %v624_v36 = vsub.f32 %v2085_v38, %v575_v24  ;;  %765 = vadd.xlane.f32.xlu0 %v667_v4  ;;  %v631_v60 = vsub.f32 %v2089_v39, %v610_v30  ;;  %1558 = vmatprep.mubr.msk.bf16.mxu1 %vm1427_vm13, %v1428_v59  ;;  %vm2545_vm13 = vnez %v2521_v0 }
 0x1c2   :  { %v1635_v16 = vpop.eup %1634  ;;  %1648 = vpow2.f32 %v645_v58  ;;  %v674_v0 = vsel %vm1901_vm3, %v2294_v13, 0.0  ;;  %v727_v13 = vmul.f32 1.442695, %v2546_v28  ;;  %v725_v59 = vmul.f32 1.442695, %v2547_v52 }
 0x1c3   :  { %v647_v17 = vmul.f32 1.442695, %v624_v36  ;;  %v668_v61 = vsel %vm1922_vm8, %v1635_v16, 0.0  ;;  %v1419_v63 = vpack.c.bf16 %v1635_v16, %v1633_v5  ;;  %v661_v56 = vmul.f32 1.442695, %v631_v60  ;;  %v1637_v34 = vpop.eup %1636  ;;  %vm1421_vm8 = vmpackc.low %vm2009_vm10, %vm2543_vm4 }
 0x1c4   :  { %v615_v37 = vpop.permute.xlu1 %614  ;;  %v675_v9 = vsel %vm1926_vm9, %v1637_v34, 0.0  ;;  %v2375_v42 = vpop.permute.xlu0 %849 }
 0x1c5   :  { %1650 = vpow2.f32 %v647_v17  ;;  %v632_v38 = vsub.f32 %v2099_v43, %v615_v37  ;;  %767 = vadd.xlane.f32.xlu0 %v668_v61  ;;  %1551 = vmatmul.mubr.msk.bf16.vlgmr.msra.gmra.mxu0 %vm1418_vm14, %v1419_v63  ;;  %vm1436_vm14 = vmpackc.low %vm2093_vm12, %vm2077_vm1  ;;  %v729_v63 = vld [vmem:[#allocation3] sm:$0xff] }
 0x1c6   :  { %v1639_v39 = vpop.eup %1638  ;;  %1652 = vpow2.f32 %v661_v56  ;;  %v745_v56 = vmul.f32 %v2226_v49, %v729_v63 }
 0x1c7   :  { %v1641_v29 = vpop.eup %1640  ;;  %v663_v35 = vmul.f32 1.442695, %v632_v38  ;;  %v1431_v57 = vpack.c.bf16 %v1639_v39, %v1637_v34  ;;  %v676_v15 = vsel %vm1958_vm5, %v1639_v39, 0.0  ;;  %v730_v39 = vld [vmem:[#allocation3 + $0x8] sm:$0xff] }
 0x1c8   :  { %v669_v47 = vsel %vm2543_vm4, %v1641_v29, 0.0  ;;  %v2371_v31 = vpop.permute.xlu1 %844  ;;  %v2379_v4 = vpop.permute.xlu0 %864 }
 0x1c9   :  { %1654 = vpow2.f32 %v663_v35  ;;  %769 = vadd.xlane.f32.xlu1 %v669_v47  ;;  %1559 = vmatmul.mubr.msk.bf16.vlgmr.msra.gmra.mxu1 %vm1430_vm7, %v1431_v57  ;;  %v731_v57 = vld [vmem:[#allocation3 + $0x10] sm:$0xff] }
 0x1ca   :  { %v1643_v19 = vpop.eup %1642  ;;  %1656 = vpow2.f32 %v727_v13  ;;  %v739_v13 = vld [vmem:[#allocation3 + $0x50] sm:$0xff] }
 0x1cb   :  { %v670_v43 = vsel %vm2009_vm10, %v1643_v19, 0.0  ;;  %v1422_v26 = vpack.c.bf16 %v1643_v19, %v1641_v29  ;;  %v1645_v53 = vpop.eup %1644  ;;  %vm1424_vm10 = vmpackc.low %vm2065_vm0, %vm2545_vm13  ;;  %1658 = vpow2.f32 %v725_v59  ;;  %v746_v29 = vmul.f32 %v2216_v18, %v730_v39 }
 0x1cc   :  { %771 = vadd.xlane.f32.xlu0 %v670_v43  ;;  %v677_v21 = vsel %vm2544_vm11, %v1645_v53, 0.0  ;;  %v2373_v3 = vpop.permute.xlu1 %854  ;;  %v747_v19 = vmul.f32 %v2234_v20, %v731_v57  ;;  %v743_v57 = vld [vmem:[#allocation3 + $0x70] sm:$0xff] }
 0x1cd   :  { %1554 = vmatprep.mubr.msk.bf16.mxu0 %vm1421_vm8, %v1422_v26  ;;  %v732_v26 = vld [vmem:[#allocation3 + $0x18] sm:$0xff] }
 0x1ce   :  { %v1647_v54 = vpop.eup %1646  ;;  %v2383_v55 = vpop.permute.xlu0 %874  ;;  %v748_v49 = vmul.f32 %v2244_v6, %v732_v26 }
 0x1cf   :  { %v1649_v14 = vpop.eup %1648  ;;  %v1434_v50 = vpack.c.bf16 %v1647_v54, %v1645_v53  ;;  %v678_v58 = vsel %vm2046_vm2, %v1647_v54, 0.0 }
 0x1d0   :  { %v671_v25 = vsel %vm2545_vm13, %v1649_v14, 0.0  ;;  %v2377_v24 = vpop.permute.xlu1 %859 }
 0x1d1   :  { %773 = vadd.xlane.f32.xlu1 %v671_v25  ;;  %1562 = vmatprep.mubr.msk.bf16.mxu1 %vm1433_vm6, %v1434_v50  ;;  %v734_v25 = vld [vmem:[#allocation3 + $0x28] sm:$0xff] }
 0x1d2   :  { %v1651_v33 = vpop.eup %1650  ;;  %v2387_v36 = vpop.permute.xlu0 %884 }
 0x1d3   :  { %v672_v44 = vsel %vm2065_vm0, %v1651_v33, 0.0  ;;  %v1425_v40 = vpack.c.bf16 %v1651_v33, %v1649_v14  ;;  %v1653_v12 = vpop.eup %1652  ;;  %vm2548_vm0 = vcmask 7168   ;;  %v733_v14 = vld [vmem:[#allocation3 + $0x20] sm:$0xff] }
 0x1d4   :  { %775 = vadd.xlane.f32.xlu0 %v672_v44  ;;  %v679_v48 = vsel %vm2077_vm1, %v1653_v12, 0.0  ;;  %v2381_v46 = vpop.permute.xlu1 %869  ;;  %vm2549_vm15 = vmmov %vm2548_vm0  ;;  %v749_v18 = vmul.f32 %v2230_v45, %v733_v14 }
 0x1d5   :  { %777 = vadd.xlane.f32.xlu1 %v673_v11  ;;  %1555 = vmatmul.mubr.msk.bf16.gmra.mxu0 %vm1424_vm10, %v1425_v40  ;;  %vm2550_vm3 = vmmov %vm2548_vm0  ;;  %v750_v40 = vmul.f32 %v2250_v51, %v734_v25  ;;  %v826_v25 = vld [vmem:[#allocation4 + $0x30] sm:$0xff] }
 0x1d6   :  { %v1655_v5 = vpop.eup %1654  ;;  %v2391_v16 = vpop.permute.xlu0 %894  ;;  %vm2551_vm9 = vmmov %vm2548_vm0 }
 0x1d7   :  { %v1437_v27 = vpack.c.bf16 %v1655_v5, %v1653_v12  ;;  %v680_v1 = vsel %vm2093_vm12, %v1655_v5, 0.0  ;;  %v2365_v10 = vpop.eup %1656  ;;  %vm2552_vm5 = vmmov %vm2548_vm0  ;;  %v735_v12 = vld [vmem:[#allocation3 + $0x30] sm:$0xff]  ;;  %v736_v5 = vld [vmem:[#allocation3 + $0x38] sm:$0xff] }
 0x1d8   :  { %779 = vadd.xlane.f32.xlu0 %v674_v0  ;;  %v2368_v8 = vpop.eup %1658  ;;  %v2385_v30 = vpop.permute.xlu1 %879  ;;  %vm2553_vm12 = vmmov %vm2548_vm0  ;;  %v751_v6 = vmul.f32 %v2239_v2, %v735_v12  ;;  %v752_v45 = vmul.f32 %v2256_v23, %v736_v5  ;;  %v740_v23 = vld [vmem:[#allocation3 + $0x58] sm:$0xff]  ;;  %v827_v12 = vld [vmem:[#allocation4] sm:$0xff] }
 0x1d9   :  { %781 = vadd.xlane.f32.xlu1 %v675_v9  ;;  %1563 = vmatmul.mubr.msk.bf16.gmra.mxu1 %vm1436_vm14, %v1437_v27  ;;  %v737_v27 = vld [vmem:[#allocation3 + $0x40] sm:$0xff]  ;;  %vm2554_vm2 = vmmov %vm2548_vm0 }
 0x1da   :  { %v2395_v61 = vpop.permute.xlu0 %904  ;;  %vm2555_vm1 = vmmov %vm2548_vm0 }
 0x1db   :  { %vm2556_vm7 = vmmov %vm2548_vm0 }
 0x1dc   :  { %783 = vadd.xlane.f32.xlu0 %v676_v15  ;;  %v2389_v60 = vpop.permute.xlu1 %889  ;;  %v753_v15 = vmul.f32 %v2247_v7, %v737_v27  ;;  %vm2557_vm4 = vmmov %vm2548_vm0 }
 0x1dd   :  { %785 = vadd.xlane.f32.xlu1 %v677_v21  ;;  %v738_v21 = vld [vmem:[#allocation3 + $0x48] sm:$0xff]  ;;  %vm2558_vm8 = vmmov %vm2548_vm0 }
 0x1de   :  { %v754_v2 = vmul.f32 %v2262_v22, %v738_v21  ;;  %v742_v22 = vld [vmem:[#allocation3 + $0x68] sm:$0xff]  ;;  %vm2559_vm11 = vmmov %vm2548_vm0 }
 0x1df   :  { %vm2561_vm6 = vmmov %vm2548_vm0 }
 0x1e0   :  { %787 = vadd.xlane.f32.xlu0 %v678_v58  ;;  %v2393_v17 = vpop.permute.xlu1 %899  ;;  %vm2562_vm13 = vmmov %vm2548_vm0 }
 0x1e1   :  { %789 = vadd.xlane.f32.xlu1 %v679_v48  ;;  %vm2563_vm10 = vmmov %vm2548_vm0 }
 0x1e2   :  { %vm2564_vm14 = vmmov %vm2548_vm0 }
 0x1e4   :  { %791 = vadd.xlane.f32.xlu0 %v680_v1  ;;  %v2398_v34 = vpop.permute.xlu1 %909  ;;  %v755_v1 = vmul.f32 %v2253_v62, %v739_v13 }
 0x1f2   :  { %919 = vperm.xlu1 %1587, %v2365_v10  }
 0x1fa   :  { %914 = vperm.xlu0 %1586, %v2368_v8  }
 0x241   :  { %v762_v37 = vpop.xlane.xlu0 %761 }
 0x242   :  { %v793_v38 = vadd.f32 %v762_v37, %v745_v56  ;;  %v741_v56 = vld [vmem:[#allocation3 + $0x60] sm:$0xff]  ;;  %v756_v37 = vmul.f32 %v2265_v32, %v740_v23  ;;  %v744_v32 = vld [vmem:[#allocation3 + $0x78] sm:$0xff]  ;;  %v832_v23 = vld [vmem:[#allocation4 + $0x8] sm:$0xff] }
 0x244   :  { %810 = vst.msk [vmem:[#allocation3] sm:$0xff] %vm2548_vm0, %v793_v38  ;;  %v757_v38 = vmul.f32 %v2259_v41, %v741_v56  ;;  %v760_v41 = vmul.f32 %v2365_v10, %v744_v32  ;;  %v833_v56 = vld [vmem:[#allocation4 + $0x48] sm:$0xff] }
 0x245   :  { %v764_v35 = vpop.xlane.xlu1 %763 }
 0x246   :  { %v794_v47 = vadd.f32 %v764_v35, %v746_v29 }
 0x248   :  { %811 = vst.msk [vmem:[#allocation3 + $0x8] sm:$0xff] %vm2549_vm15, %v794_v47  ;;  %v2560_v47 = vld [vmem:[#allocation8_spill] sm:$0xff] }
 0x24a   :  { %v766_v43 = vpop.xlane.xlu0 %765 }
 0x24b   :  { %v795_v53 = vadd.f32 %v766_v43, %v747_v19  ;;  %v758_v19 = vmul.f32 %v2560_v47, %v742_v22  ;;  %v759_v43 = vmul.f32 %v2368_v8, %v743_v57  ;;  %v829_v8 = vld [vmem:[#allocation4 + $0x18] sm:$0xff]  ;;  %v831_v22 = vld [vmem:[#allocation4 + $0x68] sm:$0xff] }
 0x24c   :  { %v925_v10 = vmul.f32 %v2377_v24, %v829_v8 }
 0x24d   :  { %812 = vst.msk [vmem:[#allocation3 + $0x10] sm:$0xff] %vm2550_vm3, %v795_v53 }
 0x24e   :  { %v768_v54 = vpop.xlane.xlu0 %767 }
 0x24f   :  { %v796_v50 = vadd.f32 %v768_v54, %v748_v49 }
 0x251   :  { %813 = vst.msk [vmem:[#allocation3 + $0x18] sm:$0xff] %vm2551_vm9, %v796_v50 }
 0x252   :  { %v770_v33 = vpop.xlane.xlu1 %769 }
 0x253   :  { %v797_v44 = vadd.f32 %v770_v33, %v749_v18  ;;  %v828_v18 = vld [vmem:[#allocation4 + $0x58] sm:$0xff] }
 0x254   :  { %v924_v33 = vmul.f32 %v2373_v3, %v828_v18  ;;  %v923_v3 = vmul.f32 %v2375_v42, %v827_v12 }
 0x255   :  { %814 = vst.msk [vmem:[#allocation3 + $0x20] sm:$0xff] %vm2552_vm5, %v797_v44  ;;  %v772_v20 = vpop.xlane.xlu0 %771  ;;  %v836_v44 = vld [vmem:[#allocation4 + $0x10] sm:$0xff] }
 0x256   :  { %v798_v11 = vadd.f32 %v772_v20, %v750_v40  ;;  %v922_v20 = vmul.f32 %v2371_v31, %v826_v25 }
 0x258   :  { %815 = vst.msk [vmem:[#allocation3 + $0x28] sm:$0xff] %vm2553_vm12, %v798_v11 }
 0x25a   :  { %v774_v0 = vpop.xlane.xlu1 %773 }
 0x25b   :  { %v799_v9 = vadd.f32 %v774_v0, %v751_v6  ;;  %v834_v6 = vld [vmem:[#allocation4 + $0x40] sm:$0xff]  ;;  %v932_v0 = vmul.f32 %v2391_v16, %v836_v44 }
 0x25d   :  { %816 = vst.msk [vmem:[#allocation3 + $0x30] sm:$0xff] %vm2554_vm2, %v799_v9  ;;  %v776_v51 = vpop.xlane.xlu0 %775  ;;  %v837_v9 = vld [vmem:[#allocation4 + $0x38] sm:$0xff] }
 0x25e   :  { %v778_v58 = vpop.xlane.xlu1 %777  ;;  %v800_v28 = vadd.f32 %v776_v51, %v752_v45  ;;  %v930_v51 = vmul.f32 %v2387_v36, %v834_v6 }
 0x25f   :  { %v801_v48 = vadd.f32 %v778_v58, %v753_v15  ;;  %v835_v58 = vld [vmem:[#allocation4 + $0x20] sm:$0xff] }
 0x260   :  { %817 = vst.msk [vmem:[#allocation3 + $0x38] sm:$0xff] %vm2555_vm1, %v800_v28 }
 0x261   :  { %818 = vst.msk [vmem:[#allocation3 + $0x40] sm:$0xff] %vm2556_vm7, %v801_v48  ;;  %v780_v52 = vpop.xlane.xlu0 %779  ;;  %v933_v48 = vmul.f32 %v2393_v17, %v837_v9  ;;  %v840_v17 = vld [vmem:[#allocation4 + $0x78] sm:$0xff] }
 0x262   :  { %v782_v59 = vpop.xlane.xlu1 %781  ;;  %v802_v63 = vadd.f32 %v780_v52, %v754_v2 }
 0x263   :  { %v803_v7 = vadd.f32 %v782_v59, %v755_v1  ;;  %v931_v1 = vmul.f32 %v2389_v60, %v835_v58  ;;  %v830_v59 = vld [vmem:[#allocation4 + $0x50] sm:$0xff]  ;;  %v838_v60 = vld [vmem:[#allocation4 + $0x60] sm:$0xff] }
 0x264   :  { %819 = vst.msk [vmem:[#allocation3 + $0x48] sm:$0xff] %vm2557_vm4, %v802_v63  ;;  %v928_v63 = vmul.f32 %v2383_v55, %v832_v23  ;;  %v927_v55 = vmul.f32 %v2381_v46, %v831_v22  ;;  %v934_v32 = vmul.f32 %v2395_v61, %v838_v60 }
 0x265   :  { %820 = vst.msk [vmem:[#allocation3 + $0x50] sm:$0xff] %vm2558_vm8, %v803_v7  ;;  %v784_v39 = vpop.xlane.xlu0 %783 }
 0x266   :  { %v786_v29 = vpop.xlane.xlu1 %785  ;;  %v804_v35 = vadd.f32 %v784_v39, %v756_v37 }
 0x267   :  { %v805_v62 = vadd.f32 %v786_v29, %v757_v38  ;;  %v926_v38 = vmul.f32 %v2379_v4, %v830_v59 }
 0x268   :  { %821 = vst.msk [vmem:[#allocation3 + $0x58] sm:$0xff] %vm2559_vm11, %v804_v35  ;;  %v929_v35 = vmul.f32 %v2385_v30, %v833_v56 }
 0x269   :  { %822 = vst.msk [vmem:[#allocation3 + $0x60] sm:$0xff] %vm2561_vm6, %v805_v62  ;;  %v788_v26 = vpop.xlane.xlu0 %787 }
 0x26a   :  { %v790_v53 = vpop.xlane.xlu1 %789  ;;  %v806_v49 = vadd.f32 %v788_v26, %v758_v19  ;;  %v841_v19 = vld [vmem:[#allocation4 + $0x28] sm:$0xff] }
 0x26b   :  { %v807_v54 = vadd.f32 %v790_v53, %v759_v43 }
 0x26c   :  { %823 = vst.msk [vmem:[#allocation3 + $0x68] sm:$0xff] %vm2562_vm13, %v806_v49  ;;  %v839_v49 = vld [vmem:[#allocation4 + $0x70] sm:$0xff] }
 0x26d   :  { %824 = vst.msk [vmem:[#allocation3 + $0x70] sm:$0xff] %vm2563_vm10, %v807_v54  ;;  %v792_v14 = vpop.xlane.xlu0 %791  ;;  %v935_v25 = vmul.f32 %v2398_v34, %v839_v49 }
 0x26e   :  { %v808_v50 = vadd.f32 %v792_v14, %v760_v41  ;;  %v920_v57 = vpop.permute.xlu1 %919 }
 0x26f   :  { %v937_v14 = vmul.f32 %v920_v57, %v841_v19 }
 0x270   :  { %825 = vst.msk [vmem:[#allocation3 + $0x78] sm:$0xff] %vm2564_vm14, %v808_v50 }
 0x275   :  { %v915_v7 = vpop.permute.xlu0 %914 }
 0x276   :  { %v936_v62 = vmul.f32 %v915_v7, %v840_v17 }
 0x285   :  { %v1552_v40 = vpop.f32.mrf.mxu0 }
 0x286   :  { %v1093_v11 = vadd.f32 %v1552_v40, %v924_v33 }
 0x287   :  { %v1028_v5 = vpop.f32.mrf.mxu0 }
 0x288   :  { %1109 = vst [vmem:[#allocation4 + $0x58] sm:$0xff] %v1093_v11  ;;  %v1091_v27 = vadd.f32 %v1028_v5, %v922_v20 }
 0x289   :  { %v1553_v45 = vpop.f32.mrf.mxu0  ;;  %v1560_v15 = vpop.f32.mrf.mxu1 }
 0x28a   :  { %1107 = vst [vmem:[#allocation4 + $0x30] sm:$0xff] %v1091_v27  ;;  %v1094_v21 = vadd.f32 %v1553_v45, %v925_v10  ;;  %v1101_v31 = vadd.f32 %v1560_v15, %v932_v0 }
 0x28b   :  { %v1031_v28 = vpop.f32.mrf.mxu0  ;;  %v1060_v13 = vpop.f32.mrf.mxu1 }
 0x28c   :  { %1110 = vst [vmem:[#allocation4 + $0x18] sm:$0xff] %v1094_v21  ;;  %1117 = vst [vmem:[#allocation4 + $0x10] sm:$0xff] %v1101_v31  ;;  %v1092_v24 = vadd.f32 %v1031_v28, %v923_v3  ;;  %v1099_v16 = vadd.f32 %v1060_v13, %v930_v51 }
 0x28d   :  { %v1561_v2 = vpop.f32.mrf.mxu1 }
 0x28e   :  { %1108 = vst [vmem:[#allocation4] sm:$0xff] %v1092_v24  ;;  %1115 = vst [vmem:[#allocation4 + $0x40] sm:$0xff] %v1099_v16  ;;  %v1102_v42 = vadd.f32 %v1561_v2, %v933_v48 }
 0x28f   :  { %v1063_v52 = vpop.f32.mrf.mxu1 }
 0x290   :  { %1118 = vst [vmem:[#allocation4 + $0x38] sm:$0xff] %v1102_v42  ;;  %v1100_v36 = vadd.f32 %v1063_v52, %v931_v1 }
 0x292   :  { %1116 = vst [vmem:[#allocation4 + $0x20] sm:$0xff] %v1100_v36 }
 0x295   :  { %v1556_v37 = vpop.f32.mrf.mxu0 }
 0x296   :  { %v1097_v39 = vadd.f32 %v1556_v37, %v928_v63 }
 0x297   :  { %v1044_v29 = vpop.f32.mrf.mxu0 }
 0x298   :  { %1113 = vst [vmem:[#allocation4 + $0x8] sm:$0xff] %v1097_v39  ;;  %v1095_v47 = vadd.f32 %v1044_v29, %v926_v38 }
 0x299   :  { %v1557_v43 = vpop.f32.mrf.mxu0  ;;  %v1564_v26 = vpop.f32.mrf.mxu1 }
 0x29a   :  { %1111 = vst [vmem:[#allocation4 + $0x50] sm:$0xff] %v1095_v47  ;;  %v1098_v53 = vadd.f32 %v1557_v43, %v929_v35  ;;  %v1105_v4 = vadd.f32 %v1564_v26, %v936_v62 }
 0x29b   :  { %v1047_v54 = vpop.f32.mrf.mxu0  ;;  %v1076_v41 = vpop.f32.mrf.mxu1 }
 0x29c   :  { %1114 = vst [vmem:[#allocation4 + $0x48] sm:$0xff] %v1098_v53  ;;  %1121 = vst [vmem:[#allocation4 + $0x78] sm:$0xff] %v1105_v4  ;;  %v1096_v30 = vadd.f32 %v1047_v54, %v927_v55  ;;  %v1103_v50 = vadd.f32 %v1076_v41, %v934_v32 }
 0x29d   :  { %v1565_v18 = vpop.f32.mrf.mxu1 }
 0x29e   :  { %1112 = vst [vmem:[#allocation4 + $0x68] sm:$0xff] %v1096_v30  ;;  %1119 = vst [vmem:[#allocation4 + $0x60] sm:$0xff] %v1103_v50  ;;  %v1106_v33 = vadd.f32 %v1565_v18, %v937_v14 }
 0x29f   :  { %v1079_v46 = vpop.f32.mrf.mxu1 }
 0x2a0   :  { %1122 = vst [vmem:[#allocation4 + $0x28] sm:$0xff] %v1106_v33  ;;  %v1104_v61 = vadd.f32 %v1079_v46, %v935_v25 }
 0x2a2   :  { %1120 = vst [vmem:[#allocation4 + $0x70] sm:$0xff] %v1104_v61 }
 0x2a3 PF:  { %v1144_v8 = vld [vmem:[#allocation3 + $0x10] sm:$0xff]  ;;  %v1142_v44 = vld [vmem:[#allocation3] sm:$0xff]  ;;  %v1145_v40 = vld [vmem:[#allocation3 + $0x18] sm:$0xff]  ;;  %v1697_v20 = vmov 0  }
 0x2a4   :  { %1661 = vset.pattern.permute.xlu1 %v1697_v20  ;;  %1660 = vset.pattern.permute.xlu0 %v1697_v20  ;;  %v1160_v11 = vmax.f32 %v1144_v8, 1e-20  ;;  %v1158_v12 = vmax.f32 %v1142_v44, 1e-20  ;;  %v1161_v6 = vmax.f32 %v1145_v40, 1e-20 }
 0x2a5   :  { %v1143_v5 = vld [vmem:[#allocation3 + $0x8] sm:$0xff]  ;;  %v1146_v0 = vld [vmem:[#allocation3 + $0x20] sm:$0xff]  ;;  %v1149_v45 = vld [vmem:[#allocation3 + $0x38] sm:$0xff] }
 0x2a6   :  { %v1147_v10 = vld [vmem:[#allocation3 + $0x28] sm:$0xff]  ;;  %1662 = vrcp.f32 %v1160_v11  ;;  %v1159_v34 = vmax.f32 %v1143_v5, 1e-20  ;;  %v1162_v9 = vmax.f32 %v1146_v0, 1e-20  ;;  %v1148_v15 = vld [vmem:[#allocation3 + $0x30] sm:$0xff] }
 0x2a7   :  { %1664 = vrcp.f32 %v1158_v12  ;;  %v1163_v27 = vmax.f32 %v1147_v10, 1e-20  ;;  %v1165_v3 = vmax.f32 %v1149_v45, 1e-20  ;;  %v1164_v51 = vmax.f32 %v1148_v15, 1e-20 }
 0x2a8   :  { %1666 = vrcp.f32 %v1161_v6  ;;  %v1151_v21 = vld [vmem:[#allocation3 + $0x48] sm:$0xff]  ;;  %v1150_v31 = vld [vmem:[#allocation3 + $0x40] sm:$0xff]  ;;  %v1153_v13 = vld [vmem:[#allocation3 + $0x58] sm:$0xff] }
 0x2a9   :  { %1668 = vrcp.f32 %v1159_v34  ;;  %v1167_v58 = vmax.f32 %v1151_v21, 1e-20  ;;  %v1166_v28 = vmax.f32 %v1150_v31, 1e-20  ;;  %v1152_v48 = vld [vmem:[#allocation3 + $0x50] sm:$0xff]  ;;  %v1155_v52 = vld [vmem:[#allocation3 + $0x68] sm:$0xff] }
 0x2aa   :  { %1670 = vrcp.f32 %v1163_v27  ;;  %v1169_v2 = vmax.f32 %v1153_v13, 1e-20  ;;  %v1168_v42 = vmax.f32 %v1152_v48, 1e-20  ;;  %v1154_v23 = vld [vmem:[#allocation3 + $0x60] sm:$0xff]  ;;  %v1157_v17 = vld [vmem:[#allocation3 + $0x78] sm:$0xff] }
 0x2ab   :  { %1672 = vrcp.f32 %v1162_v9  ;;  %v1171_v59 = vmax.f32 %v1155_v52, 1e-20  ;;  %v1170_v56 = vmax.f32 %v1154_v23, 1e-20  ;;  %v1156_v37 = vld [vmem:[#allocation3 + $0x70] sm:$0xff]  ;;  %v1192_v53 = vld [vmem:[#allocation4 + $0x58] sm:$0xff] }
 0x2ac   :  { %1674 = vrcp.f32 %v1165_v3  ;;  %v1173_v38 = vmax.f32 %v1157_v17, 1e-20  ;;  %v1172_v22 = vmax.f32 %v1156_v37, 1e-20  ;;  %v1193_v4 = vld [vmem:[#allocation4 + $0x18] sm:$0xff]  ;;  %v1190_v49 = vld [vmem:[#allocation4 + $0x30] sm:$0xff] }
 0x2ad   :  { %1676 = vrcp.f32 %v1164_v51  ;;  %v1191_v54 = vld [vmem:[#allocation4] sm:$0xff]  ;;  %v1195_v33 = vld [vmem:[#allocation4 + $0x68] sm:$0xff]  ;;  %v1194_v61 = vld [vmem:[#allocation4 + $0x50] sm:$0xff] }
 0x2ae   :  { %1678 = vrcp.f32 %v1167_v58  ;;  %v1197_v12 = vld [vmem:[#allocation4 + $0x48] sm:$0xff]  ;;  %v1199_v9 = vld [vmem:[#allocation4 + $0x20] sm:$0xff]  ;;  %v1201_v58 = vld [vmem:[#allocation4 + $0x38] sm:$0xff] }
 0x2af   :  { %1680 = vrcp.f32 %v1166_v28  ;;  %v1196_v6 = vld [vmem:[#allocation4 + $0x8] sm:$0xff]  ;;  %v1198_v45 = vld [vmem:[#allocation4 + $0x40] sm:$0xff]  ;;  %v1200_v28 = vld [vmem:[#allocation4 + $0x10] sm:$0xff] }
 0x2b0   :  { %1682 = vrcp.f32 %v1169_v2  ;;  %v1204_v17 = vld [vmem:[#allocation4 + $0x78] sm:$0xff] }
 0x2b1   :  { %1684 = vrcp.f32 %v1168_v42  ;;  %v1202_v42 = vld [vmem:[#allocation4 + $0x60] sm:$0xff] }
 0x2b2   :  { %1686 = vrcp.f32 %v1171_v59 }
 0x2b3   :  { %v1663_v24 = vpop.eup %1662  ;;  %1688 = vrcp.f32 %v1170_v56  ;;  %v1205_v56 = vld [vmem:[#allocation4 + $0x28] sm:$0xff] }
 0x2b4   :  { %v1665_v16 = vpop.eup %1664  ;;  %1218 = vperm.xlu1 %1661, %v1663_v24   ;;  %1690 = vrcp.f32 %v1173_v38 }
 0x2b5   :  { %v1667_v1 = vpop.eup %1666  ;;  %1208 = vperm.xlu0 %1660, %v1665_v16   ;;  %1692 = vrcp.f32 %v1172_v22 }
 0x2b6   :  { %v1669_v36 = vpop.eup %1668 }
 0x2b7   :  { %v1671_v63 = vpop.eup %1670 }
 0x2b8   :  { %1223 = vperm.xlu1 %1661, %v1667_v1   ;;  %v1673_v7 = vpop.eup %1672  ;;  %v1203_v1 = vld [vmem:[#allocation4 + $0x70] sm:$0xff] }
 0x2b9   :  { %1213 = vperm.xlu0 %1660, %v1669_v36   ;;  %v1675_v39 = vpop.eup %1674 }
 0x2ba   :  { %v1677_v60 = vpop.eup %1676 }
 0x2bb   :  { %v1679_v29 = vpop.eup %1678 }
 0x2bc   :  { %1233 = vperm.xlu1 %1661, %v1671_v63   ;;  %v1681_v35 = vpop.eup %1680 }
 0x2bd   :  { %1228 = vperm.xlu0 %1660, %v1673_v7   ;;  %v1683_v57 = vpop.eup %1682 }
 0x2be   :  { %v1685_v62 = vpop.eup %1684 }
 0x2bf   :  { %v1687_v47 = vpop.eup %1686 }
 0x2c0   :  { %1243 = vperm.xlu1 %1661, %v1675_v39   ;;  %v1689_v19 = vpop.eup %1688 }
 0x2c1   :  { %1238 = vperm.xlu0 %1660, %v1677_v60   ;;  %v1691_v43 = vpop.eup %1690 }
 0x2c2   :  { %v1693_v26 = vpop.eup %1692 }
 0x2c4   :  { %1253 = vperm.xlu1 %1661, %v1679_v29  }
 0x2c5   :  { %1248 = vperm.xlu0 %1660, %v1681_v35  }
 0x2c8   :  { %1263 = vperm.xlu1 %1661, %v1683_v57  }
 0x2c9   :  { %1258 = vperm.xlu0 %1660, %v1685_v62  }
 0x2cc   :  { %1273 = vperm.xlu1 %1661, %v1687_v47  }
 0x2cd   :  { %1268 = vperm.xlu0 %1660, %v1689_v19  }
 0x2d0   :  { %1283 = vperm.xlu1 %1661, %v1691_v43  }
 0x2d1   :  { %1278 = vperm.xlu0 %1660, %v1693_v26  }
 0x32f   :  { %v1219_v55 = vpop.permute.xlu1 %1218 }
 0x330   :  { %v1209_v32 = vpop.permute.xlu0 %1208  ;;  %v1288_v14 = vmul.f32 %v1219_v55, %v1192_v53 }
 0x331   :  { %v1286_v18 = vmul.f32 %v1209_v32, %v1190_v49 }
 0x333   :  { %v1224_v41 = vpop.permute.xlu1 %1223 }
 0x334   :  { %v1289_v30 = vmul.f32 %v1224_v41, %v1193_v4  ;;  %v1214_v50 = vpop.permute.xlu0 %1213 }
 0x335   :  { %v1287_v25 = vmul.f32 %v1214_v50, %v1191_v54 }
 0x336   :  { %v1479_v46 = vpack.c.bf16 %v1289_v30, %v1288_v14 }
 0x337   :  { %v1474_v8 = vpack.c.bf16 %v1287_v25, %v1286_v18  ;;  %v1234_v44 = vpop.permute.xlu1 %1233 }
 0x338   :  { %1511 = vst [vmem:[%s2472_s6 + $0x8] sm:$0xff] %v1479_v46   ;;  %v1291_v40 = vmul.f32 %v1234_v44, %v1195_v33  ;;  %v1229_v20 = vpop.permute.xlu0 %1228 }
 0x339   :  { %1475 = vst [vmem:[%s2472_s6] sm:$0xff] %v1474_v8   ;;  %v1290_v11 = vmul.f32 %v1229_v20, %v1194_v61 }
 0x33b   :  { %v1484_v5 = vpack.c.bf16 %v1291_v40, %v1290_v11  ;;  %v1244_v10 = vpop.permute.xlu1 %1243 }
 0x33c   :  { %v1293_v34 = vmul.f32 %v1244_v10, %v1197_v12  ;;  %v1239_v0 = vpop.permute.xlu0 %1238 }
 0x33d   :  { %1512 = vst [vmem:[%s2472_s6 + $0x10] sm:$0xff] %v1484_v5   ;;  %v1292_v27 = vmul.f32 %v1239_v0, %v1196_v6 }
 0x33f   :  { %v1489_v15 = vpack.c.bf16 %v1293_v34, %v1292_v27  ;;  %v1254_v3 = vpop.permute.xlu1 %1253 }
 0x340   :  { %v1295_v51 = vmul.f32 %v1254_v3, %v1199_v9  ;;  %v1249_v21 = vpop.permute.xlu0 %1248 }
 0x341   :  { %1513 = vst [vmem:[%s2472_s6 + $0x18] sm:$0xff] %v1489_v15   ;;  %v1294_v31 = vmul.f32 %v1249_v21, %v1198_v45 }
 0x343   :  { %v1494_v13 = vpack.c.bf16 %v1295_v51, %v1294_v31  ;;  %v1264_v48 = vpop.permute.xlu1 %1263 }
 0x344   :  { %v1297_v24 = vmul.f32 %v1264_v48, %v1201_v58  ;;  %v1259_v16 = vpop.permute.xlu0 %1258 }
 0x345   :  { %1514 = vst [vmem:[%s2472_s6 + $0x20] sm:$0xff] %v1494_v13   ;;  %v1296_v2 = vmul.f32 %v1259_v16, %v1200_v28 }
 0x347   :  { %v1499_v52 = vpack.c.bf16 %v1297_v24, %v1296_v2  ;;  %v1274_v36 = vpop.permute.xlu1 %1273 }
 0x348   :  { %v1299_v23 = vmul.f32 %v1274_v36, %v1203_v1  ;;  %v1269_v59 = vpop.permute.xlu0 %1268 }
 0x349   :  { %1515 = vst [vmem:[%s2472_s6 + $0x28] sm:$0xff] %v1499_v52   ;;  %v1298_v63 = vmul.f32 %v1269_v59, %v1202_v42 }
 0x34b   :  { %v1504_v7 = vpack.c.bf16 %v1299_v23, %v1298_v63  ;;  %v1284_v37 = vpop.permute.xlu1 %1283 }
 0x34c   :  { %v1301_v38 = vmul.f32 %v1284_v37, %v1205_v56  ;;  %v1279_v39 = vpop.permute.xlu0 %1278 }
 0x34d   :  { %1516 = vst [vmem:[%s2472_s6 + $0x30] sm:$0xff] %v1504_v7   ;;  %v1300_v22 = vmul.f32 %v1279_v39, %v1204_v17 }
 0x34f   :  { %v1509_v60 = vpack.c.bf16 %v1301_v38, %v1300_v22 }
 0x351   :  { %1517 = vst [vmem:[%s2472_s6 + $0x38] sm:$0xff] %v1509_v60  }

// kernel: gat_model_forward.7
= control target key start
LH: loop header
LB: loop body
LE: loop exit
PB: predicated region body
PF: predicated region fallthrough
CT: control target
= control target key end

     0   :  { %v1486_v1 = vmov 0   ;;  %s1886_s3 = inlined_call_operand.vmem [shape: bf16[128,256], index: 3, kind: input, shape index: {}]   ;;  %s1887_s2 = inlined_call_operand.vmem [shape: bf16[128,256], index: 2, kind: input, shape index: {}]   ;;  %s1888_s1 = inlined_call_operand.vmem [shape: bf16[128,128], index: 1, kind: input, shape index: {}]   ;;  %s1889_s0 = inlined_call_operand.vmem [shape: bf16[128,128], index: 0, kind: input, shape index: {}]   ;;  %s1890_s5 = inlined_call_operand.vmem [shape: bf16[256,128], index: 5, kind: input, shape index: {}]   ;;  %s1891_s7 = inlined_call_operand.vmem [shape: bf16[128,128], index: 7, kind: input, shape index: {}]   ;;  %s1892_s4 = inlined_call_operand.vmem [shape: f32[1,256], index: 4, kind: input, shape index: {}]   ;;  %s1893_s6 = inlined_call_operand.vmem [shape: f32[1,128], index: 6, kind: input, shape index: {}]   ;;  %s1894_s8 = inlined_call_operand.vmem [shape: f32[1,128], index: 8, kind: input, shape index: {}]   ;;  %s1895_s9 = inlined_call_operand.vmem [shape: f32[128,128], index: 9, kind: output, shape index: {}]  }
   0x1   :  { %v1398_v0 = vld [vmem:[%s1886_s3 + $0x74] ss:$8 sps:$4 sm:$0xff]   ;;  %257 = vmatprep.mubr.bf16.mxu0 %v1486_v1  ;;  %498 = vmatprep.mubr.bf16.mxu1 %v1486_v1  ;;  %v1402_v3 = vld [vmem:[%s1886_s3 + $0x70] ss:$8 sps:$4 sm:$0xff]   ;;  %v1404_v5 = vld [vmem:[%s1886_s3 + $0x64] ss:$8 sps:$4 sm:$0xff]  }
   0x2   :  { %v1400_v2 = vld [vmem:[%s1887_s2 + $0x74] ss:$8 sps:$4 sm:$0xff]   ;;  %225 = vmatprep.subr.bf16.mxu0 %v1398_v0  ;;  %v1403_v4 = vld [vmem:[%s1887_s2 + $0x70] ss:$8 sps:$4 sm:$0xff]   ;;  %v1406_v6 = vld [vmem:[%s1887_s2 + $0x64] ss:$8 sps:$4 sm:$0xff]  }
   0x3   :  { %466 = vmatprep.subr.bf16.mxu1 %v1400_v2  ;;  %226 = vmatpush1.bf16.msra.mxu0 %v1402_v3  ;;  %v1408_v7 = vld [vmem:[%s1886_s3 + $0x60] ss:$8 sps:$4 sm:$0xff]   ;;  %v1410_v9 = vld [vmem:[%s1886_s3 + $0x54] ss:$8 sps:$4 sm:$0xff]   ;;  %v1414_v11 = vld [vmem:[%s1886_s3 + $0x50] ss:$8 sps:$4 sm:$0xff]  }
   0x4   :  { %467 = vmatpush1.bf16.msra.mxu1 %v1403_v4  ;;  %227 = vmatprep.subr.bf16.mxu0 %v1404_v5  ;;  %v1409_v8 = vld [vmem:[%s1887_s2 + $0x60] ss:$8 sps:$4 sm:$0xff]   ;;  %v1412_v10 = vld [vmem:[%s1887_s2 + $0x54] ss:$8 sps:$4 sm:$0xff]   ;;  %v1415_v12 = vld [vmem:[%s1887_s2 + $0x50] ss:$8 sps:$4 sm:$0xff]   ;;  %v581_v4 = vlaneseq }
   0x5   :  { %468 = vmatprep.subr.bf16.mxu1 %v1406_v6  ;;  %v1416_v13 = vld [vmem:[%s1886_s3 + $0x44] ss:$8 sps:$4 sm:$0xff]   ;;  %v1420_v15 = vld [vmem:[%s1886_s3 + $0x40] ss:$8 sps:$4 sm:$0xff]   ;;  %v1422_v17 = vld [vmem:[%s1886_s3 + $0x34] ss:$8 sps:$4 sm:$0xff]  }
   0x6   :  { %v1418_v14 = vld [vmem:[%s1887_s2 + $0x44] ss:$8 sps:$4 sm:$0xff]   ;;  %v1421_v16 = vld [vmem:[%s1887_s2 + $0x40] ss:$8 sps:$4 sm:$0xff]   ;;  %v1424_v18 = vld [vmem:[%s1887_s2 + $0x34] ss:$8 sps:$4 sm:$0xff]  }
   0x7   :  { %228 = vmatpush1.bf16.msra.mxu0 %v1408_v7  ;;  %v1426_v19 = vld [vmem:[%s1886_s3 + $0x30] ss:$8 sps:$4 sm:$0xff]   ;;  %v1428_v21 = vld [vmem:[%s1886_s3 + $0x24] ss:$8 sps:$4 sm:$0xff]   ;;  %v1432_v23 = vld [vmem:[%s1886_s3 + $0x20] ss:$8 sps:$4 sm:$0xff]  }
   0x8   :  { %469 = vmatpush1.bf16.msra.mxu1 %v1409_v8  ;;  %229 = vmatprep.subr.bf16.mxu0 %v1410_v9  ;;  %v1427_v20 = vld [vmem:[%s1887_s2 + $0x30] ss:$8 sps:$4 sm:$0xff]   ;;  %v1430_v22 = vld [vmem:[%s1887_s2 + $0x24] ss:$8 sps:$4 sm:$0xff]   ;;  %v1433_v24 = vld [vmem:[%s1887_s2 + $0x20] ss:$8 sps:$4 sm:$0xff]  }
   0x9   :  { %470 = vmatprep.subr.bf16.mxu1 %v1412_v10  ;;  %v1434_v25 = vld [vmem:[%s1886_s3 + $0x14] ss:$8 sps:$4 sm:$0xff]   ;;  %v1438_v27 = vld [vmem:[%s1886_s3 + $0x10] ss:$8 sps:$4 sm:$0xff]   ;;  %v1440_v29 = vld [vmem:[%s1886_s3 + $0x4] ss:$8 sps:$4 sm:$0xff]  }
   0xa   :  { %v1436_v26 = vld [vmem:[%s1887_s2 + $0x14] ss:$8 sps:$4 sm:$0xff]   ;;  %v1439_v28 = vld [vmem:[%s1887_s2 + $0x10] ss:$8 sps:$4 sm:$0xff]   ;;  %v1442_v30 = vld [vmem:[%s1887_s2 + $0x4] ss:$8 sps:$4 sm:$0xff]  }
   0xb   :  { %230 = vmatpush1.bf16.msra.mxu0 %v1414_v11  ;;  %v1444_v31 = vld [vmem:[%s1886_s3] ss:$8 sps:$4 sm:$0xff]   ;;  %v1462_v37 = vld [vmem:[%s1890_s5 + $0x78] sm:$0xff]   ;;  %v1464_v39 = vld [vmem:[%s1890_s5 + $0x70] sm:$0xff]   ;;  %v582_v5 = vshrl.u32 %v581_v4, 7 }
   0xc   :  { %471 = vmatpush1.bf16.msra.mxu1 %v1415_v12  ;;  %231 = vmatprep.subr.bf16.mxu0 %v1416_v13  ;;  %v1445_v32 = vld [vmem:[%s1887_s2] ss:$8 sps:$4 sm:$0xff]   ;;  %v1463_v38 = vld [vmem:[%s1890_s5 + $0x38] sm:$0xff]   ;;  %v1465_v40 = vld [vmem:[%s1890_s5 + $0x30] sm:$0xff]  }
   0xd   :  { %472 = vmatprep.subr.bf16.mxu1 %v1418_v14  ;;  %v1446_v33 = vld [vmem:[%s1888_s1] sm:$0xff]   ;;  %v1448_v35 = vld [vmem:[%s1888_s1 + $0x8] sm:$0xff]   ;;  %v1450_v42 = vld [vmem:[%s1888_s1 + $0x10] sm:$0xff]   ;;  %v583_v6 = vsub.s32 0, %v582_v5  ;;  %v587_v7 = vsub.s32 1, %v582_v5 }
   0xe   :  { %v1447_v34 = vld [vmem:[%s1889_s0] sm:$0xff]   ;;  %v1449_v36 = vld [vmem:[%s1889_s0 + $0x8] sm:$0xff]   ;;  %v1451_v45 = vld [vmem:[%s1889_s0 + $0x10] sm:$0xff]  }
   0xf   :  { %232 = vmatpush1.bf16.msra.mxu0 %v1420_v15  ;;  %v1466_v41 = vld [vmem:[%s1890_s5 + $0x68] sm:$0xff]   ;;  %v1468_v44 = vld [vmem:[%s1890_s5 + $0x60] sm:$0xff]   ;;  %v1470_v47 = vld [vmem:[%s1890_s5 + $0x58] sm:$0xff]  }
  0x10   :  { %473 = vmatpush1.bf16.msra.mxu1 %v1421_v16  ;;  %233 = vmatprep.subr.bf16.mxu0 %v1422_v17  ;;  %v1467_v43 = vld [vmem:[%s1890_s5 + $0x28] sm:$0xff]   ;;  %v1469_v46 = vld [vmem:[%s1890_s5 + $0x20] sm:$0xff]   ;;  %v1471_v48 = vld [vmem:[%s1890_s5 + $0x18] sm:$0xff]  }
  0x11   :  { %474 = vmatprep.subr.bf16.mxu1 %v1424_v18  ;;  %v1472_v49 = vld [vmem:[%s1890_s5 + $0x50] sm:$0xff]   ;;  %v1452_v50 = vld [vmem:[%s1888_s1 + $0x18] sm:$0xff]   ;;  %v1454_v53 = vld [vmem:[%s1888_s1 + $0x20] sm:$0xff]  }
  0x12   :  { %v1453_v51 = vld [vmem:[%s1889_s0 + $0x18] sm:$0xff]   ;;  %v1473_v52 = vld [vmem:[%s1890_s5 + $0x10] sm:$0xff]   ;;  %v1455_v54 = vld [vmem:[%s1889_s0 + $0x20] sm:$0xff]  }
  0x13   :  { %234 = vmatpush1.bf16.msra.mxu0 %v1426_v19  ;;  %v1456_v55 = vld [vmem:[%s1888_s1 + $0x28] sm:$0xff]   ;;  %v1458_v57 = vld [vmem:[%s1888_s1 + $0x30] sm:$0xff]   ;;  %v1460_v59 = vld [vmem:[%s1888_s1 + $0x38] sm:$0xff]  }
  0x14   :  { %475 = vmatpush1.bf16.msra.mxu1 %v1427_v20  ;;  %235 = vmatprep.subr.bf16.mxu0 %v1428_v21  ;;  %v1457_v56 = vld [vmem:[%s1889_s0 + $0x28] sm:$0xff]   ;;  %v1459_v58 = vld [vmem:[%s1889_s0 + $0x30] sm:$0xff]   ;;  %v1461_v60 = vld [vmem:[%s1889_s0 + $0x38] sm:$0xff]  }
  0x15   :  { %476 = vmatprep.subr.bf16.mxu1 %v1430_v22  ;;  %v1474_v61 = vld [vmem:[%s1890_s5 + $0x48] sm:$0xff]   ;;  %v1476_v63 = vld [vmem:[%s1890_s5 + $0x40] sm:$0xff]   ;;  %v1479_v2 = vld [vmem:[%s1891_s7 + $0x30] sm:$0xff]  }
  0x16   :  { %v1475_v62 = vld [vmem:[%s1890_s5 + $0x8] sm:$0xff]   ;;  %v1477_v0 = vld [vmem:[%s1890_s5] sm:$0xff]  }
  0x17   :  { %236 = vmatpush1.bf16.msra.mxu0 %v1432_v23  ;;  %v1480_v3 = vld [vmem:[%s1891_s7 + $0x28] sm:$0xff]   ;;  %v579_v10 = vld [vmem:[%s1892_s4] sm:$0x3] }
  0x18   :  { %477 = vmatpush1.bf16.msra.mxu1 %v1433_v24  ;;  %237 = vmatprep.subr.bf16.mxu0 %v1434_v25  ;;  %v1757_v14 = vrot.slane %v579_v10, %v583_v6  ;;  %v1759_v16 = vrot.slane %v579_v10, %v587_v7 }
  0x19   :  { %478 = vmatprep.subr.bf16.mxu1 %v1436_v26 }
  0x1b   :  { %238 = vmatpush1.bf16.msra.mxu0 %v1438_v27 }
  0x1c   :  { %479 = vmatpush1.bf16.msra.mxu1 %v1439_v28  ;;  %239 = vmatprep.subr.bf16.mxu0 %v1440_v29 }
  0x1d   :  { %480 = vmatprep.subr.bf16.mxu1 %v1442_v30 }
  0x1f   :  { %240 = vmatpush1.bf16.msra.mxu0 %v1444_v31 }
  0x20   :  { %481 = vmatpush1.bf16.msra.mxu1 %v1445_v32  ;;  %1285 = vmatprep.subr.bf16.mxu0 %v1462_v37 }
  0x22   :  { %258 = vmatmul.mubr.bf16.vlgmr.msra.gmra.mxu0 %v1446_v33 }
  0x23   :  { %499 = vmatmul.mubr.bf16.vlgmr.msra.gmra.mxu1 %v1447_v34  ;;  %267 = vmatprep.mubr.bf16.mxu0 %v1486_v1 }
  0x24   :  { %508 = vmatprep.mubr.bf16.mxu1 %v1486_v1  ;;  %1286 = vmatpush3.bf16.msra.mxu0 %v1463_v38 }
  0x25   :  { %1287 = vmatprep.subr.bf16.mxu0 %v1464_v39 }
  0x28   :  { %1288 = vmatpush3.bf16.msra.mxu0 %v1465_v40 }
  0x29   :  { %1289 = vmatprep.subr.bf16.mxu0 %v1466_v41 }
  0x2a   :  { %268 = vmatmul.mubr.bf16.gmra.mxu0 %v1448_v35 }
  0x2b   :  { %509 = vmatmul.mubr.bf16.gmra.mxu1 %v1449_v36  ;;  %277 = vmatprep.mubr.bf16.mxu0 %v1486_v1 }
  0x2c   :  { %518 = vmatprep.mubr.bf16.mxu1 %v1486_v1  ;;  %1290 = vmatpush3.bf16.msra.mxu0 %v1467_v43 }
  0x2d   :  { %1291 = vmatprep.subr.bf16.mxu0 %v1468_v44 }
  0x30   :  { %1292 = vmatpush3.bf16.msra.mxu0 %v1469_v46 }
  0x31   :  { %1293 = vmatprep.subr.bf16.mxu0 %v1470_v47 }
  0x32   :  { %278 = vmatmul.mubr.bf16.gmra.mxu0 %v1450_v42 }
  0x33   :  { %519 = vmatmul.mubr.bf16.gmra.mxu1 %v1451_v45  ;;  %287 = vmatprep.mubr.bf16.mxu0 %v1486_v1 }
  0x34   :  { %528 = vmatprep.mubr.bf16.mxu1 %v1486_v1  ;;  %1294 = vmatpush3.bf16.msra.mxu0 %v1471_v48 }
  0x35   :  { %1295 = vmatprep.subr.bf16.mxu0 %v1472_v49 }
  0x38   :  { %1296 = vmatpush3.bf16.msra.mxu0 %v1473_v52 }
  0x39   :  { %1297 = vmatprep.subr.bf16.mxu0 %v1474_v61 }
  0x3a   :  { %288 = vmatmul.mubr.bf16.gmra.mxu0 %v1452_v50 }
  0x3b   :  { %529 = vmatmul.mubr.bf16.gmra.mxu1 %v1453_v51  ;;  %297 = vmatprep.mubr.bf16.mxu0 %v1486_v1 }
  0x3c   :  { %538 = vmatprep.mubr.bf16.mxu1 %v1486_v1  ;;  %1298 = vmatpush3.bf16.msra.mxu0 %v1475_v62 }
  0x3d   :  { %1299 = vmatprep.subr.bf16.mxu0 %v1476_v63 }
  0x40   :  { %1300 = vmatpush3.bf16.msra.mxu0 %v1477_v0 }
  0x42   :  { %298 = vmatmul.mubr.bf16.gmra.mxu0 %v1454_v53 }
  0x43   :  { %539 = vmatmul.mubr.bf16.gmra.mxu1 %v1455_v54  ;;  %307 = vmatprep.mubr.bf16.mxu0 %v1486_v1 }
  0x44   :  { %548 = vmatprep.mubr.bf16.mxu1 %v1486_v1 }
  0x4a   :  { %308 = vmatmul.mubr.bf16.gmra.mxu0 %v1456_v55 }
  0x4b   :  { %549 = vmatmul.mubr.bf16.gmra.mxu1 %v1457_v56  ;;  %317 = vmatprep.mubr.bf16.mxu0 %v1486_v1 }
  0x4c   :  { %558 = vmatprep.mubr.bf16.mxu1 %v1486_v1 }
  0x52   :  { %318 = vmatmul.mubr.bf16.gmra.mxu0 %v1458_v57 }
  0x53   :  { %559 = vmatmul.mubr.bf16.gmra.mxu1 %v1459_v58  ;;  %327 = vmatprep.mubr.bf16.mxu0 %v1486_v1 }
  0x54   :  { %568 = vmatprep.mubr.bf16.mxu1 %v1486_v1  ;;  %v1478_v1 = vld [vmem:[%s1891_s7 + $0x38] sm:$0xff]  }
  0x55   :  { %1365 = vmatprep.subr.bf16.mxu1 %v1478_v1 }
  0x56   :  { %1366 = vmatpush3.bf16.msra.mxu1 %v1478_v1 }
  0x57   :  { %1367 = vmatprep.subr.bf16.mxu1 %v1479_v2 }
  0x5a   :  { %328 = vmatmul.mubr.bf16.gmra.mxu0 %v1460_v59  ;;  %1368 = vmatpush3.bf16.msra.mxu1 %v1479_v2 }
  0x5b   :  { %569 = vmatmul.mubr.bf16.gmra.mxu1 %v1461_v60  ;;  %1369 = vmatprep.subr.bf16.mxu1 %v1480_v3 }
  0x5e   :  { %1370 = vmatpush3.bf16.msra.mxu1 %v1480_v3 }
  0xe2   :  { %v259_v8 = vpop.f32.mrf.mxu0 }
  0xe3   :  { %v500_v9 = vpop.f32.mrf.mxu1 }
  0xe4   :  { %v261_v11 = vpop.f32.mrf.mxu0  ;;  %v501_v13 = vadd.f32 %v500_v9, %v259_v8 }
  0xe5   :  { %v502_v12 = vpop.f32.mrf.mxu1 }
  0xe6   :  { %v503_v15 = vadd.f32 %v502_v12, %v261_v11  ;;  %v263_v17 = vpop.f32.mrf.mxu0  ;;  %v591_v22 = vadd.f32 %v1757_v14, %v501_v13 }
  0xe7   :  { %v504_v18 = vpop.f32.mrf.mxu1 }
  0xe8   :  { %v505_v19 = vadd.f32 %v504_v18, %v263_v17  ;;  %v265_v20 = vpop.f32.mrf.mxu0  ;;  %v592_v23 = vadd.f32 %v1759_v16, %v503_v15  ;;  %v655_v32 = vmul.f32 0.01, %v591_v22  ;;  %vm623_vm3 = vcmp.ge.f32.partialorder %v591_v22, 0.0 }
  0xe9   :  { %v506_v21 = vpop.f32.mrf.mxu1 }
  0xea   :  { %v593_v24 = vadd.f32 %v1757_v14, %v505_v19  ;;  %v507_v25 = vadd.f32 %v506_v21, %v265_v20  ;;  %v269_v26 = vpop.f32.mrf.mxu0  ;;  %v656_v33 = vmul.f32 0.01, %v592_v23  ;;  %vm624_vm1 = vcmp.ge.f32.partialorder %v592_v23, 0.0 }
  0xeb   :  { %v510_v27 = vpop.f32.mrf.mxu1  ;;  %v687_v48 = vsel %vm623_vm3, %v591_v22, %v655_v32 }
  0xec   :  { %v657_v28 = vmul.f32 0.01, %v593_v24  ;;  %v594_v29 = vadd.f32 %v1759_v16, %v507_v25  ;;  %v271_v30 = vpop.f32.mrf.mxu0  ;;  %vm625_vm0 = vcmp.ge.f32.partialorder %v593_v24, 0.0  ;;  %v511_v36 = vadd.f32 %v510_v27, %v269_v26 }
  0xed   :  { %v512_v31 = vpop.f32.mrf.mxu1  ;;  %v688_v47 = vsel %vm624_vm1, %v592_v23, %v656_v33 }
  0xee   :  { %v513_v34 = vadd.f32 %v512_v31, %v271_v30  ;;  %vm626_vm2 = vcmp.ge.f32.partialorder %v594_v29, 0.0  ;;  %v658_v35 = vmul.f32 0.01, %v594_v29  ;;  %v273_v37 = vpop.f32.mrf.mxu0  ;;  %v689_v40 = vsel %vm625_vm0, %v593_v24, %v657_v28 }
  0xef   :  { %v514_v38 = vpop.f32.mrf.mxu1  ;;  %v595_v49 = vadd.f32 %v1757_v14, %v511_v36  ;;  %v719_v53 = vpack.c.bf16 %v689_v40, %v687_v48 }
  0xf0   :  { %v515_v39 = vadd.f32 %v514_v38, %v273_v37  ;;  %v596_v41 = vadd.f32 %v1759_v16, %v513_v34  ;;  %v275_v42 = vpop.f32.mrf.mxu0  ;;  %v690_v44 = vsel %vm626_vm2, %v594_v29, %v658_v35 }
  0xf1   :  { %v516_v43 = vpop.f32.mrf.mxu1  ;;  %v720_v52 = vpack.c.bf16 %v690_v44, %v688_v47  ;;  %v659_v61 = vmul.f32 0.01, %v595_v49  ;;  %vm627_vm7 = vcmp.ge.f32.partialorder %v595_v49, 0.0 }
  0xf2   :  { %v597_v45 = vadd.f32 %v1757_v14, %v515_v39  ;;  %v517_v46 = vadd.f32 %v516_v43, %v275_v42  ;;  %v279_v50 = vpop.f32.mrf.mxu0  ;;  %v660_v55 = vmul.f32 0.01, %v596_v41  ;;  %vm628_vm6 = vcmp.ge.f32.partialorder %v596_v41, 0.0 }
  0xf3   :  { %v520_v51 = vpop.f32.mrf.mxu1  ;;  %902 = vmatprep.mubr.bf16.mxu0 %v720_v52  ;;  %v691_v15 = vsel %vm627_vm7, %v595_v49, %v659_v61 }
  0xf4   :  { %v598_v54 = vadd.f32 %v1759_v16, %v517_v46  ;;  %v661_v56 = vmul.f32 0.01, %v597_v45  ;;  %v281_v57 = vpop.f32.mrf.mxu0  ;;  %vm629_vm4 = vcmp.ge.f32.partialorder %v597_v45, 0.0  ;;  %903 = vmatmul.mubr.bf16.vlgmr.msra.gmra.mxu0 %v719_v53  ;;  %v521_v62 = vadd.f32 %v520_v51, %v279_v50 }
  0xf5   :  { %v522_v58 = vpop.f32.mrf.mxu1  ;;  %v692_v9 = vsel %vm628_vm6, %v596_v41, %v660_v55 }
  0xf6   :  { %vm630_vm5 = vcmp.ge.f32.partialorder %v598_v54, 0.0  ;;  %v662_v59 = vmul.f32 0.01, %v598_v54  ;;  %v523_v60 = vadd.f32 %v522_v58, %v281_v57  ;;  %v283_v63 = vpop.f32.mrf.mxu0  ;;  %v693_v6 = vsel %vm629_vm4, %v597_v45, %v661_v56 }
  0xf7   :  { %v524_v0 = vpop.f32.mrf.mxu1  ;;  %v599_v10 = vadd.f32 %v1757_v14, %v521_v62  ;;  %v721_v18 = vpack.c.bf16 %v693_v6, %v691_v15 }
  0xf8   :  { %v525_v1 = vadd.f32 %v524_v0, %v283_v63  ;;  %v600_v2 = vadd.f32 %v1759_v16, %v523_v60  ;;  %v285_v3 = vpop.f32.mrf.mxu0  ;;  %v694_v5 = vsel %vm630_vm5, %v598_v54, %v662_v59 }
  0xf9   :  { %v526_v4 = vpop.f32.mrf.mxu1  ;;  %v722_v13 = vpack.c.bf16 %v694_v5, %v692_v9  ;;  %v663_v25 = vmul.f32 0.01, %v599_v10  ;;  %vm631_vm11 = vcmp.ge.f32.partialorder %v599_v10, 0.0 }
  0xfa   :  { %v601_v7 = vadd.f32 %v1757_v14, %v525_v1  ;;  %v527_v8 = vadd.f32 %v526_v4, %v285_v3  ;;  %v289_v11 = vpop.f32.mrf.mxu0  ;;  %v664_v19 = vmul.f32 0.01, %v600_v2  ;;  %vm632_vm10 = vcmp.ge.f32.partialorder %v600_v2, 0.0 }
  0xfb   :  { %v530_v12 = vpop.f32.mrf.mxu1  ;;  %910 = vmatprep.mubr.bf16.mxu0 %v722_v13  ;;  %v695_v42 = vsel %vm631_vm11, %v599_v10, %v663_v25 }
  0xfc   :  { %v602_v17 = vadd.f32 %v1759_v16, %v527_v8  ;;  %v665_v20 = vmul.f32 0.01, %v601_v7  ;;  %v291_v21 = vpop.f32.mrf.mxu0  ;;  %vm633_vm8 = vcmp.ge.f32.partialorder %v601_v7, 0.0  ;;  %911 = vmatmul.mubr.bf16.gmra.mxu0 %v721_v18  ;;  %v531_v26 = vadd.f32 %v530_v12, %v289_v11 }
  0xfd   :  { %v532_v22 = vpop.f32.mrf.mxu1  ;;  %v696_v37 = vsel %vm632_vm10, %v600_v2, %v664_v19 }
  0xfe   :  { %vm634_vm9 = vcmp.ge.f32.partialorder %v602_v17, 0.0  ;;  %v666_v23 = vmul.f32 0.01, %v602_v17  ;;  %v533_v24 = vadd.f32 %v532_v22, %v291_v21  ;;  %v293_v27 = vpop.f32.mrf.mxu0  ;;  %v697_v34 = vsel %vm633_vm8, %v601_v7, %v665_v20 }
  0xff   :  { %v534_v28 = vpop.f32.mrf.mxu1  ;;  %v603_v38 = vadd.f32 %v1757_v14, %v531_v26  ;;  %v723_v44 = vpack.c.bf16 %v697_v34, %v695_v42 }
 0x100   :  { %v535_v29 = vadd.f32 %v534_v28, %v293_v27  ;;  %v604_v30 = vadd.f32 %v1759_v16, %v533_v24  ;;  %v295_v31 = vpop.f32.mrf.mxu0  ;;  %v698_v33 = vsel %vm634_vm9, %v602_v17, %v666_v23 }
 0x101   :  { %v536_v32 = vpop.f32.mrf.mxu1  ;;  %v724_v41 = vpack.c.bf16 %v698_v33, %v696_v37  ;;  %v667_v51 = vmul.f32 0.01, %v603_v38  ;;  %vm635_vm15 = vcmp.ge.f32.partialorder %v603_v38, 0.0 }
 0x102   :  { %v605_v35 = vadd.f32 %v1757_v14, %v535_v29  ;;  %v537_v36 = vadd.f32 %v536_v32, %v295_v31  ;;  %v299_v39 = vpop.f32.mrf.mxu0  ;;  %v668_v45 = vmul.f32 0.01, %v604_v30  ;;  %vm636_vm14 = vcmp.ge.f32.partialorder %v604_v30, 0.0 }
 0x103   :  { %v540_v40 = vpop.f32.mrf.mxu1  ;;  %918 = vmatprep.mubr.bf16.mxu0 %v724_v41  ;;  %v699_v4 = vsel %vm635_vm15, %v603_v38, %v667_v51 }
 0x104   :  { %v606_v43 = vadd.f32 %v1759_v16, %v537_v36  ;;  %v669_v46 = vmul.f32 0.01, %v605_v35  ;;  %v301_v47 = vpop.f32.mrf.mxu0  ;;  %vm637_vm12 = vcmp.ge.f32.partialorder %v605_v35, 0.0  ;;  %919 = vmatmul.mubr.bf16.gmra.mxu0 %v723_v44  ;;  %v541_v52 = vadd.f32 %v540_v40, %v299_v39 }
 0x105   :  { %v542_v48 = vpop.f32.mrf.mxu1  ;;  %v700_v63 = vsel %vm636_vm14, %v604_v30, %v668_v45 }
 0x106   :  { %vm638_vm13 = vcmp.ge.f32.partialorder %v606_v43, 0.0  ;;  %v670_v49 = vmul.f32 0.01, %v606_v43  ;;  %v543_v50 = vadd.f32 %v542_v48, %v301_v47  ;;  %v303_v53 = vpop.f32.mrf.mxu0  ;;  %v701_v60 = vsel %vm637_vm12, %v605_v35, %v669_v46 }
 0x107   :  { %v544_v54 = vpop.f32.mrf.mxu1  ;;  %v607_v0 = vadd.f32 %v1757_v14, %v541_v52  ;;  %v725_v6 = vpack.c.bf16 %v701_v60, %v699_v4 }
 0x108   :  { %v545_v55 = vadd.f32 %v544_v54, %v303_v53  ;;  %v608_v56 = vadd.f32 %v1759_v16, %v543_v50  ;;  %v305_v57 = vpop.f32.mrf.mxu0  ;;  %v702_v59 = vsel %vm638_vm13, %v606_v43, %v670_v49 }
 0x109   :  { %v546_v58 = vpop.f32.mrf.mxu1  ;;  %v726_v3 = vpack.c.bf16 %v702_v59, %v700_v63  ;;  %v671_v13 = vmul.f32 0.01, %v607_v0  ;;  %vm639_vm3 = vcmp.ge.f32.partialorder %v607_v0, 0.0 }
 0x10a   :  { %v609_v61 = vadd.f32 %v1757_v14, %v545_v55  ;;  %v547_v62 = vadd.f32 %v546_v58, %v305_v57  ;;  %v309_v1 = vpop.f32.mrf.mxu0  ;;  %v672_v7 = vmul.f32 0.01, %v608_v56  ;;  %vm640_vm2 = vcmp.ge.f32.partialorder %v608_v56, 0.0 }
 0x10b   :  { %v550_v2 = vpop.f32.mrf.mxu1  ;;  %926 = vmatprep.mubr.bf16.mxu0 %v726_v3  ;;  %v703_v32 = vsel %vm639_vm3, %v607_v0, %v671_v13 }
 0x10c   :  { %v610_v5 = vadd.f32 %v1759_v16, %v547_v62  ;;  %v673_v8 = vmul.f32 0.01, %v609_v61  ;;  %v311_v9 = vpop.f32.mrf.mxu0  ;;  %vm641_vm0 = vcmp.ge.f32.partialorder %v609_v61, 0.0  ;;  %927 = vmatmul.mubr.bf16.gmra.mxu0 %v725_v6  ;;  %v551_v15 = vadd.f32 %v550_v2, %v309_v1 }
 0x10d   :  { %v552_v10 = vpop.f32.mrf.mxu1  ;;  %v704_v27 = vsel %vm640_vm2, %v608_v56, %v672_v7 }
 0x10e   :  { %vm642_vm1 = vcmp.ge.f32.partialorder %v610_v5, 0.0  ;;  %v674_v11 = vmul.f32 0.01, %v610_v5  ;;  %v553_v12 = vadd.f32 %v552_v10, %v311_v9  ;;  %v313_v17 = vpop.f32.mrf.mxu0  ;;  %v705_v24 = vsel %vm641_vm0, %v609_v61, %v673_v8 }
 0x10f   :  { %v554_v18 = vpop.f32.mrf.mxu1  ;;  %v611_v28 = vadd.f32 %v1757_v14, %v551_v15  ;;  %v727_v34 = vpack.c.bf16 %v705_v24, %v703_v32  ;;  %v1482_v32 = vld [vmem:[%s1891_s7 + $0x18] sm:$0xff]  }
 0x110   :  { %v555_v19 = vadd.f32 %v554_v18, %v313_v17  ;;  %v612_v20 = vadd.f32 %v1759_v16, %v553_v12  ;;  %v315_v21 = vpop.f32.mrf.mxu0  ;;  %v706_v23 = vsel %vm642_vm1, %v610_v5, %v674_v11 }
 0x111   :  { %v556_v22 = vpop.f32.mrf.mxu1  ;;  %v728_v31 = vpack.c.bf16 %v706_v23, %v704_v27  ;;  %v675_v41 = vmul.f32 0.01, %v611_v28  ;;  %vm643_vm7 = vcmp.ge.f32.partialorder %v611_v28, 0.0 }
 0x112   :  { %v613_v25 = vadd.f32 %v1757_v14, %v555_v19  ;;  %v557_v26 = vadd.f32 %v556_v22, %v315_v21  ;;  %v319_v29 = vpop.f32.mrf.mxu0  ;;  %v676_v35 = vmul.f32 0.01, %v612_v20  ;;  %vm644_vm6 = vcmp.ge.f32.partialorder %v612_v20, 0.0 }
 0x113   :  { %v560_v30 = vpop.f32.mrf.mxu1  ;;  %934 = vmatprep.mubr.bf16.mxu0 %v728_v31  ;;  %v707_v58 = vsel %vm643_vm7, %v611_v28, %v675_v41 }
 0x114   :  { %v614_v33 = vadd.f32 %v1759_v16, %v557_v26  ;;  %v677_v36 = vmul.f32 0.01, %v613_v25  ;;  %v321_v37 = vpop.f32.mrf.mxu0  ;;  %vm645_vm4 = vcmp.ge.f32.partialorder %v613_v25, 0.0  ;;  %935 = vmatmul.mubr.bf16.gmra.mxu0 %v727_v34  ;;  %v561_v42 = vadd.f32 %v560_v30, %v319_v29  ;;  %v1484_v34 = vld [vmem:[%s1891_s7 + $0x8] sm:$0xff]  }
 0x115   :  { %v562_v38 = vpop.f32.mrf.mxu1  ;;  %v708_v53 = vsel %vm644_vm6, %v612_v20, %v676_v35  ;;  %v1485_v35 = vld [vmem:[%s1891_s7] sm:$0xff]  }
 0x116   :  { %vm646_vm5 = vcmp.ge.f32.partialorder %v614_v33, 0.0  ;;  %v678_v39 = vmul.f32 0.01, %v614_v33  ;;  %v563_v40 = vadd.f32 %v562_v38, %v321_v37  ;;  %v323_v43 = vpop.f32.mrf.mxu0  ;;  %v709_v50 = vsel %vm645_vm4, %v613_v25, %v677_v36  ;;  %v1817_v37 = vld [vmem:[%s1893_s6] ss:$0 sm:$0xff] }
 0x117   :  { %v564_v44 = vpop.f32.mrf.mxu1  ;;  %v615_v54 = vadd.f32 %v1757_v14, %v561_v42  ;;  %v729_v60 = vpack.c.bf16 %v709_v50, %v707_v58 }
 0x118   :  { %v565_v45 = vadd.f32 %v564_v44, %v323_v43  ;;  %v616_v46 = vadd.f32 %v1759_v16, %v563_v40  ;;  %v325_v47 = vpop.f32.mrf.mxu0  ;;  %v710_v49 = vsel %vm646_vm5, %v614_v33, %v678_v39  ;;  %v1483_v33 = vld [vmem:[%s1891_s7 + $0x10] sm:$0xff]  }
 0x119   :  { %v566_v48 = vpop.f32.mrf.mxu1  ;;  %v730_v57 = vpack.c.bf16 %v710_v49, %v708_v53  ;;  %v679_v3 = vmul.f32 0.01, %v615_v54  ;;  %vm647_vm11 = vcmp.ge.f32.partialorder %v615_v54, 0.0 }
 0x11a   :  { %v617_v51 = vadd.f32 %v1757_v14, %v565_v45  ;;  %v567_v52 = vadd.f32 %v566_v48, %v325_v47  ;;  %v329_v55 = vpop.f32.mrf.mxu0  ;;  %v680_v61 = vmul.f32 0.01, %v616_v46  ;;  %vm648_vm10 = vcmp.ge.f32.partialorder %v616_v46, 0.0 }
 0x11b   :  { %v570_v56 = vpop.f32.mrf.mxu1  ;;  %942 = vmatprep.mubr.bf16.mxu0 %v730_v57  ;;  %v711_v20 = vsel %vm647_vm11, %v615_v54, %v679_v3 }
 0x11c   :  { %v618_v59 = vadd.f32 %v1759_v16, %v567_v52  ;;  %v681_v62 = vmul.f32 0.01, %v617_v51  ;;  %v331_v63 = vpop.f32.mrf.mxu0  ;;  %vm649_vm8 = vcmp.ge.f32.partialorder %v617_v51, 0.0  ;;  %943 = vmatmul.mubr.bf16.gmra.mxu0 %v729_v60  ;;  %v571_v4 = vadd.f32 %v570_v56, %v329_v55 }
 0x11d   :  { %v572_v0 = vpop.f32.mrf.mxu1  ;;  %v712_v17 = vsel %vm648_vm10, %v616_v46, %v680_v61 }
 0x11e   :  { %vm650_vm9 = vcmp.ge.f32.partialorder %v618_v59, 0.0  ;;  %v682_v1 = vmul.f32 0.01, %v618_v59  ;;  %v573_v2 = vadd.f32 %v572_v0, %v331_v63  ;;  %v333_v5 = vpop.f32.mrf.mxu0  ;;  %v713_v12 = vsel %vm649_vm8, %v617_v51, %v681_v62 }
 0x11f   :  { %v574_v6 = vpop.f32.mrf.mxu1  ;;  %v619_v18 = vadd.f32 %v1757_v14, %v571_v4  ;;  %v731_v23 = vpack.c.bf16 %v713_v12, %v711_v20 }
 0x120   :  { %v620_v7 = vadd.f32 %v1759_v16, %v573_v2  ;;  %v575_v8 = vadd.f32 %v574_v6, %v333_v5  ;;  %v335_v9 = vpop.f32.mrf.mxu0  ;;  %v714_v11 = vsel %vm650_vm9, %v618_v59, %v682_v1 }
 0x121   :  { %v576_v10 = vpop.f32.mrf.mxu1  ;;  %v732_v19 = vpack.c.bf16 %v714_v11, %v712_v17  ;;  %v683_v26 = vmul.f32 0.01, %v619_v18  ;;  %vm651_vm15 = vcmp.ge.f32.partialorder %v619_v18, 0.0 }
 0x122   :  { %v621_v13 = vadd.f32 %v1757_v14, %v575_v8  ;;  %v577_v15 = vadd.f32 %v576_v10, %v335_v9  ;;  %v684_v21 = vmul.f32 0.01, %v620_v7  ;;  %vm652_vm12 = vcmp.ge.f32.partialorder %v620_v7, 0.0 }
 0x123   :  { %950 = vmatprep.mubr.bf16.mxu0 %v732_v19  ;;  %v715_v14 = vsel %vm651_vm15, %v619_v18, %v683_v26 }
 0x124   :  { %v622_v22 = vadd.f32 %v1759_v16, %v577_v15  ;;  %v685_v24 = vmul.f32 0.01, %v621_v13  ;;  %vm653_vm13 = vcmp.ge.f32.partialorder %v621_v13, 0.0  ;;  %951 = vmatmul.mubr.bf16.gmra.mxu0 %v731_v23  ;;  %v716_v27 = vsel %vm652_vm12, %v620_v7, %v684_v21  ;;  %v1481_v16 = vld [vmem:[%s1891_s7 + $0x20] sm:$0xff]  }
 0x125   :  { %1371 = vmatprep.subr.bf16.mxu1 %v1481_v16 }
 0x126   :  { %vm654_vm14 = vcmp.ge.f32.partialorder %v622_v22, 0.0  ;;  %v686_v25 = vmul.f32 0.01, %v622_v22  ;;  %v717_v30 = vsel %vm653_vm13, %v621_v13, %v685_v24  ;;  %1372 = vmatpush3.bf16.msra.mxu1 %v1481_v16 }
 0x127   :  { %v733_v31 = vpack.c.bf16 %v717_v30, %v715_v14  ;;  %1373 = vmatprep.subr.bf16.mxu1 %v1482_v32 }
 0x128   :  { %v718_v28 = vsel %vm654_vm14, %v622_v22, %v686_v25 }
 0x129   :  { %v734_v29 = vpack.c.bf16 %v718_v28, %v716_v27 }
 0x12a   :  { %1374 = vmatpush3.bf16.msra.mxu1 %v1482_v32 }
 0x12b   :  { %958 = vmatprep.mubr.bf16.mxu0 %v734_v29  ;;  %1375 = vmatprep.subr.bf16.mxu1 %v1483_v33 }
 0x12c   :  { %959 = vmatmul.mubr.bf16.gmra.mxu0 %v733_v31 }
 0x12e   :  { %1376 = vmatpush3.bf16.msra.mxu1 %v1483_v33 }
 0x12f   :  { %1377 = vmatprep.subr.bf16.mxu1 %v1484_v34 }
 0x132   :  { %1378 = vmatpush3.bf16.msra.mxu1 %v1484_v34 }
 0x133   :  { %1379 = vmatprep.subr.bf16.mxu1 %v1485_v35 }
 0x136   :  { %1380 = vmatpush3.bf16.msra.mxu1 %v1485_v35 }
 0x1b4   :  { %v1301_v36 = vpop.f32.mrf.mxu0 }
 0x1b6   :  { %v1302_v38 = vpop.f32.mrf.mxu0 }
 0x1b7   :  { %v1303_v39 = vadd.f32 %v1302_v38, %v1301_v36 }
 0x1b8   :  { %v1304_v40 = vpop.f32.mrf.mxu0 }
 0x1b9   :  { %v905_v41 = vadd.f32 %v1303_v39, %v1817_v37 }
 0x1ba   :  { %v1305_v42 = vpop.f32.mrf.mxu0 }
 0x1bb   :  { %v1306_v43 = vadd.f32 %v1305_v42, %v1304_v40  ;;  %v983_v45 = vmul.f32 0.01, %v905_v41  ;;  %vm967_vm0 = vcmp.ge.f32.partialorder %v905_v41, 0.0 }
 0x1bc   :  { %v1307_v44 = vpop.f32.mrf.mxu0 }
 0x1bd   :  { %v908_v46 = vadd.f32 %v1306_v43, %v1817_v37  ;;  %v999_v52 = vsel %vm967_vm0, %v905_v41, %v983_v45 }
 0x1be   :  { %v1308_v47 = vpop.f32.mrf.mxu0 }
 0x1bf   :  { %vm968_vm1 = vcmp.ge.f32.partialorder %v908_v46, 0.0  ;;  %v984_v48 = vmul.f32 0.01, %v908_v46  ;;  %v1309_v49 = vadd.f32 %v1308_v47, %v1307_v44 }
 0x1c0   :  { %v1310_v50 = vpop.f32.mrf.mxu0 }
 0x1c1   :  { %v913_v51 = vadd.f32 %v1309_v49, %v1817_v37  ;;  %v1000_v53 = vsel %vm968_vm1, %v908_v46, %v984_v48 }
 0x1c2   :  { %v1311_v54 = vpop.f32.mrf.mxu0  ;;  %v1015_v55 = vpack.c.bf16 %v1000_v53, %v999_v52 }
 0x1c3   :  { %v1312_v56 = vadd.f32 %v1311_v54, %v1310_v50  ;;  %v985_v58 = vmul.f32 0.01, %v913_v51  ;;  %vm969_vm2 = vcmp.ge.f32.partialorder %v913_v51, 0.0 }
 0x1c4   :  { %v1313_v57 = vpop.f32.mrf.mxu0  ;;  %1381 = vmatprep.mubr.bf16.mxu1 %v1015_v55 }
 0x1c5   :  { %v916_v59 = vadd.f32 %v1312_v56, %v1817_v37  ;;  %v1001_v0 = vsel %vm969_vm2, %v913_v51, %v985_v58 }
 0x1c6   :  { %v1314_v60 = vpop.f32.mrf.mxu0 }
 0x1c7   :  { %vm970_vm3 = vcmp.ge.f32.partialorder %v916_v59, 0.0  ;;  %v986_v61 = vmul.f32 0.01, %v916_v59  ;;  %v1315_v62 = vadd.f32 %v1314_v60, %v1313_v57 }
 0x1c8   :  { %v1316_v63 = vpop.f32.mrf.mxu0 }
 0x1c9   :  { %v1002_v1 = vsel %vm970_vm3, %v916_v59, %v986_v61  ;;  %v921_v2 = vadd.f32 %v1315_v62, %v1817_v37 }
 0x1ca   :  { %v1016_v3 = vpack.c.bf16 %v1002_v1, %v1001_v0  ;;  %v1317_v4 = vpop.f32.mrf.mxu0 }
 0x1cb   :  { %v1318_v5 = vadd.f32 %v1317_v4, %v1316_v63  ;;  %v987_v7 = vmul.f32 0.01, %v921_v2  ;;  %vm971_vm4 = vcmp.ge.f32.partialorder %v921_v2, 0.0 }
 0x1cc   :  { %v1319_v6 = vpop.f32.mrf.mxu0  ;;  %1382 = vmatmul.mubr.bf16.vlgmr.msra.gmra.mxu1 %v1016_v3 }
 0x1cd   :  { %v924_v8 = vadd.f32 %v1318_v5, %v1817_v37  ;;  %v1003_v15 = vsel %vm971_vm4, %v921_v2, %v987_v7 }
 0x1ce   :  { %v1320_v9 = vpop.f32.mrf.mxu0 }
 0x1cf   :  { %vm972_vm5 = vcmp.ge.f32.partialorder %v924_v8, 0.0  ;;  %v988_v10 = vmul.f32 0.01, %v924_v8  ;;  %v1321_v11 = vadd.f32 %v1320_v9, %v1319_v6 }
 0x1d0   :  { %v1322_v12 = vpop.f32.mrf.mxu0 }
 0x1d1   :  { %v929_v13 = vadd.f32 %v1321_v11, %v1817_v37  ;;  %v1004_v17 = vsel %vm972_vm5, %v924_v8, %v988_v10 }
 0x1d2   :  { %v1323_v18 = vpop.f32.mrf.mxu0  ;;  %v1017_v19 = vpack.c.bf16 %v1004_v17, %v1003_v15  ;;  %v1276_v15 = vld [vmem:[%s1894_s8] ss:$0 sm:$0xff] }
 0x1d3   :  { %v1324_v20 = vadd.f32 %v1323_v18, %v1322_v12  ;;  %v989_v22 = vmul.f32 0.01, %v929_v13  ;;  %vm973_vm6 = vcmp.ge.f32.partialorder %v929_v13, 0.0 }
 0x1d4   :  { %v1325_v21 = vpop.f32.mrf.mxu0  ;;  %1385 = vmatprep.mubr.bf16.mxu1 %v1017_v19 }
 0x1d5   :  { %v932_v23 = vadd.f32 %v1324_v20, %v1817_v37  ;;  %v1005_v29 = vsel %vm973_vm6, %v929_v13, %v989_v22 }
 0x1d6   :  { %v1326_v24 = vpop.f32.mrf.mxu0 }
 0x1d7   :  { %vm974_vm7 = vcmp.ge.f32.partialorder %v932_v23, 0.0  ;;  %v990_v25 = vmul.f32 0.01, %v932_v23  ;;  %v1327_v26 = vadd.f32 %v1326_v24, %v1325_v21 }
 0x1d8   :  { %v1328_v27 = vpop.f32.mrf.mxu0 }
 0x1d9   :  { %v937_v28 = vadd.f32 %v1327_v26, %v1817_v37  ;;  %v1006_v30 = vsel %vm974_vm7, %v932_v23, %v990_v25 }
 0x1da   :  { %v1329_v14 = vpop.f32.mrf.mxu0  ;;  %v1018_v31 = vpack.c.bf16 %v1006_v30, %v1005_v29 }
 0x1db   :  { %v1330_v16 = vadd.f32 %v1329_v14, %v1328_v27  ;;  %v991_v33 = vmul.f32 0.01, %v937_v28  ;;  %vm975_vm8 = vcmp.ge.f32.partialorder %v937_v28, 0.0 }
 0x1dc   :  { %v1331_v32 = vpop.f32.mrf.mxu0  ;;  %1386 = vmatmul.mubr.bf16.gmra.mxu1 %v1018_v31 }
 0x1dd   :  { %v940_v34 = vadd.f32 %v1330_v16, %v1817_v37  ;;  %v1007_v41 = vsel %vm975_vm8, %v937_v28, %v991_v33 }
 0x1de   :  { %v1332_v35 = vpop.f32.mrf.mxu0 }
 0x1df   :  { %vm976_vm9 = vcmp.ge.f32.partialorder %v940_v34, 0.0  ;;  %v992_v36 = vmul.f32 0.01, %v940_v34  ;;  %v1333_v38 = vadd.f32 %v1332_v35, %v1331_v32 }
 0x1e0   :  { %v1334_v39 = vpop.f32.mrf.mxu0 }
 0x1e1   :  { %v945_v40 = vadd.f32 %v1333_v38, %v1817_v37  ;;  %v1008_v42 = vsel %vm976_vm9, %v940_v34, %v992_v36 }
 0x1e2   :  { %v1335_v43 = vpop.f32.mrf.mxu0  ;;  %v1019_v44 = vpack.c.bf16 %v1008_v42, %v1007_v41 }
 0x1e3   :  { %v1336_v45 = vadd.f32 %v1335_v43, %v1334_v39  ;;  %v993_v47 = vmul.f32 0.01, %v945_v40  ;;  %vm977_vm10 = vcmp.ge.f32.partialorder %v945_v40, 0.0 }
 0x1e4   :  { %v1337_v46 = vpop.f32.mrf.mxu0  ;;  %1389 = vmatprep.mubr.bf16.mxu1 %v1019_v44 }
 0x1e5   :  { %v948_v48 = vadd.f32 %v1336_v45, %v1817_v37  ;;  %v1009_v54 = vsel %vm977_vm10, %v945_v40, %v993_v47 }
 0x1e6   :  { %v1338_v49 = vpop.f32.mrf.mxu0 }
 0x1e7   :  { %vm978_vm11 = vcmp.ge.f32.partialorder %v948_v48, 0.0  ;;  %v994_v50 = vmul.f32 0.01, %v948_v48  ;;  %v1339_v51 = vadd.f32 %v1338_v49, %v1337_v46 }
 0x1e8   :  { %v1340_v52 = vpop.f32.mrf.mxu0 }
 0x1e9   :  { %v953_v53 = vadd.f32 %v1339_v51, %v1817_v37  ;;  %v1010_v55 = vsel %vm978_vm11, %v948_v48, %v994_v50 }
 0x1ea   :  { %v1341_v56 = vpop.f32.mrf.mxu0  ;;  %v1020_v57 = vpack.c.bf16 %v1010_v55, %v1009_v54 }
 0x1eb   :  { %v1342_v58 = vadd.f32 %v1341_v56, %v1340_v52  ;;  %v995_v60 = vmul.f32 0.01, %v953_v53  ;;  %vm979_vm12 = vcmp.ge.f32.partialorder %v953_v53, 0.0 }
 0x1ec   :  { %v1343_v59 = vpop.f32.mrf.mxu0  ;;  %1390 = vmatmul.mubr.bf16.gmra.mxu1 %v1020_v57 }
 0x1ed   :  { %v956_v61 = vadd.f32 %v1342_v58, %v1817_v37  ;;  %v1011_v3 = vsel %vm979_vm12, %v953_v53, %v995_v60 }
 0x1ee   :  { %v1344_v62 = vpop.f32.mrf.mxu0 }
 0x1ef   :  { %vm980_vm13 = vcmp.ge.f32.partialorder %v956_v61, 0.0  ;;  %v996_v63 = vmul.f32 0.01, %v956_v61  ;;  %v1345_v0 = vadd.f32 %v1344_v62, %v1343_v59 }
 0x1f0   :  { %v1346_v1 = vpop.f32.mrf.mxu0 }
 0x1f1   :  { %v961_v2 = vadd.f32 %v1345_v0, %v1817_v37  ;;  %v1012_v4 = vsel %vm980_vm13, %v956_v61, %v996_v63 }
 0x1f2   :  { %v1347_v5 = vpop.f32.mrf.mxu0  ;;  %v1021_v6 = vpack.c.bf16 %v1012_v4, %v1011_v3 }
 0x1f3   :  { %v1348_v7 = vadd.f32 %v1347_v5, %v1346_v1  ;;  %v997_v8 = vmul.f32 0.01, %v961_v2  ;;  %vm981_vm14 = vcmp.ge.f32.partialorder %v961_v2, 0.0 }
 0x1f4   :  { %1393 = vmatprep.mubr.bf16.mxu1 %v1021_v6 }
 0x1f5   :  { %v964_v9 = vadd.f32 %v1348_v7, %v1817_v37  ;;  %v1013_v11 = vsel %vm981_vm14, %v961_v2, %v997_v8 }
 0x1f7   :  { %vm982_vm15 = vcmp.ge.f32.partialorder %v964_v9, 0.0  ;;  %v998_v10 = vmul.f32 0.01, %v964_v9 }
 0x1f9   :  { %v1014_v12 = vsel %vm982_vm15, %v964_v9, %v998_v10 }
 0x1fa   :  { %v1022_v13 = vpack.c.bf16 %v1014_v12, %v1013_v11 }
 0x1fc   :  { %1394 = vmatmul.mubr.bf16.gmra.mxu1 %v1022_v13 }
 0x28c   :  { %v1383_v17 = vpop.f32.mrf.mxu1 }
 0x28d   :  { %v1137_v18 = vadd.f32 %v1383_v17, %v1276_v15 }
 0x28e   :  { %v1128_v19 = vpop.f32.mrf.mxu1 }
 0x28f   :  { %1193 = vst [vmem:[%s1895_s9 + $0x10] sm:$0xff] %v1137_v18  ;;  %v1129_v20 = vadd.f32 %v1276_v15, %v1128_v19 }
 0x290   :  { %v1384_v37 = vpop.f32.mrf.mxu1 }
 0x291   :  { %1191 = vst [vmem:[%s1895_s9] sm:$0xff] %v1129_v20  ;;  %v1140_v21 = vadd.f32 %v1384_v37, %v1276_v15 }
 0x292   :  { %v1131_v22 = vpop.f32.mrf.mxu1 }
 0x293   :  { %1194 = vst [vmem:[%s1895_s9 + $0x18] sm:$0xff] %v1140_v21  ;;  %v1132_v23 = vadd.f32 %v1276_v15, %v1131_v22 }
 0x295   :  { %1192 = vst [vmem:[%s1895_s9 + $0x8] sm:$0xff] %v1132_v23 }
 0x29c   :  { %v1387_v24 = vpop.f32.mrf.mxu1 }
 0x29d   :  { %v1153_v25 = vadd.f32 %v1387_v24, %v1276_v15 }
 0x29e   :  { %v1144_v26 = vpop.f32.mrf.mxu1 }
 0x29f   :  { %1197 = vst [vmem:[%s1895_s9 + $0x30] sm:$0xff] %v1153_v25  ;;  %v1145_v27 = vadd.f32 %v1276_v15, %v1144_v26 }
 0x2a0   :  { %v1388_v28 = vpop.f32.mrf.mxu1 }
 0x2a1   :  { %1195 = vst [vmem:[%s1895_s9 + $0x20] sm:$0xff] %v1145_v27  ;;  %v1156_v29 = vadd.f32 %v1388_v28, %v1276_v15 }
 0x2a2   :  { %v1147_v30 = vpop.f32.mrf.mxu1 }
 0x2a3   :  { %1198 = vst [vmem:[%s1895_s9 + $0x38] sm:$0xff] %v1156_v29  ;;  %v1148_v14 = vadd.f32 %v1276_v15, %v1147_v30 }
 0x2a5   :  { %1196 = vst [vmem:[%s1895_s9 + $0x28] sm:$0xff] %v1148_v14 }
 0x2ac   :  { %v1391_v31 = vpop.f32.mrf.mxu1 }
 0x2ad   :  { %v1169_v16 = vadd.f32 %v1391_v31, %v1276_v15 }
 0x2ae   :  { %v1160_v32 = vpop.f32.mrf.mxu1 }
 0x2af   :  { %1201 = vst [vmem:[%s1895_s9 + $0x50] sm:$0xff] %v1169_v16  ;;  %v1161_v33 = vadd.f32 %v1276_v15, %v1160_v32 }
 0x2b0   :  { %v1392_v34 = vpop.f32.mrf.mxu1 }
 0x2b1   :  { %1199 = vst [vmem:[%s1895_s9 + $0x40] sm:$0xff] %v1161_v33  ;;  %v1172_v35 = vadd.f32 %v1392_v34, %v1276_v15 }
 0x2b2   :  { %v1163_v36 = vpop.f32.mrf.mxu1 }
 0x2b3   :  { %1202 = vst [vmem:[%s1895_s9 + $0x58] sm:$0xff] %v1172_v35  ;;  %v1164_v38 = vadd.f32 %v1276_v15, %v1163_v36 }
 0x2b5   :  { %1200 = vst [vmem:[%s1895_s9 + $0x48] sm:$0xff] %v1164_v38 }
 0x2bc   :  { %v1395_v39 = vpop.f32.mrf.mxu1 }
 0x2bd   :  { %v1185_v40 = vadd.f32 %v1395_v39, %v1276_v15 }
 0x2be   :  { %v1176_v41 = vpop.f32.mrf.mxu1 }
 0x2bf   :  { %1205 = vst [vmem:[%s1895_s9 + $0x70] sm:$0xff] %v1185_v40  ;;  %v1177_v42 = vadd.f32 %v1276_v15, %v1176_v41 }
 0x2c0   :  { %v1396_v43 = vpop.f32.mrf.mxu1 }
 0x2c1   :  { %1203 = vst [vmem:[%s1895_s9 + $0x60] sm:$0xff] %v1177_v42  ;;  %v1188_v44 = vadd.f32 %v1396_v43, %v1276_v15 }
 0x2c2   :  { %v1179_v45 = vpop.f32.mrf.mxu1 }
 0x2c3   :  { %1206 = vst [vmem:[%s1895_s9 + $0x78] sm:$0xff] %v1188_v44  ;;  %v1180_v46 = vadd.f32 %v1276_v15, %v1179_v45 }
 0x2c5   :  { %1204 = vst [vmem:[%s1895_s9 + $0x68] sm:$0xff] %v1180_v46 }

</bundles_post_ra>
